<compile_context>
chip_gen: v5e
topology: v5e:2x2
jax: 0.10.0
libtpu: 0.0.40
codegen_flags: <defaults>
</compile_context>

<pallas_src>
import jax
import jax.numpy as jnp
from jax import lax
from jax.experimental import pallas as pl
from jax.experimental.pallas import tpu as pltpu


def _round_up(x, m):
    return (x + m - 1) // m * m


def _acblock_kernel(x_ref, halo_ref, w_ref, b_ref, o_ref):
    """Fused 3x3 conv (ACNet re-param) + bias + relu on one (batch, rows, Cout) tile.

    x_ref    : (NB, TH, Wi, Cin)  bf16  padded-input rows [ht*TH, ht*TH+TH)
    halo_ref : (NB, 2,  Wi, Cin)  bf16  the next 2 padded-input rows (halo)
    w_ref    : (9, Cin, TC)       bf16  fused 3x3 weight, tap index = dh*3 + dw
    b_ref    : (1, TC)            f32   fused bias (this Cout tile)
    o_ref    : (NB, TH, Wo, TC)   f32
    """
    nb, th, wi, cin = x_ref.shape
    wo = o_ref.shape[2]
    tc = o_ref.shape[3]

    x = x_ref[...]          # (NB, TH, Wi, Cin)
    halo = halo_ref[...]    # (NB, 2,  Wi, Cin)
    w = w_ref[...]          # (9, Cin, TC)
    bias = b_ref[...]       # (1, TC)

    def tap(rows, dh, dw):
        # rows is a window with (R+2) input rows covering R output rows; tap
        # (dh, dw) reads input rows [dh, dh+R) and input cols [dw, dw+Wo).
        r = rows.shape[1] - 2
        lhs = rows[:, dh:dh + r, dw:dw + wo, :].reshape(nb * r * wo, cin)
        out = jnp.dot(lhs, w[dh * 3 + dw], preferred_element_type=jnp.float32)
        return out.reshape(nb, r, wo, tc)

    # ---- body: output rows [0, TH-2) read main rows only -------------------
    body = tap(x, 0, 0)
    for dh in range(3):
        for dw in range(3):
            if dh == 0 and dw == 0:
                continue
            body = body + tap(x, dh, dw)

    # ---- tail: last 2 output rows straddle the main/halo row boundary ------
    tailwin = jnp.concatenate([x[:, th - 2:, :, :], halo], axis=1)  # (NB,4,Wi,Cin)
    tail = tap(tailwin, 0, 0)
    for dh in range(3):
        for dw in range(3):
            if dh == 0 and dw == 0:
                continue
            tail = tail + tap(tailwin, dh, dw)

    o_ref[:, :th - 2] = jnp.maximum(body + bias, 0.0).astype(o_ref.dtype)
    o_ref[:, th - 2:] = jnp.maximum(tail + bias, 0.0).astype(o_ref.dtype)


def _vmem_bytes(nb, th, wi, wo, cinp, tc):
    """Rough per-step VMEM accounting (default double-buffered pipeline)."""
    in_main = nb * th * wi * cinp * 2
    in_halo = nb * 2 * wi * cinp * 2
    wgt = 9 * cinp * tc * 2
    bias = tc * 4
    out = nb * th * wo * tc * 4
    # Kernel-internal live values: ~2 bf16 LHS tap slices + ~2 f32 accumulators.
    internal = 2 * nb * th * wo * cinp * 2 + 2 * nb * th * wo * tc * 4
    return 2 * (in_main + in_halo + wgt + bias + out) + internal


def _choose_tiles(n, h, wi, wo, cinp, coutp, tc, budget):
    """Pick (NB, TH) = largest tile fitting the VMEM budget, with >=2 grid steps."""
    nb_cands = [d for d in range(min(n, 8), 0, -1) if n % d == 0]
    th_cap = max(4, _round_up(h, 4))
    th_cands = [t for t in (64, 32, 16, 8, 4) if t <= th_cap] or [4]

    best, best_sz = (1, 4), -1
    for nb in nb_cands:
        for th in th_cands:
            if _vmem_bytes(nb, th, wi, wo, cinp, tc) > budget:
                continue
            if nb * th > best_sz:
                best, best_sz = (nb, th), nb * th
    nb, th = best

    def steps(nb_, th_):
        return (n // nb_) * (_round_up(h, th_) // th_) * (coutp // tc)

    # v7x megacore: guarantee >=2 grid steps along the parallel axes.
    if steps(nb, th) < 2:
        for th2 in (th // 2, th // 4):
            if th2 >= 4 and steps(nb, th2) >= 2:
                th = th2
                break
        else:
            for nb2 in nb_cands:
                if nb2 < nb and steps(nb2, th) >= 2:
                    nb = nb2
                    break
    return nb, th


def acblock_forward(x_nchw, w_sq, w_ver, w_hor, scales, biases):
    """x_nchw: (N, Cin, H, W) f32.  w_sq: (3,3,Cin,Cout) HWIO,
    w_ver/w_hor: (3,Cin,Cout), scales/biases: (3,Cout) fused BN affine
    [square, ver, hor]."""
    N, Cin, H, W = x_nchw.shape
    Cout = w_sq.shape[-1]

    # ---- host-side ACNet re-parameterization: 3 branches -> 1 conv ----------
    w_f = w_sq * scales[0][None, None, None, :]
    w_f = w_f.at[:, 1, :, :].add(w_ver * scales[1][None, None, :])   # dw == 1
    w_f = w_f.at[1, :, :, :].add(w_hor * scales[2][None, None, :])   # dh == 1
    b_f = jnp.sum(biases, axis=0)                                     # (Cout,)

    # ---- lane-dense channel padding; Cout tiled (256 fills v6e/v7x MXU) -----
    cinp = _round_up(Cin, 128)
    tc = 128 if Cout <= 128 else 256
    coutp = _round_up(Cout, tc)

    w_mat = jnp.pad(w_f, ((0, 0), (0, 0), (0, cinp - Cin), (0, coutp - Cout)))
    w_mat = w_mat.reshape(9, cinp, coutp).astype(jnp.bfloat16)
    b_vec = jnp.pad(b_f, (0, coutp - Cout)).astype(jnp.float32).reshape(1, coutp)

    # ---- per-generation VMEM budget drives tile sizes and the scoped limit --
    try:
        vmem_cap = int(pltpu.get_tpu_info().vmem_capacity_bytes)
    except Exception:
        vmem_cap = 64 * 1024 * 1024           # conservative (v7x-sized) fallback
    budget = (vmem_cap * 3) // 4              # leave pipeline headroom

    wo = _round_up(W, 8)                      # sublane-dense output width
    wi = _round_up(wo + 2, 8)                 # padded-input width seen by kernel
    NB, TH = _choose_tiles(N, H, wi, wo, cinp, coutp, tc, budget)
    Ho = _round_up(H, TH)                     # padded output rows
    assert N % NB == 0 and Ho % TH == 0 and TH % 2 == 0 and TH >= 4

    # ---- single input prep: NCHW->NHWC, conv halo + alignment pad, bf16 -----
    x = jnp.transpose(x_nchw, (0, 2, 3, 1))
    x_pad = jnp.pad(
        x, ((0, 0), (1, Ho - H + 1), (1, wi - W - 1), (0, cinp - Cin))
    ).astype(jnp.bfloat16)                    # (N, Ho+2, wi, cinp)

    grid = (N // NB, Ho // TH, coutp // tc)

    out = pl.pallas_call(
        _acblock_kernel,
        out_shape=jax.ShapeDtypeStruct((N, Ho, wo, coutp), jnp.float32),
        grid_spec=pltpu.PrefetchScalarGridSpec(
            num_scalar_prefetch=0,
            grid=grid,
            in_specs=[
                # main TH rows of the padded image for this tile
                pl.BlockSpec((NB, TH, wi, cinp),
                             lambda bt, ht, ci: (bt, ht, 0, 0)),
                # 2-row halo just below the tile:
                # padded rows [(ht+1)*TH, (ht+1)*TH + 2)   (TH is even)
                pl.BlockSpec((NB, 2, wi, cinp),
                             lambda bt, ht, ci: (bt, (ht + 1) * (TH // 2), 0, 0)),
                # fused weight / bias for this Cout tile (grid-invariant in bt/ht)
                pl.BlockSpec((9, cinp, tc), lambda bt, ht, ci: (0, 0, ci)),
                pl.BlockSpec((1, tc), lambda bt, ht, ci: (0, ci)),
            ],
            out_specs=pl.BlockSpec((NB, TH, wo, tc),
                                   lambda bt, ht, ci: (bt, ht, 0, ci)),
        ),
        compiler_params=pltpu.CompilerParams(
            dimension_semantics=("parallel", "parallel", "parallel"),
            vmem_limit_bytes=int(budget),
        ),
    )(x_pad, x_pad, w_mat, b_vec)

    out = out[:, :H, :W, :Cout]               # drop row/col/lane padding
    return jnp.transpose(out, (0, 3, 1, 2))   # back to NCHW


def _fuse_bn(gamma, beta, mean, var, eps=1e-5):
    scale = gamma / jnp.sqrt(var + eps)
    bias = beta - mean * scale
    return scale, bias


def _reference(x_nchw, w_sq, w_ver, w_hor, scales, biases):
    """Pure-JAX reference (three lax.conv branches, f32) for validation."""
    x = jnp.transpose(x_nchw, (0, 2, 3, 1))
    dn = ('NHWC', 'HWIO', 'NHWC')
    sq = lax.conv_general_dilated(x, w_sq, (1, 1), [(1, 1), (1, 1)],
                                  dimension_numbers=dn)
    ver = lax.conv_general_dilated(x, w_ver[:, None, :, :], (1, 1),
                                   [(1, 1), (0, 0)], dimension_numbers=dn)
    hor = lax.conv_general_dilated(x, w_hor[None, :, :, :], (1, 1),
                                   [(0, 0), (1, 1)], dimension_numbers=dn)
    y = (sq * scales[0] + biases[0]
         + ver * scales[1] + biases[1]
         + hor * scales[2] + biases[2])
    y = jnp.maximum(y, 0.0)
    return jnp.transpose(y, (0, 3, 1, 2))


if __name__ == "__main__":
    key = jax.random.PRNGKey(0)
    N, Cin, H, W = 2, 4, 16, 16
    Cout = 8

    keys = jax.random.split(key, 16)
    x = jax.random.normal(keys[0], (N, Cin, H, W), jnp.float32)

    # Conv weights (PyTorch layout OIHW), then transpose to kernel layouts.
    w_sq_oihw = 0.1 * jax.random.normal(keys[1], (Cout, Cin, 3, 3), jnp.float32)
    w_ver_oihw = 0.1 * jax.random.normal(keys[2], (Cout, Cin, 3, 1), jnp.float32)
    w_hor_oihw = 0.1 * jax.random.normal(keys[3], (Cout, Cin, 1, 3), jnp.float32)
    w_sq = jnp.transpose(w_sq_oihw, (2, 3, 1, 0))                 # (3,3,Cin,Cout)
    w_ver = jnp.transpose(w_ver_oihw[:, :, :, 0], (2, 1, 0))      # (3,Cin,Cout)
    w_hor = jnp.transpose(w_hor_oihw[:, :, 0, :], (2, 1, 0))      # (3,Cin,Cout)

    # BatchNorm params (eval mode running stats), one set per branch.
    def bn_params(k):
        k1, k2, k3, k4 = jax.random.split(k, 4)
        gamma = 0.5 + jax.random.uniform(k1, (Cout,), jnp.float32)
        beta = 0.1 * jax.random.normal(k2, (Cout,), jnp.float32)
        mean = 0.1 * jax.random.normal(k3, (Cout,), jnp.float32)
        var = 0.5 + jax.random.uniform(k4, (Cout,), jnp.float32)
        return _fuse_bn(gamma, beta, mean, var)

    s_sq, b_sq = bn_params(keys[4])
    s_v, b_v = bn_params(keys[5])
    s_h, b_h = bn_params(keys[6])
    scales = jnp.stack([s_sq, s_v, s_h], axis=0)   # (3, Cout)
    biases = jnp.stack([b_sq, b_v, b_h], axis=0)   # (3, Cout)

    fwd = jax.jit(acblock_forward)
    y = fwd(x, w_sq, w_ver, w_hor, scales, biases)
    y = jax.block_until_ready(y)

    y_ref = _reference(x, w_sq, w_ver, w_hor, scales, biases)
    assert y.shape == (N, Cout, H, W)
    # bf16 MXU operands vs f32 reference: allow small quantization error.
    err = float(jnp.max(jnp.abs(y - y_ref)))
    assert err < 5e-2, err

    print("KERNEL_OK")
</pallas_src>

<mosaic_0001>
module attributes {stable_mosaic.version = 11 : i64} {
  func.func @_acblock_kernel(%arg0: i32, %arg1: i32, %arg2: i32, %arg3: memref<2x8x24x128xbf16, #tpu.memory_space<vmem>>, %arg4: memref<2x2x24x128xbf16, #tpu.memory_space<vmem>>, %arg5: memref<9x128x128xbf16, #tpu.memory_space<vmem>>, %arg6: memref<1x128xf32, #tpu.memory_space<vmem>>, %arg7: memref<2x8x16x128xf32, #tpu.memory_space<vmem>>) attributes {dimension_semantics = [#tpu.dimension_semantics<parallel>, #tpu.dimension_semantics<parallel>, #tpu.dimension_semantics<parallel>], iteration_bounds = array<i64: 1, 2, 1>, scalar_prefetch = 0 : i64, scratch_operands = 0 : i64, tpu.core_type = #tpu.core_type<tc>, window_params = [{transform_indices = @transform_0, window_bounds = array<i64: 2, 8, 24, 128>}, {transform_indices = @transform_1, window_bounds = array<i64: 2, 2, 24, 128>}, {transform_indices = @transform_2, window_bounds = array<i64: 9, 128, 128>}, {transform_indices = @transform_3, window_bounds = array<i64: 1, 128>}, {transform_indices = @transform_4, window_bounds = array<i64: 2, 8, 16, 128>}]} {
    %c0 = arith.constant 0 : index
    %c0_0 = arith.constant 0 : index
    %c0_1 = arith.constant 0 : index
    %c0_2 = arith.constant 0 : index
    %0 = vector.load %arg3[%c0, %c0_0, %c0_1, %c0_2] : memref<2x8x24x128xbf16, #tpu.memory_space<vmem>>, vector<2x8x24x128xbf16>
    %c0_3 = arith.constant 0 : index
    %c0_4 = arith.constant 0 : index
    %c0_5 = arith.constant 0 : index
    %c0_6 = arith.constant 0 : index
    %1 = vector.load %arg4[%c0_3, %c0_4, %c0_5, %c0_6] : memref<2x2x24x128xbf16, #tpu.memory_space<vmem>>, vector<2x2x24x128xbf16>
    %c0_7 = arith.constant 0 : index
    %c0_8 = arith.constant 0 : index
    %c0_9 = arith.constant 0 : index
    %2 = vector.load %arg5[%c0_7, %c0_8, %c0_9] : memref<9x128x128xbf16, #tpu.memory_space<vmem>>, vector<9x128x128xbf16>
    %c0_10 = arith.constant 0 : index
    %c0_11 = arith.constant 0 : index
    %3 = vector.load %arg6[%c0_10, %c0_11] : memref<1x128xf32, #tpu.memory_space<vmem>>, vector<1x128xf32>
    %4 = vector.extract_strided_slice %0 {offsets = [0, 0, 0, 0], sizes = [2, 6, 16, 128], strides = [1, 1, 1, 1]} : vector<2x8x24x128xbf16> to vector<2x6x16x128xbf16>
    %5 = vector.shape_cast %4 : vector<2x6x16x128xbf16> to vector<192x128xbf16>
    %6 = vector.extract_strided_slice %2 {offsets = [0, 0, 0], sizes = [1, 128, 128], strides = [1, 1, 1]} : vector<9x128x128xbf16> to vector<1x128x128xbf16>
    %7 = vector.shape_cast %6 : vector<1x128x128xbf16> to vector<128x128xbf16>
    %cst = arith.constant dense<0.000000e+00> : vector<192x128xf32>
    %8 = tpu.matmul %5, %7, %cst {dimension_numbers = #tpu.dot_dimension_numbers<[1], [0], [0], [1], [0, 0, 1, 1], [], []>} : vector<192x128xbf16>, vector<128x128xbf16>, vector<192x128xf32> -> vector<192x128xf32>
    %9 = vector.shape_cast %8 : vector<192x128xf32> to vector<2x6x16x128xf32>
    %10 = vector.extract_strided_slice %0 {offsets = [0, 0, 1, 0], sizes = [2, 6, 16, 128], strides = [1, 1, 1, 1]} : vector<2x8x24x128xbf16> to vector<2x6x16x128xbf16>
    %11 = vector.shape_cast %10 : vector<2x6x16x128xbf16> to vector<192x128xbf16>
    %12 = vector.extract_strided_slice %2 {offsets = [1, 0, 0], sizes = [1, 128, 128], strides = [1, 1, 1]} : vector<9x128x128xbf16> to vector<1x128x128xbf16>
    %13 = vector.shape_cast %12 : vector<1x128x128xbf16> to vector<128x128xbf16>
    %cst_12 = arith.constant dense<0.000000e+00> : vector<192x128xf32>
    %14 = tpu.matmul %11, %13, %cst_12 {dimension_numbers = #tpu.dot_dimension_numbers<[1], [0], [0], [1], [0, 0, 1, 1], [], []>} : vector<192x128xbf16>, vector<128x128xbf16>, vector<192x128xf32> -> vector<192x128xf32>
    %15 = vector.shape_cast %14 : vector<192x128xf32> to vector<2x6x16x128xf32>
    %16 = arith.addf %9, %15 : vector<2x6x16x128xf32>
    %17 = vector.extract_strided_slice %0 {offsets = [0, 0, 2, 0], sizes = [2, 6, 16, 128], strides = [1, 1, 1, 1]} : vector<2x8x24x128xbf16> to vector<2x6x16x128xbf16>
    %18 = vector.shape_cast %17 : vector<2x6x16x128xbf16> to vector<192x128xbf16>
    %19 = vector.extract_strided_slice %2 {offsets = [2, 0, 0], sizes = [1, 128, 128], strides = [1, 1, 1]} : vector<9x128x128xbf16> to vector<1x128x128xbf16>
    %20 = vector.shape_cast %19 : vector<1x128x128xbf16> to vector<128x128xbf16>
    %cst_13 = arith.constant dense<0.000000e+00> : vector<192x128xf32>
    %21 = tpu.matmul %18, %20, %cst_13 {dimension_numbers = #tpu.dot_dimension_numbers<[1], [0], [0], [1], [0, 0, 1, 1], [], []>} : vector<192x128xbf16>, vector<128x128xbf16>, vector<192x128xf32> -> vector<192x128xf32>
    %22 = vector.shape_cast %21 : vector<192x128xf32> to vector<2x6x16x128xf32>
    %23 = arith.addf %16, %22 : vector<2x6x16x128xf32>
    %24 = vector.extract_strided_slice %0 {offsets = [0, 1, 0, 0], sizes = [2, 6, 16, 128], strides = [1, 1, 1, 1]} : vector<2x8x24x128xbf16> to vector<2x6x16x128xbf16>
    %25 = vector.shape_cast %24 : vector<2x6x16x128xbf16> to vector<192x128xbf16>
    %26 = vector.extract_strided_slice %2 {offsets = [3, 0, 0], sizes = [1, 128, 128], strides = [1, 1, 1]} : vector<9x128x128xbf16> to vector<1x128x128xbf16>
    %27 = vector.shape_cast %26 : vector<1x128x128xbf16> to vector<128x128xbf16>
    %cst_14 = arith.constant dense<0.000000e+00> : vector<192x128xf32>
    %28 = tpu.matmul %25, %27, %cst_14 {dimension_numbers = #tpu.dot_dimension_numbers<[1], [0], [0], [1], [0, 0, 1, 1], [], []>} : vector<192x128xbf16>, vector<128x128xbf16>, vector<192x128xf32> -> vector<192x128xf32>
    %29 = vector.shape_cast %28 : vector<192x128xf32> to vector<2x6x16x128xf32>
    %30 = arith.addf %23, %29 : vector<2x6x16x128xf32>
    %31 = vector.extract_strided_slice %0 {offsets = [0, 1, 1, 0], sizes = [2, 6, 16, 128], strides = [1, 1, 1, 1]} : vector<2x8x24x128xbf16> to vector<2x6x16x128xbf16>
    %32 = vector.shape_cast %31 : vector<2x6x16x128xbf16> to vector<192x128xbf16>
    %33 = vector.extract_strided_slice %2 {offsets = [4, 0, 0], sizes = [1, 128, 128], strides = [1, 1, 1]} : vector<9x128x128xbf16> to vector<1x128x128xbf16>
    %34 = vector.shape_cast %33 : vector<1x128x128xbf16> to vector<128x128xbf16>
    %cst_15 = arith.constant dense<0.000000e+00> : vector<192x128xf32>
    %35 = tpu.matmul %32, %34, %cst_15 {dimension_numbers = #tpu.dot_dimension_numbers<[1], [0], [0], [1], [0, 0, 1, 1], [], []>} : vector<192x128xbf16>, vector<128x128xbf16>, vector<192x128xf32> -> vector<192x128xf32>
    %36 = vector.shape_cast %35 : vector<192x128xf32> to vector<2x6x16x128xf32>
    %37 = arith.addf %30, %36 : vector<2x6x16x128xf32>
    %38 = vector.extract_strided_slice %0 {offsets = [0, 1, 2, 0], sizes = [2, 6, 16, 128], strides = [1, 1, 1, 1]} : vector<2x8x24x128xbf16> to vector<2x6x16x128xbf16>
    %39 = vector.shape_cast %38 : vector<2x6x16x128xbf16> to vector<192x128xbf16>
    %40 = vector.extract_strided_slice %2 {offsets = [5, 0, 0], sizes = [1, 128, 128], strides = [1, 1, 1]} : vector<9x128x128xbf16> to vector<1x128x128xbf16>
    %41 = vector.shape_cast %40 : vector<1x128x128xbf16> to vector<128x128xbf16>
    %cst_16 = arith.constant dense<0.000000e+00> : vector<192x128xf32>
    %42 = tpu.matmul %39, %41, %cst_16 {dimension_numbers = #tpu.dot_dimension_numbers<[1], [0], [0], [1], [0, 0, 1, 1], [], []>} : vector<192x128xbf16>, vector<128x128xbf16>, vector<192x128xf32> -> vector<192x128xf32>
    %43 = vector.shape_cast %42 : vector<192x128xf32> to vector<2x6x16x128xf32>
    %44 = arith.addf %37, %43 : vector<2x6x16x128xf32>
    %45 = vector.extract_strided_slice %0 {offsets = [0, 2, 0, 0], sizes = [2, 6, 16, 128], strides = [1, 1, 1, 1]} : vector<2x8x24x128xbf16> to vector<2x6x16x128xbf16>
    %46 = vector.shape_cast %45 : vector<2x6x16x128xbf16> to vector<192x128xbf16>
    %47 = vector.extract_strided_slice %2 {offsets = [6, 0, 0], sizes = [1, 128, 128], strides = [1, 1, 1]} : vector<9x128x128xbf16> to vector<1x128x128xbf16>
    %48 = vector.shape_cast %47 : vector<1x128x128xbf16> to vector<128x128xbf16>
    %cst_17 = arith.constant dense<0.000000e+00> : vector<192x128xf32>
    %49 = tpu.matmul %46, %48, %cst_17 {dimension_numbers = #tpu.dot_dimension_numbers<[1], [0], [0], [1], [0, 0, 1, 1], [], []>} : vector<192x128xbf16>, vector<128x128xbf16>, vector<192x128xf32> -> vector<192x128xf32>
    %50 = vector.shape_cast %49 : vector<192x128xf32> to vector<2x6x16x128xf32>
    %51 = arith.addf %44, %50 : vector<2x6x16x128xf32>
    %52 = vector.extract_strided_slice %0 {offsets = [0, 2, 1, 0], sizes = [2, 6, 16, 128], strides = [1, 1, 1, 1]} : vector<2x8x24x128xbf16> to vector<2x6x16x128xbf16>
    %53 = vector.shape_cast %52 : vector<2x6x16x128xbf16> to vector<192x128xbf16>
    %54 = vector.extract_strided_slice %2 {offsets = [7, 0, 0], sizes = [1, 128, 128], strides = [1, 1, 1]} : vector<9x128x128xbf16> to vector<1x128x128xbf16>
    %55 = vector.shape_cast %54 : vector<1x128x128xbf16> to vector<128x128xbf16>
    %cst_18 = arith.constant dense<0.000000e+00> : vector<192x128xf32>
    %56 = tpu.matmul %53, %55, %cst_18 {dimension_numbers = #tpu.dot_dimension_numbers<[1], [0], [0], [1], [0, 0, 1, 1], [], []>} : vector<192x128xbf16>, vector<128x128xbf16>, vector<192x128xf32> -> vector<192x128xf32>
    %57 = vector.shape_cast %56 : vector<192x128xf32> to vector<2x6x16x128xf32>
    %58 = arith.addf %51, %57 : vector<2x6x16x128xf32>
    %59 = vector.extract_strided_slice %0 {offsets = [0, 2, 2, 0], sizes = [2, 6, 16, 128], strides = [1, 1, 1, 1]} : vector<2x8x24x128xbf16> to vector<2x6x16x128xbf16>
    %60 = vector.shape_cast %59 : vector<2x6x16x128xbf16> to vector<192x128xbf16>
    %61 = vector.extract_strided_slice %2 {offsets = [8, 0, 0], sizes = [1, 128, 128], strides = [1, 1, 1]} : vector<9x128x128xbf16> to vector<1x128x128xbf16>
    %62 = vector.shape_cast %61 : vector<1x128x128xbf16> to vector<128x128xbf16>
    %cst_19 = arith.constant dense<0.000000e+00> : vector<192x128xf32>
    %63 = tpu.matmul %60, %62, %cst_19 {dimension_numbers = #tpu.dot_dimension_numbers<[1], [0], [0], [1], [0, 0, 1, 1], [], []>} : vector<192x128xbf16>, vector<128x128xbf16>, vector<192x128xf32> -> vector<192x128xf32>
    %64 = vector.shape_cast %63 : vector<192x128xf32> to vector<2x6x16x128xf32>
    %65 = arith.addf %58, %64 : vector<2x6x16x128xf32>
    %66 = vector.extract_strided_slice %0 {offsets = [0, 6, 0, 0], sizes = [2, 2, 24, 128], strides = [1, 1, 1, 1]} : vector<2x8x24x128xbf16> to vector<2x2x24x128xbf16>
    %67 = tpu.concatenate %66, %1 in 1 : vector<2x2x24x128xbf16>, vector<2x2x24x128xbf16> -> vector<2x4x24x128xbf16>
    %68 = vector.extract_strided_slice %67 {offsets = [0, 0, 0, 0], sizes = [2, 2, 16, 128], strides = [1, 1, 1, 1]} : vector<2x4x24x128xbf16> to vector<2x2x16x128xbf16>
    %69 = vector.shape_cast %68 : vector<2x2x16x128xbf16> to vector<64x128xbf16>
    %70 = vector.extract_strided_slice %2 {offsets = [0, 0, 0], sizes = [1, 128, 128], strides = [1, 1, 1]} : vector<9x128x128xbf16> to vector<1x128x128xbf16>
    %71 = vector.shape_cast %70 : vector<1x128x128xbf16> to vector<128x128xbf16>
    %cst_20 = arith.constant dense<0.000000e+00> : vector<64x128xf32>
    %72 = tpu.matmul %69, %71, %cst_20 {dimension_numbers = #tpu.dot_dimension_numbers<[1], [0], [0], [1], [0, 0, 1, 1], [], []>} : vector<64x128xbf16>, vector<128x128xbf16>, vector<64x128xf32> -> vector<64x128xf32>
    %73 = vector.shape_cast %72 : vector<64x128xf32> to vector<2x2x16x128xf32>
    %74 = vector.extract_strided_slice %67 {offsets = [0, 0, 1, 0], sizes = [2, 2, 16, 128], strides = [1, 1, 1, 1]} : vector<2x4x24x128xbf16> to vector<2x2x16x128xbf16>
    %75 = vector.shape_cast %74 : vector<2x2x16x128xbf16> to vector<64x128xbf16>
    %76 = vector.extract_strided_slice %2 {offsets = [1, 0, 0], sizes = [1, 128, 128], strides = [1, 1, 1]} : vector<9x128x128xbf16> to vector<1x128x128xbf16>
    %77 = vector.shape_cast %76 : vector<1x128x128xbf16> to vector<128x128xbf16>
    %cst_21 = arith.constant dense<0.000000e+00> : vector<64x128xf32>
    %78 = tpu.matmul %75, %77, %cst_21 {dimension_numbers = #tpu.dot_dimension_numbers<[1], [0], [0], [1], [0, 0, 1, 1], [], []>} : vector<64x128xbf16>, vector<128x128xbf16>, vector<64x128xf32> -> vector<64x128xf32>
    %79 = vector.shape_cast %78 : vector<64x128xf32> to vector<2x2x16x128xf32>
    %80 = arith.addf %73, %79 : vector<2x2x16x128xf32>
    %81 = vector.extract_strided_slice %67 {offsets = [0, 0, 2, 0], sizes = [2, 2, 16, 128], strides = [1, 1, 1, 1]} : vector<2x4x24x128xbf16> to vector<2x2x16x128xbf16>
    %82 = vector.shape_cast %81 : vector<2x2x16x128xbf16> to vector<64x128xbf16>
    %83 = vector.extract_strided_slice %2 {offsets = [2, 0, 0], sizes = [1, 128, 128], strides = [1, 1, 1]} : vector<9x128x128xbf16> to vector<1x128x128xbf16>
    %84 = vector.shape_cast %83 : vector<1x128x128xbf16> to vector<128x128xbf16>
    %cst_22 = arith.constant dense<0.000000e+00> : vector<64x128xf32>
    %85 = tpu.matmul %82, %84, %cst_22 {dimension_numbers = #tpu.dot_dimension_numbers<[1], [0], [0], [1], [0, 0, 1, 1], [], []>} : vector<64x128xbf16>, vector<128x128xbf16>, vector<64x128xf32> -> vector<64x128xf32>
    %86 = vector.shape_cast %85 : vector<64x128xf32> to vector<2x2x16x128xf32>
    %87 = arith.addf %80, %86 : vector<2x2x16x128xf32>
    %88 = vector.extract_strided_slice %67 {offsets = [0, 1, 0, 0], sizes = [2, 2, 16, 128], strides = [1, 1, 1, 1]} : vector<2x4x24x128xbf16> to vector<2x2x16x128xbf16>
    %89 = vector.shape_cast %88 : vector<2x2x16x128xbf16> to vector<64x128xbf16>
    %90 = vector.extract_strided_slice %2 {offsets = [3, 0, 0], sizes = [1, 128, 128], strides = [1, 1, 1]} : vector<9x128x128xbf16> to vector<1x128x128xbf16>
    %91 = vector.shape_cast %90 : vector<1x128x128xbf16> to vector<128x128xbf16>
    %cst_23 = arith.constant dense<0.000000e+00> : vector<64x128xf32>
    %92 = tpu.matmul %89, %91, %cst_23 {dimension_numbers = #tpu.dot_dimension_numbers<[1], [0], [0], [1], [0, 0, 1, 1], [], []>} : vector<64x128xbf16>, vector<128x128xbf16>, vector<64x128xf32> -> vector<64x128xf32>
    %93 = vector.shape_cast %92 : vector<64x128xf32> to vector<2x2x16x128xf32>
    %94 = arith.addf %87, %93 : vector<2x2x16x128xf32>
    %95 = vector.extract_strided_slice %67 {offsets = [0, 1, 1, 0], sizes = [2, 2, 16, 128], strides = [1, 1, 1, 1]} : vector<2x4x24x128xbf16> to vector<2x2x16x128xbf16>
    %96 = vector.shape_cast %95 : vector<2x2x16x128xbf16> to vector<64x128xbf16>
    %97 = vector.extract_strided_slice %2 {offsets = [4, 0, 0], sizes = [1, 128, 128], strides = [1, 1, 1]} : vector<9x128x128xbf16> to vector<1x128x128xbf16>
    %98 = vector.shape_cast %97 : vector<1x128x128xbf16> to vector<128x128xbf16>
    %cst_24 = arith.constant dense<0.000000e+00> : vector<64x128xf32>
    %99 = tpu.matmul %96, %98, %cst_24 {dimension_numbers = #tpu.dot_dimension_numbers<[1], [0], [0], [1], [0, 0, 1, 1], [], []>} : vector<64x128xbf16>, vector<128x128xbf16>, vector<64x128xf32> -> vector<64x128xf32>
    %100 = vector.shape_cast %99 : vector<64x128xf32> to vector<2x2x16x128xf32>
    %101 = arith.addf %94, %100 : vector<2x2x16x128xf32>
    %102 = vector.extract_strided_slice %67 {offsets = [0, 1, 2, 0], sizes = [2, 2, 16, 128], strides = [1, 1, 1, 1]} : vector<2x4x24x128xbf16> to vector<2x2x16x128xbf16>
    %103 = vector.shape_cast %102 : vector<2x2x16x128xbf16> to vector<64x128xbf16>
    %104 = vector.extract_strided_slice %2 {offsets = [5, 0, 0], sizes = [1, 128, 128], strides = [1, 1, 1]} : vector<9x128x128xbf16> to vector<1x128x128xbf16>
    %105 = vector.shape_cast %104 : vector<1x128x128xbf16> to vector<128x128xbf16>
    %cst_25 = arith.constant dense<0.000000e+00> : vector<64x128xf32>
    %106 = tpu.matmul %103, %105, %cst_25 {dimension_numbers = #tpu.dot_dimension_numbers<[1], [0], [0], [1], [0, 0, 1, 1], [], []>} : vector<64x128xbf16>, vector<128x128xbf16>, vector<64x128xf32> -> vector<64x128xf32>
    %107 = vector.shape_cast %106 : vector<64x128xf32> to vector<2x2x16x128xf32>
    %108 = arith.addf %101, %107 : vector<2x2x16x128xf32>
    %109 = vector.extract_strided_slice %67 {offsets = [0, 2, 0, 0], sizes = [2, 2, 16, 128], strides = [1, 1, 1, 1]} : vector<2x4x24x128xbf16> to vector<2x2x16x128xbf16>
    %110 = vector.shape_cast %109 : vector<2x2x16x128xbf16> to vector<64x128xbf16>
    %111 = vector.extract_strided_slice %2 {offsets = [6, 0, 0], sizes = [1, 128, 128], strides = [1, 1, 1]} : vector<9x128x128xbf16> to vector<1x128x128xbf16>
    %112 = vector.shape_cast %111 : vector<1x128x128xbf16> to vector<128x128xbf16>
    %cst_26 = arith.constant dense<0.000000e+00> : vector<64x128xf32>
    %113 = tpu.matmul %110, %112, %cst_26 {dimension_numbers = #tpu.dot_dimension_numbers<[1], [0], [0], [1], [0, 0, 1, 1], [], []>} : vector<64x128xbf16>, vector<128x128xbf16>, vector<64x128xf32> -> vector<64x128xf32>
    %114 = vector.shape_cast %113 : vector<64x128xf32> to vector<2x2x16x128xf32>
    %115 = arith.addf %108, %114 : vector<2x2x16x128xf32>
    %116 = vector.extract_strided_slice %67 {offsets = [0, 2, 1, 0], sizes = [2, 2, 16, 128], strides = [1, 1, 1, 1]} : vector<2x4x24x128xbf16> to vector<2x2x16x128xbf16>
    %117 = vector.shape_cast %116 : vector<2x2x16x128xbf16> to vector<64x128xbf16>
    %118 = vector.extract_strided_slice %2 {offsets = [7, 0, 0], sizes = [1, 128, 128], strides = [1, 1, 1]} : vector<9x128x128xbf16> to vector<1x128x128xbf16>
    %119 = vector.shape_cast %118 : vector<1x128x128xbf16> to vector<128x128xbf16>
    %cst_27 = arith.constant dense<0.000000e+00> : vector<64x128xf32>
    %120 = tpu.matmul %117, %119, %cst_27 {dimension_numbers = #tpu.dot_dimension_numbers<[1], [0], [0], [1], [0, 0, 1, 1], [], []>} : vector<64x128xbf16>, vector<128x128xbf16>, vector<64x128xf32> -> vector<64x128xf32>
    %121 = vector.shape_cast %120 : vector<64x128xf32> to vector<2x2x16x128xf32>
    %122 = arith.addf %115, %121 : vector<2x2x16x128xf32>
    %123 = vector.extract_strided_slice %67 {offsets = [0, 2, 2, 0], sizes = [2, 2, 16, 128], strides = [1, 1, 1, 1]} : vector<2x4x24x128xbf16> to vector<2x2x16x128xbf16>
    %124 = vector.shape_cast %123 : vector<2x2x16x128xbf16> to vector<64x128xbf16>
    %125 = vector.extract_strided_slice %2 {offsets = [8, 0, 0], sizes = [1, 128, 128], strides = [1, 1, 1]} : vector<9x128x128xbf16> to vector<1x128x128xbf16>
    %126 = vector.shape_cast %125 : vector<1x128x128xbf16> to vector<128x128xbf16>
    %cst_28 = arith.constant dense<0.000000e+00> : vector<64x128xf32>
    %127 = tpu.matmul %124, %126, %cst_28 {dimension_numbers = #tpu.dot_dimension_numbers<[1], [0], [0], [1], [0, 0, 1, 1], [], []>} : vector<64x128xbf16>, vector<128x128xbf16>, vector<64x128xf32> -> vector<64x128xf32>
    %128 = vector.shape_cast %127 : vector<64x128xf32> to vector<2x2x16x128xf32>
    %129 = arith.addf %122, %128 : vector<2x2x16x128xf32>
    %130 = vector.shape_cast %3 : vector<1x128xf32> to vector<1x1x1x128xf32>
    %131 = vector.broadcast %130 : vector<1x1x1x128xf32> to vector<2x6x16x128xf32>
    %132 = arith.addf %65, %131 : vector<2x6x16x128xf32>
    %cst_29 = arith.constant 0.000000e+00 : f32
    %133 = vector.broadcast %cst_29 : f32 to vector<2x6x16x128xf32>
    %134 = arith.maximumf %132, %133 : vector<2x6x16x128xf32>
    %c0_30 = arith.constant 0 : index
    %c0_31 = arith.constant 0 : index
    %c0_32 = arith.constant 0 : index
    %c0_33 = arith.constant 0 : index
    %135 = vector.load %arg7[%c0_30, %c0_31, %c0_32, %c0_33] : memref<2x8x16x128xf32, #tpu.memory_space<vmem>>, vector<2x6x16x128xf32>
    tpu.vector_store %arg7[%c0_30, %c0_31, %c0_32, %c0_33], %134 {strides = array<i32>} : memref<2x8x16x128xf32, #tpu.memory_space<vmem>>, vector<2x6x16x128xf32>,
    %136 = vector.shape_cast %3 : vector<1x128xf32> to vector<1x1x1x128xf32>
    %137 = vector.broadcast %136 : vector<1x1x1x128xf32> to vector<2x2x16x128xf32>
    %138 = arith.addf %129, %137 : vector<2x2x16x128xf32>
    %cst_34 = arith.constant 0.000000e+00 : f32
    %139 = vector.broadcast %cst_34 : f32 to vector<2x2x16x128xf32>
    %140 = arith.maximumf %138, %139 : vector<2x2x16x128xf32>
    %c0_35 = arith.constant 0 : index
    %c6 = arith.constant 6 : index
    %c0_36 = arith.constant 0 : index
    %c0_37 = arith.constant 0 : index
    %141 = vector.load %arg7[%c0_35, %c6, %c0_36, %c0_37] : memref<2x8x16x128xf32, #tpu.memory_space<vmem>>, vector<2x2x16x128xf32>
    tpu.vector_store %arg7[%c0_35, %c6, %c0_36, %c0_37], %140 {strides = array<i32>} : memref<2x8x16x128xf32, #tpu.memory_space<vmem>>, vector<2x2x16x128xf32>,
    return
  }
  func.func @transform_0(%arg0: i32, %arg1: i32, %arg2: i32) -> (i32, i32, i32, i32) {
    %c0_i32 = arith.constant 0 : i32
    %c0_i32_0 = arith.constant 0 : i32
    %c0_i32_1 = arith.constant 0 : i32
    return %arg0, %arg1, %c0_i32, %c0_i32_0 : i32, i32, i32, i32
  }
  func.func @transform_1(%arg0: i32, %arg1: i32, %arg2: i32) -> (i32, i32, i32, i32) {
    %c1_i32 = arith.constant 1 : i32
    %0 = arith.addi %arg1, %c1_i32 : i32
    %c4_i32 = arith.constant 4 : i32
    %1 = arith.muli %0, %c4_i32 : i32
    %c0_i32 = arith.constant 0 : i32
    %c0_i32_0 = arith.constant 0 : i32
    %c0_i32_1 = arith.constant 0 : i32
    return %arg0, %1, %c0_i32, %c0_i32_0 : i32, i32, i32, i32
  }
  func.func @transform_2(%arg0: i32, %arg1: i32, %arg2: i32) -> (i32, i32, i32) {
    %c0_i32 = arith.constant 0 : i32
    %c0_i32_0 = arith.constant 0 : i32
    %c0_i32_1 = arith.constant 0 : i32
    return %c0_i32, %c0_i32_0, %arg2 : i32, i32, i32
  }
  func.func @transform_3(%arg0: i32, %arg1: i32, %arg2: i32) -> (i32, i32) {
    %c0_i32 = arith.constant 0 : i32
    %c0_i32_0 = arith.constant 0 : i32
    return %c0_i32, %arg2 : i32, i32
  }
  func.func @transform_4(%arg0: i32, %arg1: i32, %arg2: i32) -> (i32, i32, i32, i32) {
    %c0_i32 = arith.constant 0 : i32
    %c0_i32_0 = arith.constant 0 : i32
    return %arg0, %arg1, %c0_i32, %arg2 : i32, i32, i32, i32
  }
}

</mosaic_0001>

<bundles_post_ra>
// kernel: acblock_forward.1
= control target key start
LH: loop header
LB: loop body
LE: loop exit
PB: predicated region body
PF: predicated region fallthrough
CT: control target
= control target key end

     0   :  { %s4691_s15 = smov 0   ;;  %s4693_s16 = smov 0   ;;  %s6333_s0 = inlined_call_operand.vmem [shape: bf16[2,18,24,128], index: 0, kind: input, shape index: {}, may-alias: {0,1}]   ;;  %s6334_s1 = inlined_call_operand.vmem [shape: bf16[2,18,24,128], index: 1, kind: input, shape index: {}, may-alias: {0,1}]   ;;  %s6335_s2 = inlined_call_operand.vmem [shape: bf16[9,128,128], index: 2, kind: input, shape index: {}]   ;;  %s6336_s3 = inlined_call_operand.vmem [shape: f32[1,128], index: 3, kind: input, shape index: {}]   ;;  %s6337_s4 = inlined_call_operand.vmem [shape: f32[2,16,16,128], index: 4, kind: output, shape index: {}]  }
   0x1   :  { %s4695_s17 = smov 0   ;;  %s4697_s18 = smov 0  }
   0x2   :  { %s4699_s19 = smov 0   ;;  %s4701_s20 = smov 0  }
   0x3   :  { %s4703_s21 = smov 0  }
   0x4 LB: > { %s3823_s22 = sadd.s32 4294967295, %s4632_s21   ;;  %s29_s23 = sadd.s32 1, %s4628_s20  ;;  %s4632_s21 = sphi %s4703_s21, %s14_s21   ;;  %s4628_s20 = sphi %s4701_s20, %s6397_s20   ;;  %s4624_s19 = sphi %s4699_s19, %s6396_s19   ;;  %s4620_s18 = sphi %s4697_s18, %s6395_s18   ;;  %s4616_s17 = sphi %s4695_s17, %s6394_s17   ;;  %s4612_s16 = sphi %s4693_s16, %s6393_s16   ;;  %s4608_s15 = sphi %s4691_s15, %s6392_s15  }
   0x5   : > { %p31_p0 = scmp.ge.s32.totalorder %s29_s23, 2  ;;  %s42_s24 = sadd.s32 1, %s4620_s18 }
   0x6   : > { %p49_p1 = scmp.ne.s32.totalorder %s4620_s18, %s4616_s17  ;;  %p50_p2 = scmp.eq.s32.totalorder %s4632_s21, 0 }
   0x7   : > { %s6399_s23 = smov (%p31_p0, %s29_s23), 0  ;;  %s4264_s26 = sshll.u32 %s4628_s20, 2 }
   0x8   : > { %p4739_p3 = por %p50_p2, %p49_p1  ;;  %s38_s27 = ssub.s32 %s4628_s20, %s6399_s23 }
   0x9   : > { %s4265_s28 = sadd.s32 4, %s4264_s26  ;;  %p40_p4 = scmp.eq.s32.totalorder %s38_s27, 0 }
   0xa   : > { %s4266_s29 = sshll.u32 %s6399_s23, 2  ;;  %s74_s5 = sadd.s32 1, %s4612_s16 }
   0xb   : > { %s4267_s30 = sadd.s32 4, %s4266_s29  ;;  %p81_p5 = scmp.ne.s32.totalorder %s4612_s16, %s4608_s15 }
   0xc   : > { %s4749_s6 = scalar_select %p40_p4, %s4620_s18, %s42_s24  }
   0xd   : > { %s70_s7 = ssub.s32 %s4265_s28, %s4267_s30  ;;  %p167_p7 = scmp.eq.s32.totalorder %s3823_s22, 1 }
   0xe   : > { %p72_p6 = scmp.eq.s32.totalorder %s70_s7, 0  ;;  %p4755_p8 = por %p81_p5, %p50_p2 }
   0xf   : > { %p4765_p9 = por %p167_p7, %p49_p1  ;;  %p3830_p10 = scmp.ge.s32.totalorder %s4632_s21, 2 }
  0x10   : > { %s4760_s9 = scalar_select %p72_p6, %s4612_s16, %s74_s5  }
  0x11   : > { %202 = sbr.rel (%p3830_p10) target bundleno = 80 (0x50), region = 24 }
  0x16   : > { %205 = sbr.rel (!%p4739_p3) target bundleno = 69 (0x45), region = 28  ;;  %s207_s11 = sand.u32 (%p4739_p3), 1, %s4620_s18  }
  0x17   : > { %s4364_s12 = smul.u32 (%p4739_p3), 192, %s207_s11  ;;  %s4787_s25 = smov (%p4739_p3), 0  }
  0x18   : > { %s4365_s13 = smul.u32 (%p4739_p3), 96, %s4628_s20  ;;  %s4789_s29 = smov (%p4739_p3), 0  }
  0x19   : > { %s4779_s26 = scalar_lea.vmem (%p4739_p3), [#allocation2], %s4364_s12  }
  0x1a   : > { %s4777_s24 = scalar_lea.vmem (%p4739_p3), %s6333_s0, %s4365_s13   ;;  %s6346_s27 = smov (%p4739_p3), %s4779_s26 }
  0x1b   : > { %s6347_s28 = smov %s4777_s24 }
  0x1c LB: >> { %v243_v0 = vld [vmem:[%s4640_s28] sm:$0xf]  ;;  %v245_v1 = vld [vmem:[%s4640_s28 + $0x4] sm:$0xf]  ;;  %v247_v2 = vld [vmem:[%s4640_s28 + $0x8] sm:$0xf]  ;;  %s4648_s29 = sphi %s4789_s29, %s237_s29   ;;  %s4644_s25 = sphi %s4787_s25, %s6350_s25   ;;  %s4640_s28 = sphi %s6347_s28, %s6349_s28   ;;  %s4636_s27 = sphi %s6346_s27, %s6348_s27  }
  0x1d   : >> { %244 = vst [vmem:[%s4636_s27] sm:$0xf] %v243_v0  ;;  %v249_v3 = vld [vmem:[%s4640_s28 + $0xc] sm:$0xf]  ;;  %v251_v4 = vld [vmem:[%s4640_s28 + $0x10] sm:$0xf]  ;;  %s307_s30 = sadd.s32 1, %s4644_s25 }
  0x1e   : >> { %246 = vst [vmem:[%s4636_s27 + $0x4] sm:$0xf] %v245_v1  ;;  %v253_v5 = vld [vmem:[%s4640_s28 + $0x14] sm:$0xf]  ;;  %v255_v6 = vld [vmem:[%s4640_s28 + $0x18] sm:$0xf] }
  0x1f   : >> { %248 = vst [vmem:[%s4636_s27 + $0x8] sm:$0xf] %v247_v2  ;;  %v257_v7 = vld [vmem:[%s4640_s28 + $0x1c] sm:$0xf]  ;;  %v259_v8 = vld [vmem:[%s4640_s28 + $0x20] sm:$0xf] }
  0x20   : >> { %250 = vst [vmem:[%s4636_s27 + $0xc] sm:$0xf] %v249_v3  ;;  %v261_v9 = vld [vmem:[%s4640_s28 + $0x24] sm:$0xf]  ;;  %v263_v10 = vld [vmem:[%s4640_s28 + $0x28] sm:$0xf] }
  0x21   : >> { %252 = vst [vmem:[%s4636_s27 + $0x10] sm:$0xf] %v251_v4  ;;  %v265_v11 = vld [vmem:[%s4640_s28 + $0x2c] sm:$0xf]  ;;  %v267_v12 = vld [vmem:[%s4640_s28 + $0x30] sm:$0xf] }
  0x22   : >> { %254 = vst [vmem:[%s4636_s27 + $0x14] sm:$0xf] %v253_v5  ;;  %v269_v13 = vld [vmem:[%s4640_s28 + $0x34] sm:$0xf]  ;;  %p308_p11 = scmp.ge.s32.totalorder %s307_s30, 1  ;;  %s237_s29 = sadd.s32 1, %s4648_s29  }
  0x23   : >> { %256 = vst [vmem:[%s4636_s27 + $0x18] sm:$0xf] %v255_v6  ;;  %v271_v14 = vld [vmem:[%s4640_s28 + $0x38] sm:$0xf]  ;;  %v273_v15 = vld [vmem:[%s4640_s28 + $0x3c] sm:$0xf] }
  0x24   : >> { %258 = vst [vmem:[%s4636_s27 + $0x1c] sm:$0xf] %v257_v7  ;;  %v275_v16 = vld [vmem:[%s4640_s28 + $0xd8] sm:$0xf]  ;;  %v277_v17 = vld [vmem:[%s4640_s28 + $0xdc] sm:$0xf] }
  0x25   : >> { %260 = vst [vmem:[%s4636_s27 + $0x20] sm:$0xf] %v259_v8  ;;  %s6401_s30 = smov (%p308_p11, %s307_s30), 0  ;;  %v279_v18 = vld [vmem:[%s4640_s28 + $0xe0] sm:$0xf]  ;;  %p236_p12 = scmp.ge.s32.totalorder %s237_s29, 1 }
  0x26   : >> { %262 = vst [vmem:[%s4636_s27 + $0x24] sm:$0xf] %v261_v9  ;;  %v281_v19 = vld [vmem:[%s4640_s28 + $0xe4] sm:$0xf]  ;;  %s3839_s5 = sshll.u32 %s6401_s30, 6  ;;  %s6350_s25 = smov %s6401_s30 }
  0x27   : >> { %264 = vst [vmem:[%s4636_s27 + $0x28] sm:$0xf] %v263_v10  ;;  %v283_v20 = vld [vmem:[%s4640_s28 + $0xe8] sm:$0xf]  ;;  %s4847_s7 = scalar_lea.vmem %s4777_s24, %s3839_s5   ;;  %s313_s11 = scalar_lea.vmem %s4779_s26, %s3839_s5 [#allocation2]   ;;  %v285_v21 = vld [vmem:[%s4640_s28 + $0xec] sm:$0xf] }
  0x28   : >> { %266 = vst [vmem:[%s4636_s27 + $0x2c] sm:$0xf] %v265_v11  ;;  %v287_v22 = vld [vmem:[%s4640_s28 + $0xf0] sm:$0xf]  ;;  %v289_v23 = vld [vmem:[%s4640_s28 + $0xf4] sm:$0xf] }
  0x29   : >> { %268 = vst [vmem:[%s4636_s27 + $0x30] sm:$0xf] %v267_v12  ;;  %v291_v24 = vld [vmem:[%s4640_s28 + $0xf8] sm:$0xf]  ;;  %v293_v25 = vld [vmem:[%s4640_s28 + $0xfc] sm:$0xf] }
  0x2a   : >> { %270 = vst [vmem:[%s4636_s27 + $0x34] sm:$0xf] %v269_v13  ;;  %v295_v26 = vld [vmem:[%s4640_s28 + $0x100] sm:$0xf]  ;;  %v297_v27 = vld [vmem:[%s4640_s28 + $0x104] sm:$0xf] }
  0x2b   : >> { %272 = vst [vmem:[%s4636_s27 + $0x38] sm:$0xf] %v271_v14  ;;  %v299_v28 = vld [vmem:[%s4640_s28 + $0x108] sm:$0xf]  ;;  %v301_v29 = vld [vmem:[%s4640_s28 + $0x10c] sm:$0xf] }
  0x2c   : >> { %274 = vst [vmem:[%s4636_s27 + $0x3c] sm:$0xf] %v273_v15  ;;  %v303_v30 = vld [vmem:[%s4640_s28 + $0x110] sm:$0xf]  ;;  %v305_v31 = vld [vmem:[%s4640_s28 + $0x114] sm:$0xf]  ;;  %s6349_s28 = smov %s4847_s7 }
  0x2d   : >> { %276 = vst [vmem:[%s4636_s27 + $0x60] sm:$0xf] %v275_v16  ;;  %s318_s12 = scalar_lea.vmem (%p236_p12), %s4777_s24, 64   ;;  %s320_s13 = scalar_lea.vmem (%p236_p12), %s4779_s26, 64 [#allocation2]  }
  0x2e   : >> { %278 = vst [vmem:[%s4636_s27 + $0x64] sm:$0xf] %v277_v17  ;;  %s4654_s14 = smov (%p236_p12), %s318_s12   ;;  %s4658_s22 = smov (%p236_p12), 0  }
  0x2f   : >> { %280 = vst [vmem:[%s4636_s27 + $0x68] sm:$0xf] %v279_v18  ;;  %s4662_s5 = smov (%p236_p12), 0  }
  0x30   : >> { %282 = vst [vmem:[%s4636_s27 + $0x6c] sm:$0xf] %v281_v19 }
  0x31   : >> { %284 = vst [vmem:[%s4636_s27 + $0x70] sm:$0xf] %v283_v20 }
  0x32   : >> { %286 = vst [vmem:[%s4636_s27 + $0x74] sm:$0xf] %v285_v21 }
  0x33   : >> { %288 = vst [vmem:[%s4636_s27 + $0x78] sm:$0xf] %v287_v22 }
  0x34   : >> { %290 = vst [vmem:[%s4636_s27 + $0x7c] sm:$0xf] %v289_v23 }
  0x35   : >> { %292 = vst [vmem:[%s4636_s27 + $0x80] sm:$0xf] %v291_v24 }
  0x36   : >> { %294 = vst [vmem:[%s4636_s27 + $0x84] sm:$0xf] %v293_v25 }
  0x37   : >> { %296 = vst [vmem:[%s4636_s27 + $0x88] sm:$0xf] %v295_v26 }
  0x38   : >> { %298 = vst [vmem:[%s4636_s27 + $0x8c] sm:$0xf] %v297_v27  ;;  %239 = sbr.rel (!%p236_p12) target bundleno = 28 (0x1c), region = 241 }
  0x39   : >> { %300 = vst [vmem:[%s4636_s27 + $0x90] sm:$0xf] %v299_v28 }
  0x3a   : >> { %302 = vst [vmem:[%s4636_s27 + $0x94] sm:$0xf] %v301_v29 }
  0x3b   : >> { %304 = vst [vmem:[%s4636_s27 + $0x98] sm:$0xf] %v303_v30 }
  0x3c   : >> { %306 = vst [vmem:[%s4636_s27 + $0x9c] sm:$0xf] %v305_v31  ;;  %s6348_s27 = smov %s313_s11 }
  0x3d LB: >> { %v330_v32 = vld [vmem:[%s4656_s14] sm:$0xf]  ;;  %v332_v33 = vld [vmem:[%s4656_s14 + $0xd8] sm:$0xf]  ;;  %s334_s27 = sadd.s32 1, %s4660_s22  ;;  %s324_s5 = sadd.s32 1, %s4664_s5   ;;  %s4664_s5 = sphi %s4662_s5, %s324_s5   ;;  %s4660_s22 = sphi %s4658_s22, %s4659_s22   ;;  %s4656_s14 = sphi %s4654_s14, %s4603_s14   ;;  %s4652_s13 = sphi %s320_s13, %s4605_s13  }
  0x3e   : >> { %331 = vst [vmem:[%s4652_s13] sm:$0xf] %v330_v32  ;;  %p335_p13 = scmp.ge.s32.totalorder %s334_s27, 8  ;;  %p323_p0 = scmp.ge.s32.totalorder %s324_s5, 8 }
  0x3f   : >> { %333 = vst [vmem:[%s4652_s13 + $0x60] sm:$0xf] %v332_v33 }
  0x40   : >> { %s6403_s27 = smov (%p335_p13, %s334_s27), 0  ;;  %326 = sbr.rel (!%p323_p0) target bundleno = 61 (0x3d), region = 252 }
  0x41   : >> { %s3845_s28 = sshll.u32 %s6403_s27, 2  ;;  %s4659_s22 = smov %s6403_s27  }
  0x42   : >> { %s4602_s25 = scalar_lea.vmem %s4777_s24, %s3845_s28   ;;  %s4604_s29 = scalar_lea.vmem %s4779_s26, %s3845_s28 [#allocation2]  }
  0x43   : >> { %s4603_s14 = scalar_lea.vmem %s4602_s25, 64   ;;  %s4605_s13 = scalar_lea.vmem %s4604_s29, 64 [#allocation2]  }
  0x45 PF: > { %497 = sbr.rel (!%p4755_p8) target bundleno = 80 (0x50), region = 90  ;;  %s499_s30 = sand.u32 (%p4755_p8), 1, %s4612_s16  }
  0x46   : > { %s3847_s7 = smul.u32 (%p4755_p8), 96, %s4628_s20 }
  0x47   : > { %s4366_s11 = smul.u32 (%p4755_p8), 48, %s499_s30 }
  0x48   : > { %s3703_s28 = scalar_lea.vmem (%p4755_p8), %s6334_s1, %s3847_s7 }
  0x49   : > { %v3848_v34 = vld [vmem:[%s3703_s28 + $0x60] sm:$0xff] (%p4755_p8)   ;;  %v3850_v35 = vld [vmem:[%s3703_s28 + $0x68] sm:$0xff] (%p4755_p8)   ;;  %v3852_v36 = vld [vmem:[%s3703_s28 + $0x70] sm:$0xff] (%p4755_p8)   ;;  %s501_s13 = scalar_lea.vmem (%p4755_p8), [#allocation3], %s4366_s11 }
  0x4a   : > { %528 = vst [vmem:[%s501_s13] sm:$0xff] %v3848_v34   ;;  %v3854_v37 = vld [vmem:[%s3703_s28 + $0x138] sm:$0xff]   ;;  %v3856_v38 = vld [vmem:[%s3703_s28 + $0x140] sm:$0xff]   ;;  %v3858_v39 = vld [vmem:[%s3703_s28 + $0x148] sm:$0xff]  }
  0x4b   : > { %532 = vst [vmem:[%s501_s13 + $0x8] sm:$0xff] %v3850_v35  }
  0x4c   : > { %536 = vst [vmem:[%s501_s13 + $0x10] sm:$0xff] %v3852_v36  }
  0x4d   : > { %540 = vst [vmem:[%s501_s13 + $0x18] sm:$0xff] %v3854_v37  }
  0x4e   : > { %544 = vst [vmem:[%s501_s13 + $0x20] sm:$0xff] %v3856_v38  }
  0x4f   : > { %548 = vst [vmem:[%s501_s13 + $0x28] sm:$0xff] %v3858_v39  }
  0x50 PF: > { %p3860_p1 = scmp.ge.s32.totalorder %s4632_s21, 1  ;;  %p597_p2 = scmp.lt.s32.totalorder %s4632_s21, 3 }
  0x52   : > { %p598_p3 = pnand %p3860_p1, %p597_p2 }
  0x54   : > { %601 = sbr.rel (%p598_p3) target bundleno = 840 (0x348), region = 131 }
  0x59   : > { %v4297_v40 = vld [vmem:[%s6335_s2 + $0x38] sm:$0xff]  ;;  %s604_s30 = sand.u32 1, %s4616_s17   ;;  %v4296_v44 = vld [vmem:[%s6335_s2 + $0x30] sm:$0xff]  ;;  %v4295_v48 = vld [vmem:[%s6335_s2 + $0x28] sm:$0xff]  ;;  %vm1552_vm0 = vcmask 1042432   ;;  %vm1553_vm1 = vcmask 1046532  }
  0x5a   : > { %v4910_v41 = vld [vmem:[%s6335_s2 + $0x78] sm:$0xff]  ;;  %991 = vmatpush.bf16.msra.mxu0 %v4297_v40  ;;  %v4304_v45 = vld [vmem:[%s6335_s2 + $0x70] sm:$0xff]  ;;  %s4367_s26 = smul.u32 192, %s604_s30  ;;  %v4303_v49 = vld [vmem:[%s6335_s2 + $0x68] sm:$0xff]  ;;  %vm1060_vm2 = vsmask.f32 3328 }
  0x5b   : > { %v4915_v42 = vld [vmem:[%s6335_s2 + $0xb8] sm:$0xff]  ;;  %1447 = vmatpush.bf16.msra.mxu1 %v4910_v41  ;;  %v4312_v46 = vld [vmem:[%s6335_s2 + $0xb0] sm:$0xff]  ;;  %v4311_v50 = vld [vmem:[%s6335_s2 + $0xa8] sm:$0xff]  ;;  %vm1061_vm3 = vsmask.f32 7440  ;;  %s3861_s22 = sshll.u32 %s604_s30, 8 }
  0x5c   : > { %v4321_v43 = vld [vmem:[%s6335_s2 + $0xf8] sm:$0xff]  ;;  %1735 = vmatpush.bf16.msra.mxu2 %v4915_v42  ;;  %v4320_v47 = vld [vmem:[%s6335_s2 + $0xf0] sm:$0xff]  ;;  %v4319_v51 = vld [vmem:[%s6335_s2 + $0xe8] sm:$0xff]  ;;  %s4961_s25 = scalar_lea.vmem [#allocation2], %s4367_s26  ;;  %s6035_s17 = scalar_lea.vmem [#allocation4], %s3861_s22 }
  0x5d   : > { %1888 = vmatpush.bf16.msra.mxu3 %v4321_v43  ;;  %v4294_v52 = vld [vmem:[%s6335_s2 + $0x20] sm:$0xff]  ;;  %v668_v58 = vld [vmem:[%s4961_s25 + $0x8] sm:$0xf]  ;;  %v4293_v1 = vld [vmem:[%s6335_s2 + $0x18] sm:$0xff]  ;;  %s4363_s30 = sshll.u32 (%p4765_p9), %s4624_s19, 7 }
  0x5e   : > { %992 = vmatpush.bf16.msra.mxu0 %v4296_v44  ;;  %v4302_v53 = vld [vmem:[%s6335_s2 + $0x60] sm:$0xff]  ;;  %v1083_v63 = vshll.u32 %v668_v58, 16  ;;  %v4301_v2 = vld [vmem:[%s6335_s2 + $0x58] sm:$0xff]  ;;  %v4292_v11 = vld [vmem:[%s6335_s2 + $0x10] sm:$0xff]  ;;  %v1560_v15 = vrot.slane %v668_v58, 5  ;;  %s6248_s8 = scalar_lea.vmem (%p4765_p9), %s6337_s4, %s4363_s30 }
  0x5f   : > { %1448 = vmatpush.bf16.msra.mxu1 %v4304_v45  ;;  %v4310_v54 = vld [vmem:[%s6335_s2 + $0xa0] sm:$0xff]  ;;  %v4309_v7 = vld [vmem:[%s6335_s2 + $0x98] sm:$0xff]  ;;  %v4300_v12 = vld [vmem:[%s6335_s2 + $0x50] sm:$0xff] }
  0x60   : > { %1736 = vmatpush.bf16.msra.mxu2 %v4312_v46  ;;  %v4318_v55 = vld [vmem:[%s6335_s2 + $0xe0] sm:$0xff]  ;;  %v4317_v8 = vld [vmem:[%s6335_s2 + $0xd8] sm:$0xff]  ;;  %v4308_v16 = vld [vmem:[%s6335_s2 + $0x90] sm:$0xff]  ;;  %v1085_v19 = vrot.slane %v1083_v63, 5 }
  0x61   : > { %1889 = vmatpush.bf16.msra.mxu3 %v4320_v47  ;;  %v666_v56 = vld [vmem:[%s4961_s25] sm:$0xf]  ;;  %v667_v57 = vld [vmem:[%s4961_s25 + $0x4] sm:$0xf]  ;;  %vm4989_vm4 = vmor %vm1552_vm0, %vm1553_vm1 }
  0x62   : > { %993 = vmatpush.bf16.msra.mxu0 %v4295_v48  ;;  %v1064_v59 = vshrl.u32 %v666_v56, 16  ;;  %v1067_v60 = vshll.u32 %v666_v56, 16  ;;  %v1073_v61 = vshll.u32 %v667_v57, 16  ;;  %v1077_v62 = vshrl.u32 %v667_v57, 16  ;;  %v4994_v21 = vld [vmem:[%s4961_s25 + $0xc] sm:$0xf]  ;;  %vm5001_vm5 = vmor %vm1060_vm2, %vm1061_vm3 }
  0x63   : > { %1449 = vmatpush.bf16.msra.mxu1 %v4303_v49  ;;  %v1557_v0 = vrot.slane %v667_v57, 5  ;;  %v3974_v13 = vrot.slane %v666_v56, 9  ;;  %v4316_v22 = vld [vmem:[%s6335_s2 + $0xd0] sm:$0xff]  ;;  %v1088_v27 = vshrl.u32 %v4994_v21, 16  ;;  %v1091_v28 = vshll.u32 %v4994_v21, 16  ;;  %v4291_v29 = vld [vmem:[%s6335_s2 + $0x8] sm:$0xff] }
  0x64   : > { %1737 = vmatpush.bf16.msra.mxu2 %v4311_v50  ;;  %v1066_v3 = vrot.slane %v1064_v59, 4  ;;  %v1069_v4 = vrot.slane %v1067_v60, 5  ;;  %v1075_v5 = vrot.slane %v1073_v61, 5  ;;  %v1079_v6 = vrot.slane %v1077_v62, 4  ;;  %v5006_v24 = vld [vmem:[%s4961_s25 + $0x10] sm:$0xf] }
  0x65   : > { %1890 = vmatpush.bf16.msra.mxu3 %v4319_v51  ;;  %v1559_v14 = vrot.slane %v1557_v0, 4  ;;  %v1558_v25 = vsel %vm4989_vm4, %v3974_v13, %v1557_v0  ;;  %v4299_v30 = vld [vmem:[%s6335_s2 + $0x48] sm:$0xff]  ;;  %v1097_v33 = vshll.u32 %v5006_v24, 16  ;;  %v1101_v34 = vshrl.u32 %v5006_v24, 16  ;;  %v4290_v43 = vld [vmem:[%s6335_s2] sm:$0xff]  ;;  %v4337_v61 = vld [vmem:[%s6335_s2 + $0x178] sm:$0xff] }
  0x66   : > { %994 = vmatpush.bf16.msra.mxu0 %v4294_v52  ;;  %v1070_v9 = vor.u32 %v1069_v4, %v1066_v3  ;;  %v1080_v10 = vor.u32 %v1079_v6, %v1075_v5  ;;  %v4307_v35 = vld [vmem:[%s6335_s2 + $0x88] sm:$0xff]  ;;  %v1639_v39 = vunpack.c.l.b16 %v1558_v25  ;;  %v4298_v44 = vld [vmem:[%s6335_s2 + $0x40] sm:$0xff]  ;;  %v1090_v45 = vrot.slane %v1088_v27, 4  ;;  %v671_v51 = vld [vmem:[%s4961_s25 + $0x14] sm:$0xf] }
  0x67   : > { %1450 = vmatpush.bf16.msra.mxu1 %v4302_v53  ;;  %v1561_v26 = vsel %vm4989_vm4, %v1559_v14, %v1560_v15  ;;  %v4315_v36 = vld [vmem:[%s6335_s2 + $0xc8] sm:$0xff]  ;;  %v1093_v46 = vrot.slane %v1091_v28, 5  ;;  %v1099_v47 = vrot.slane %v1097_v33, 5  ;;  %v1103_v48 = vrot.slane %v1101_v34, 4  ;;  %v4306_v49 = vld [vmem:[%s6335_s2 + $0x80] sm:$0xff]  ;;  %v4345_v52 = vld [vmem:[%s6335_s2 + $0x1b8] sm:$0xff] }
  0x68   : > { %1738 = vmatpush.bf16.msra.mxu2 %v4310_v54  ;;  %v1071_v17 = vrot.slane %v1070_v9, 4  ;;  %v1081_v18 = vrot.slane %v1080_v10, 4  ;;  %v1640_v40 = vunpack.c.l.b16 %v1561_v26  ;;  %v4314_v50 = vld [vmem:[%s6335_s2 + $0xc0] sm:$0xff]  ;;  %v4353_v53 = vld [vmem:[%s6335_s2 + $0x1f8] sm:$0xff]  ;;  %v4271_v57 = vld [vmem:[%s4961_s25 + $0xc] sm:$0xff]  ;;  %v1107_v60 = vshll.u32 %v671_v51, 16 }
  0x69   : > { %1891 = vmatpush.bf16.msra.mxu3 %v4318_v55  ;;  %v4270_v54 = vld [vmem:[%s4961_s25] sm:$0xff]  ;;  %v1094_v58 = vor.u32 %v1093_v46, %v1090_v45  ;;  %v1104_v59 = vor.u32 %v1103_v48, %v1099_v47  ;;  %v4329_v62 = vld [vmem:[%s6335_s2 + $0x138] sm:$0xff]  ;;  %v1564_v63 = vrot.slane %v5006_v24, 5  ;;  %v4344_v0 = vld [vmem:[%s6335_s2 + $0x1b0] sm:$0xff]  ;;  %v1567_v9 = vrot.slane %v671_v51, 5 }
  0x6a   : > { %995 = vmatpush.bf16.msra.mxu0 %v4293_v1  ;;  %v1076_v31 = vsel %vm5001_vm5, %v1071_v17, %v1075_v5  ;;  %v1086_v32 = vsel %vm5001_vm5, %v1081_v18, %v1085_v19  ;;  %v1663_v56 = vpack.c.b16 %v1640_v40, %v1639_v39  ;;  %v4352_v1 = vld [vmem:[%s6335_s2 + $0x1f0] sm:$0xff]  ;;  %v1109_v5 = vrot.slane %v1107_v60, 5  ;;  %v673_v6 = vld [vmem:[%s4961_s25 + $0x1c] sm:$0xf]  ;;  %v4343_v46 = vld [vmem:[%s6335_s2 + $0x1a8] sm:$0xff] }
  0x6b   : > { %1451 = vmatpush.bf16.msra.mxu1 %v4301_v2  ;;  %v1351_v37 = vunpack.c.l.b16 %v1076_v31  ;;  %v1352_v38 = vunpack.c.l.b16 %v1086_v32  ;;  %v672_v2 = vld [vmem:[%s4961_s25 + $0x18] sm:$0xf]  ;;  %v1095_v3 = vrot.slane %v1094_v58, 4  ;;  %v1105_v4 = vrot.slane %v1104_v59, 4  ;;  %v4336_v10 = vld [vmem:[%s6335_s2 + $0x170] sm:$0xff]  ;;  %v5103_v48 = vld [vmem:[%s6335_s2 + $0x168] sm:$0xff] }
  0x6c   : > { %1739 = vmatpush.bf16.msra.mxu2 %v4309_v7  ;;  %v3975_v7 = vrot.slane %v4994_v21, 9  ;;  %v1115_v13 = vshll.u32 %v672_v2, 16  ;;  %v1121_v14 = vshll.u32 %v673_v6, 16  ;;  %v1125_v15 = vshrl.u32 %v673_v6, 16  ;;  %v5110_v51 = vld [vmem:[%s6335_s2 + $0x128] sm:$0xff] }
  0x6d   : > { %1892 = vmatpush.bf16.msra.mxu3 %v4317_v8  ;;  %v1375_v55 = vpack.c.b16 %v1352_v38, %v1351_v37  ;;  %v1566_v8 = vrot.slane %v1564_v63, 4  ;;  %v1110_v17 = vsel %vm5001_vm5, %v1105_v4, %v1109_v5  ;;  %v5089_v37 = vld [vmem:[%s4961_s25 + $0x18] sm:$0xff]  ;;  %v3976_v38 = vrot.slane %v672_v2, 9  ;;  %v677_v4 = vld [vmem:[%s4961_s25 + $0x2c] sm:$0xf] }
  0x6e   : > { %996 = vmatpush.bf16.msra.mxu0 %v4292_v11  ;;  %v4328_v11 = vld [vmem:[%s6335_s2 + $0x130] sm:$0xff]  ;;  %v1565_v18 = vsel %vm4989_vm4, %v3975_v7, %v1564_v63  ;;  %v1354_v25 = vunpack.c.l.b16 %v1110_v17  ;;  %v1123_v26 = vrot.slane %v1121_v14, 5  ;;  %v1127_v27 = vrot.slane %v1125_v15, 4  ;;  %v5128_v7 = vld [vmem:[%s4961_s25 + $0x24] sm:$0xff] }
  0x6f   : > { %1452 = vmatpush.bf16.msra.mxu1 %v4300_v12  ;;  %v1112_v12 = vshrl.u32 %v672_v2, 16  ;;  %v1568_v19 = vsel %vm4989_vm4, %v1566_v8, %v1567_v9  ;;  %v1641_v28 = vunpack.c.l.b16 %v1565_v18  ;;  %v4342_v17 = vld [vmem:[%s6335_s2 + $0x1a0] sm:$0xff] }
  0x70   : > { %1740 = vmatpush.bf16.msra.mxu2 %v4308_v16  ;;  %v1100_v16 = vsel %vm5001_vm5, %v1095_v3, %v1099_v47  ;;  %v1128_v33 = vor.u32 %v1127_v27, %v1123_v26  ;;  %v4351_v47 = vld [vmem:[%s6335_s2 + $0x1e8] sm:$0xff]  ;;  %v4350_v18 = vld [vmem:[%s6335_s2 + $0x1e0] sm:$0xff] }
  0x71   : > { %1893 = vmatpush.bf16.msra.mxu3 %v4316_v22  ;;  %v1114_v21 = vrot.slane %v1112_v12, 4  ;;  %v1117_v22 = vrot.slane %v1115_v13, 5  ;;  %v1353_v24 = vunpack.c.l.b16 %v1100_v16  ;;  %v678_v12 = vld [vmem:[%s4961_s25 + $0x30] sm:$0xf]  ;;  %v679_v13 = vld [vmem:[%s4961_s25 + $0x34] sm:$0xf] }
  0x72   : > { %997 = vmatpush.bf16.msra.mxu0 %v4291_v29  ;;  %v1642_v29 = vunpack.c.l.b16 %v1568_v19  ;;  %v5145_v19 = vld [vmem:[%s6335_s2 + $0x160] sm:$0xff]  ;;  %v1169_v27 = vshll.u32 %v679_v13, 16 }
  0x73   : > { %1453 = vmatpush.bf16.msra.mxu1 %v4299_v30  ;;  %v674_v30 = vld [vmem:[%s4961_s25 + $0x20] sm:$0xf]  ;;  %v1118_v31 = vor.u32 %v1117_v22, %v1114_v21  ;;  %v5084_v32 = vpack.c.b16 %v1354_v25, %v1353_v24  ;;  %v1581_v24 = vrot.slane %v677_v4, 5  ;;  %v1160_v25 = vshrl.u32 %v678_v12, 16 }
  0x74   : > { %1741 = vmatpush.bf16.msra.mxu2 %v4307_v35  ;;  %v1131_v34 = vshll.u32 %v674_v30, 16  ;;  %v1571_v35 = vrot.slane %v673_v6, 5  ;;  %v1574_v39 = vrot.slane %v674_v30, 5 }
  0x75   : > { %1894 = vmatpush.bf16.msra.mxu3 %v4315_v36  ;;  %v5086_v36 = vpack.c.b16 %v1642_v29, %v1641_v28  ;;  %v1119_v40 = vrot.slane %v1118_v31, 4  ;;  %v1173_v28 = vshrl.u32 %v679_v13, 16 }
  0x76   : > { %998 = vmatpush.bf16.msra.mxu0 %v4290_v43  ;;  %v1129_v43 = vrot.slane %v1128_v33, 4  ;;  %v1573_v45 = vrot.slane %v1571_v35, 4 }
  0x77   : > { %1454 = vmatpush.bf16.msra.mxu1 %v4298_v44  ;;  %v1133_v44 = vrot.slane %v1131_v34, 5  ;;  %v1162_v34 = vrot.slane %v1160_v25, 4 }
  0x78   : > { %1742 = vmatpush.bf16.msra.mxu2 %v4306_v49  ;;  %v675_v49 = vld [vmem:[%s4961_s25 + $0x24] sm:$0xf] }
  0x79   : > { %1895 = vmatpush.bf16.msra.mxu3 %v4314_v50  ;;  %999 = vmatmul.bf16.vlgmr.msra.gmra.mxu0 %v4270_v54  ;;  %v676_v50 = vld [vmem:[%s4961_s25 + $0x28] sm:$0xf]  ;;  %v1134_v54 = vsel %vm5001_vm5, %v1129_v43, %v1133_v44  ;;  %v3977_v21 = vrot.slane %v675_v49, 9 }
  0x7a   : > { %1455 = vmatmul.bf16.vlgmr.msra.gmra.mxu1 %v1375_v55  ;;  %2085 = vmatpush.bf16.msrb.mxu0 %v4329_v62  ;;  %v1575_v55 = vsel %vm4989_vm4, %v1573_v45, %v1574_v39  ;;  %v1145_v58 = vshll.u32 %v676_v50, 16  ;;  %v1149_v59 = vshrl.u32 %v676_v50, 16  ;;  %v1175_v39 = vrot.slane %v1173_v28, 4 }
  0x7b   : > { %1743 = vmatmul.bf16.vlgmr.msra.gmra.mxu2 %v1663_v56  ;;  %2250 = vmatpush.bf16.msrb.mxu1 %v4337_v61  ;;  %v1136_v56 = vshrl.u32 %v675_v49, 16  ;;  %v1356_v61 = vunpack.c.l.b16 %v1134_v54  ;;  %v1644_v63 = vunpack.c.l.b16 %v1575_v55  ;;  %v5162_v55 = vld [vmem:[%s4961_s25 + $0x30] sm:$0xff] }
  0x7c   : > { %2403 = vmatpush.bf16.msrb.mxu2 %v4345_v52  ;;  %1896 = vmatmul.bf16.vlgmr.msra.gmra.mxu3 %v4271_v57  ;;  %v1572_v52 = vsel %vm4989_vm4, %v3976_v38, %v1571_v35  ;;  %v1147_v2 = vrot.slane %v1145_v58, 5  ;;  %v1151_v3 = vrot.slane %v1149_v59, 4  ;;  %v1171_v38 = vrot.slane %v1169_v27, 5 }
  0x7d   : > { %2600 = vmatpush.bf16.msrb.mxu3 %v4353_v53  ;;  %v1124_v53 = vsel %vm5001_vm5, %v1119_v40, %v1123_v26  ;;  %v1643_v62 = vunpack.c.l.b16 %v1572_v52  ;;  %v1163_v26 = vshll.u32 %v678_v12, 16  ;;  %v3978_v59 = vrot.slane %v678_v12, 9 }
  0x7e   : > { %2086 = vmatpush.bf16.msrb.mxu0 %v4328_v11  ;;  %v1355_v60 = vunpack.c.l.b16 %v1124_v53  ;;  %v1152_v9 = vor.u32 %v1151_v3, %v1147_v2  ;;  %v1578_v11 = vrot.slane %v676_v50, 5  ;;  %v1585_v53 = vrot.slane %v679_v13, 5 }
  0x7f   : > { %2251 = vmatpush.bf16.msrb.mxu1 %v4336_v10  ;;  %v5125_v6 = vpack.c.b16 %v1644_v63, %v1643_v62  ;;  %v1155_v10 = vshll.u32 %v677_v4, 16  ;;  %v1165_v35 = vrot.slane %v1163_v26, 5  ;;  %v5171_v62 = vld [vmem:[%s6335_s2 + $0x120] sm:$0xff]  ;;  %v681_v63 = vld [vmem:[%s4961_s25 + $0x3c] sm:$0xf] }
  0x80   : > { %2404 = vmatpush.bf16.msrb.mxu2 %v4344_v0  ;;  %v1138_v0 = vrot.slane %v1136_v56, 4  ;;  %v5123_v5 = vpack.c.b16 %v1356_v61, %v1355_v60  ;;  %v1153_v15 = vrot.slane %v1152_v9, 4  ;;  %v1580_v22 = vrot.slane %v1578_v11, 4  ;;  %v5190_v26 = vld [vmem:[%s4961_s25 + $0x3c] sm:$0xff] }
  0x81   : > { %2601 = vmatpush.bf16.msrb.mxu3 %v4352_v1  ;;  %v1157_v16 = vrot.slane %v1155_v10, 5  ;;  %v1579_v31 = vsel %vm4989_vm4, %v3977_v21, %v1578_v11  ;;  %v1587_v60 = vrot.slane %v1585_v53, 4  ;;  %v1586_v3 = vsel %vm4989_vm4, %v3978_v59, %v1585_v53 }
  0x82   : > { %2087 = vmatpush.bf16.msrb.mxu0 %v5110_v51  ;;  %v1582_v33 = vsel %vm4989_vm4, %v1580_v22, %v1581_v24  ;;  %v1645_v44 = vunpack.c.l.b16 %v1579_v31  ;;  %v1187_v9 = vshll.u32 %v681_v63, 16  ;;  %v683_v22 = vld [vmem:[%s4961_s25 + $0x44] sm:$0xf]  ;;  %v5195_v31 = vld [vmem:[%s4961_s25 + $0x60] sm:$0xf] }
  0x83   : > { %2252 = vmatpush.bf16.msrb.mxu1 %v5103_v48  ;;  %v1158_v30 = vsel %vm5001_vm5, %v1153_v15, %v1157_v16  ;;  %v1646_v45 = vunpack.c.l.b16 %v1582_v33  ;;  %v691_v33 = vld [vmem:[%s4961_s25 + $0x64] sm:$0xf] }
  0x84   : > { %2405 = vmatpush.bf16.msrb.mxu2 %v4343_v46  ;;  %v1358_v43 = vunpack.c.l.b16 %v1158_v30  ;;  %v680_v46 = vld [vmem:[%s4961_s25 + $0x38] sm:$0xf]  ;;  %v1217_v53 = vshll.u32 %v691_v33, 16 }
  0x85   : > { %2602 = vmatpush.bf16.msrb.mxu3 %v4351_v47  ;;  %v1166_v47 = vor.u32 %v1165_v35, %v1162_v34  ;;  %v1179_v52 = vshll.u32 %v680_v46, 16  ;;  %v5159_v54 = vpack.c.b16 %v1646_v45, %v1645_v44  ;;  %v1588_v61 = vrot.slane %v680_v46, 5 }
  0x86   : > { %2088 = vmatpush.bf16.msrb.mxu0 %v5171_v62  ;;  %v3979_v44 = vrot.slane %v681_v63, 9  ;;  %v1595_v46 = vrot.slane %v683_v22, 5 }
  0x87   : > { %2253 = vmatpush.bf16.msrb.mxu1 %v5145_v19  ;;  %v1167_v56 = vrot.slane %v1166_v47, 4  ;;  %v1181_v58 = vrot.slane %v1179_v52, 5  ;;  %v1589_v4 = vsel %vm4989_vm4, %v1587_v60, %v1588_v61  ;;  %v5214_v47 = vld [vmem:[%s6335_s2 + $0x118] sm:$0xff]  ;;  %v1211_v52 = vshll.u32 %v5195_v31, 16 }
  0x88   : > { %2406 = vmatpush.bf16.msrb.mxu2 %v4342_v17  ;;  %v1648_v15 = vunpack.c.l.b16 %v1589_v4  ;;  %v1189_v17 = vrot.slane %v1187_v9, 5  ;;  %v692_v9 = vld [vmem:[%s4961_s25 + $0x68] sm:$0xf] }
  0x89   : > { %1004 = vmatmul.bf16.gmra.mxu0 %v4271_v57  ;;  %v1139_v57 = vshll.u32 %v675_v49, 16  ;;  %2603 = vmatpush.bf16.msrb.mxu3 %v4350_v18  ;;  %v1176_v49 = vor.u32 %v1175_v39, %v1171_v38  ;;  %v4341_v39 = vld [vmem:[%s6335_s2 + $0x198] sm:$0xff] }
  0x8a   : > { %1460 = vmatmul.bf16.gmra.mxu1 %v5084_v32  ;;  %2089 = vmatpush.bf16.msrb.mxu0 %v5214_v47 }
  0x8b   : > { %1748 = vmatmul.bf16.gmra.mxu2 %v5086_v36  ;;  %v1141_v1 = vrot.slane %v1139_v57, 5  ;;  %v1177_v57 = vrot.slane %v1176_v49, 4  ;;  %v1208_v49 = vshrl.u32 %v5195_v31, 16 }
  0x8c   : > { %1901 = vmatmul.bf16.gmra.mxu3 %v5089_v37  ;;  %2407 = vmatpush.bf16.msrb.mxu2 %v4341_v39 }
  0x8d   : > { %v1142_v8 = vor.u32 %v1141_v1, %v1138_v0  ;;  %v682_v0 = vld [vmem:[%s4961_s25 + $0x40] sm:$0xf]  ;;  %v1172_v1 = vsel %vm5001_vm5, %v1167_v56, %v1171_v38  ;;  %v1221_v56 = vshrl.u32 %v691_v33, 16  ;;  %v1210_v61 = vrot.slane %v1208_v49, 4 }
  0x8e   : > { %v1193_v10 = vshll.u32 %v682_v0, 16  ;;  %v1197_v11 = vshrl.u32 %v682_v0, 16  ;;  %v1359_v12 = vunpack.c.l.b16 %v1172_v1  ;;  %v1592_v30 = vrot.slane %v682_v0, 5 }
  0x8f   : > { %v1143_v14 = vrot.slane %v1142_v8, 4  ;;  %v1184_v8 = vshrl.u32 %v681_v63, 16  ;;  %v1213_v63 = vrot.slane %v1211_v52, 5  ;;  %v1219_v0 = vrot.slane %v1217_v53, 5 }
  0x90   : > { %v1195_v18 = vrot.slane %v1193_v10, 5  ;;  %v1199_v21 = vrot.slane %v1197_v11, 4  ;;  %v1594_v45 = vrot.slane %v1592_v30, 4  ;;  %v1593_v59 = vsel %vm4989_vm4, %v3979_v44, %v1592_v30  ;;  %v4348_v30 = vld [vmem:[%s6335_s2 + $0x1d0] sm:$0xff] }
  0x91   : > { %v1148_v29 = vsel %vm5001_vm5, %v1143_v14, %v1147_v2  ;;  %v1182_v2 = vsel %vm5001_vm5, %v1177_v57, %v1181_v58  ;;  %v1647_v14 = vunpack.c.l.b16 %v1586_v3  ;;  %v1186_v16 = vrot.slane %v1184_v8, 4 }
  0x92   : > { %v1357_v40 = vunpack.c.l.b16 %v1148_v29  ;;  %v1360_v13 = vunpack.c.l.b16 %v1182_v2  ;;  %v1200_v28 = vor.u32 %v1199_v21, %v1195_v18  ;;  %v1203_v29 = vshll.u32 %v683_v22, 16 }
  0x93   : > { %v5187_v25 = vpack.c.b16 %v1648_v15, %v1647_v14  ;;  %v1190_v27 = vor.u32 %v1189_v17, %v1186_v16  ;;  %v1596_v60 = vsel %vm4989_vm4, %v1594_v45, %v1595_v46  ;;  %v1223_v1 = vrot.slane %v1221_v56, 4  ;;  %v5234_v16 = vld [vmem:[%s4961_s25 + $0x48] sm:$0xff] }
  0x94   : > { %v5157_v50 = vpack.c.b16 %v1358_v43, %v1357_v40  ;;  %v5185_v24 = vpack.c.b16 %v1360_v13, %v1359_v12  ;;  %v1201_v35 = vrot.slane %v1200_v28, 4  ;;  %v1205_v38 = vrot.slane %v1203_v29, 5  ;;  %v4349_v40 = vld [vmem:[%s6335_s2 + $0x1d8] sm:$0xff]  ;;  %v4340_v29 = vld [vmem:[%s6335_s2 + $0x190] sm:$0xff] }
  0x95   : > { %6355 = vst [vmem:[#allocation5_spill] sm:$0xff] %v5187_v25  ;;  %v1191_v34 = vrot.slane %v1190_v27, 4  ;;  %v5209_v43 = vld [vmem:[%s6335_s2 + $0x158] sm:$0xff]  ;;  %2604 = vmatpush.bf16.msrb.mxu3 %v4349_v40  ;;  %v1649_v4 = vunpack.c.l.b16 %v1593_v59  ;;  %v1650_v8 = vunpack.c.l.b16 %v1596_v60  ;;  %v1214_v10 = vor.u32 %v1213_v63, %v1210_v61  ;;  %2408 = vmatpush.bf16.msrb.mxu2 %v4340_v29  ;;  %v695_v63 = vld [vmem:[%s4961_s25 + $0x74] sm:$0xf] }
  0x96   : > { %2254 = vmatpush.bf16.msrb.mxu1 %v5209_v43  ;;  %v1206_v58 = vsel %vm5001_vm5, %v1201_v35, %v1205_v38  ;;  %v1224_v11 = vor.u32 %v1223_v1, %v1219_v0  ;;  %v1227_v13 = vshll.u32 %v692_v9, 16  ;;  %v1599_v14 = vrot.slane %v691_v33, 5  ;;  %v5250_v33 = vld [vmem:[%s6335_s2 + $0x150] sm:$0xff] }
  0x97   : > { %v1196_v57 = vsel %vm5001_vm5, %v1191_v34, %v1195_v18  ;;  %v1362_v3 = vunpack.c.l.b16 %v1206_v58  ;;  %v5231_v15 = vpack.c.b16 %v1650_v8, %v1649_v4  ;;  %v1215_v17 = vrot.slane %v1214_v10, 4  ;;  %v694_v34 = vld [vmem:[%s4961_s25 + $0x70] sm:$0xf] }
  0x98   : > { %v1361_v2 = vunpack.c.l.b16 %v1196_v57  ;;  %v1225_v18 = vrot.slane %v1224_v11, 4  ;;  %v1229_v21 = vrot.slane %v1227_v13, 5  ;;  %v3980_v22 = vrot.slane %v5195_v31, 9  ;;  %v693_v31 = vld [vmem:[%s4961_s25 + $0x6c] sm:$0xf] }
  0x99   : > { %1009 = vmatmul.bf16.gmra.mxu0 %v5089_v37  ;;  %v1601_v27 = vrot.slane %v1599_v14, 4  ;;  %v1602_v28 = vrot.slane %v692_v9, 5  ;;  %2605 = vmatpush.bf16.msrb.mxu3 %v4348_v30  ;;  %v1220_v35 = vsel %vm5001_vm5, %v1215_v17, %v1219_v0  ;;  %v1232_v44 = vshrl.u32 %v693_v31, 16  ;;  %v4278_v0 = vld [vmem:[%s4961_s25 + $0x60] sm:$0xff]  ;;  %v696_v11 = vld [vmem:[%s4961_s25 + $0x78] sm:$0xf] }
  0x9a   : > { %1465 = vmatmul.bf16.gmra.mxu1 %v5123_v5  ;;  %v5229_v12 = vpack.c.b16 %v1362_v3, %v1361_v2  ;;  %v1230_v38 = vsel %vm5001_vm5, %v1225_v18, %v1229_v21  ;;  %v1600_v39 = vsel %vm4989_vm4, %v3980_v22, %v1599_v14  ;;  %v1235_v45 = vshll.u32 %v693_v31, 16  ;;  %v4279_v3 = vld [vmem:[%s4961_s25 + $0x6c] sm:$0xff]  ;;  %v697_v13 = vld [vmem:[%s4961_s25 + $0x7c] sm:$0xf] }
  0x9b   : > { %1753 = vmatmul.bf16.gmra.mxu2 %v5125_v6  ;;  %v1603_v40 = vsel %vm4989_vm4, %v1601_v27, %v1602_v28  ;;  %2255 = vmatpush.bf16.msrb.mxu1 %v5250_v33  ;;  %v1241_v46 = vshll.u32 %v694_v34, 16  ;;  %v1245_v49 = vshrl.u32 %v694_v34, 16  ;;  %v1363_v52 = vunpack.c.l.b16 %v1220_v35  ;;  %v5271_v21 = vld [vmem:[%s6335_s2 + $0x110] sm:$0xff] }
  0x9c   : > { %1906 = vmatmul.bf16.gmra.mxu3 %v5128_v7  ;;  %v1364_v53 = vunpack.c.l.b16 %v1230_v38  ;;  %v1651_v56 = vunpack.c.l.b16 %v1600_v39  ;;  %v1652_v57 = vunpack.c.l.b16 %v1603_v40  ;;  %v1234_v58 = vrot.slane %v1232_v44, 4  ;;  %2090 = vmatpush.bf16.msrb.mxu0 %v5271_v21 }
  0x9d   : > { %v1237_v59 = vrot.slane %v1235_v45, 5  ;;  %v1243_v60 = vrot.slane %v1241_v46, 5  ;;  %v1247_v61 = vrot.slane %v1245_v49, 4  ;;  %v1251_v9 = vshll.u32 %v695_v63, 16 }
  0x9e   : > { %v1381_v1 = vpack.c.b16 %v1364_v53, %v1363_v52  ;;  %v1669_v2 = vpack.c.b16 %v1652_v57, %v1651_v56  ;;  %v1606_v10 = vrot.slane %v694_v34, 5  ;;  %v3981_v22 = vrot.slane %v693_v31, 9 }
  0x9f   : > { %v1238_v4 = vor.u32 %v1237_v59, %v1234_v58  ;;  %v1248_v8 = vor.u32 %v1247_v61, %v1243_v60  ;;  %v1253_v18 = vrot.slane %v1251_v9, 5  ;;  %v1609_v28 = vrot.slane %v695_v63, 5  ;;  %v698_v58 = vld [vmem:[%s4961_s25 + $0x80] sm:$0xf] }
  0xa0   : > { %v1608_v27 = vrot.slane %v1606_v10, 4  ;;  %v1256_v29 = vshrl.u32 %v696_v11, 16  ;;  %v1259_v30 = vshll.u32 %v696_v11, 16  ;;  %v1265_v34 = vshll.u32 %v697_v13, 16 }
  0xa1   : > { %v1239_v14 = vrot.slane %v1238_v4, 4  ;;  %v1249_v17 = vrot.slane %v1248_v8, 4  ;;  %v1269_v35 = vshrl.u32 %v697_v13, 16  ;;  %v1607_v40 = vsel %vm4989_vm4, %v3981_v22, %v1606_v10  ;;  %v699_v22 = vld [vmem:[%s4961_s25 + $0x84] sm:$0xf] }
  0xa2   : > { %v1610_v31 = vsel %vm4989_vm4, %v1608_v27, %v1609_v28  ;;  %v1258_v44 = vrot.slane %v1256_v29, 4  ;;  %v1261_v45 = vrot.slane %v1259_v30, 5  ;;  %v1267_v46 = vrot.slane %v1265_v34, 5 }
  0xa3   : > { %v1244_v38 = vsel %vm5001_vm5, %v1239_v14, %v1243_v60  ;;  %v1254_v39 = vsel %vm5001_vm5, %v1249_v17, %v1253_v18  ;;  %v1271_v49 = vrot.slane %v1269_v35, 4  ;;  %v1653_v56 = vunpack.c.l.b16 %v1607_v40  ;;  %v4347_v18 = vld [vmem:[%s6335_s2 + $0x1c8] sm:$0xff] }
  0xa4   : > { %v1365_v52 = vunpack.c.l.b16 %v1244_v38  ;;  %v1366_v53 = vunpack.c.l.b16 %v1254_v39  ;;  %v1654_v57 = vunpack.c.l.b16 %v1610_v31  ;;  %v1262_v59 = vor.u32 %v1261_v45, %v1258_v44  ;;  %2606 = vmatpush.bf16.msrb.mxu3 %v4347_v18  ;;  %v5312_v39 = vld [vmem:[%s6335_s2 + $0x148] sm:$0xff] }
  0xa5   : > { %v1272_v60 = vor.u32 %v1271_v49, %v1267_v46  ;;  %v1275_v63 = vshll.u32 %v698_v58, 16  ;;  %v3982_v10 = vrot.slane %v696_v11, 9  ;;  %v1616_v17 = vrot.slane %v698_v58, 5  ;;  %v5317_v40 = vld [vmem:[%s6335_s2 + $0x108] sm:$0xff]  ;;  %2256 = vmatpush.bf16.msrb.mxu1 %v5312_v39 }
  0xa6   : > { %v5283_v61 = vpack.c.b16 %v1366_v53, %v1365_v52  ;;  %v1263_v4 = vrot.slane %v1262_v59, 4  ;;  %v1280_v30 = vshrl.u32 %v699_v22, 16  ;;  %v1283_v34 = vshll.u32 %v699_v22, 16  ;;  %2091 = vmatpush.bf16.msrb.mxu0 %v5317_v40 }
  0xa7   : > { %v1273_v8 = vrot.slane %v1272_v60, 4  ;;  %v1277_v9 = vrot.slane %v1275_v63, 5 }
  0xa8   : > { %v1268_v11 = vsel %vm5001_vm5, %v1263_v4, %v1267_v46  ;;  %v1282_v49 = vrot.slane %v1280_v30, 4  ;;  %v1285_v52 = vrot.slane %v1283_v34, 5 }
  0xa9   : > { %1014 = vmatmul.bf16.gmra.mxu0 %v5128_v7  ;;  %v1278_v27 = vsel %vm5001_vm5, %v1273_v8, %v1277_v9  ;;  %v1367_v31 = vunpack.c.l.b16 %v1268_v11 }
  0xaa   : > { %1470 = vmatmul.bf16.gmra.mxu1 %v5157_v50  ;;  %v1368_v44 = vunpack.c.l.b16 %v1278_v27  ;;  %v1286_v4 = vor.u32 %v1285_v52, %v1282_v49 }
  0xab   : > { %1758 = vmatmul.bf16.gmra.mxu2 %v5159_v54 }
  0xac   : > { %1911 = vmatmul.bf16.gmra.mxu3 %v5162_v55  ;;  %v5322_v58 = vpack.c.b16 %v1368_v44, %v1367_v31  ;;  %v1287_v18 = vrot.slane %v1286_v4, 4 }
  0xb9   : > { %1019 = vmatmul.bf16.gmra.mxu0 %v5162_v55 }
  0xba   : > { %1475 = vmatmul.bf16.gmra.mxu1 %v5185_v24 }
  0xbb   : > { %1763 = vmatmul.bf16.gmra.mxu2 %v5187_v25 }
  0xbc   : > { %1916 = vmatmul.bf16.gmra.mxu3 %v5190_v26 }
  0xc9   : > { %1024 = vmatmul.bf16.gmra.mxu0 %v5190_v26 }
  0xca   : > { %1480 = vmatmul.bf16.gmra.mxu1 %v5229_v12 }
  0xcb   : > { %1768 = vmatmul.bf16.gmra.mxu2 %v5231_v15 }
  0xcc   : > { %1921 = vmatmul.bf16.gmra.mxu3 %v5234_v16 }
  0xd9   : > { %1029 = vmatmul.bf16.gmra.mxu0 %v4278_v0  ;;  %v1613_v0 = vrot.slane %v697_v13, 5  ;;  %v4339_v13 = vld [vmem:[%s6335_s2 + $0x188] sm:$0xff] }
  0xda   : > { %1485 = vmatmul.bf16.gmra.mxu1 %v1381_v1  ;;  %v5285_v1 = vpack.c.b16 %v1654_v57, %v1653_v56  ;;  %2409 = vmatpush.bf16.msrb.mxu2 %v4339_v13  ;;  %v701_v57 = vld [vmem:[%s4961_s25 + $0x8c] sm:$0xf]  ;;  %v5335_v13 = vld [vmem:[%s4961_s25 + $0x94] sm:$0xf] }
  0xdb   : > { %1773 = vmatmul.bf16.gmra.mxu2 %v1669_v2  ;;  %v5288_v2 = vld [vmem:[%s4961_s25 + $0x78] sm:$0xff]  ;;  %v1615_v14 = vrot.slane %v1613_v0, 4  ;;  %v1614_v28 = vsel %vm4989_vm4, %v3982_v10, %v1613_v0  ;;  %v5327_v0 = vld [vmem:[%s4961_s25 + $0x84] sm:$0xff]  ;;  %v1299_v9 = vshll.u32 %v701_v57, 16  ;;  %v1623_v30 = vrot.slane %v701_v57, 5 }
  0xdc   : > { %1926 = vmatmul.bf16.gmra.mxu3 %v4279_v3  ;;  %v1655_v45 = vunpack.c.l.b16 %v1614_v28  ;;  %v3983_v28 = vrot.slane %v699_v22, 9 }
  0xdd   : > { %v1617_v29 = vsel %vm4989_vm4, %v1615_v14, %v1616_v17  ;;  %v5330_v17 = vld [vmem:[%s4961_s25 + $0x90] sm:$0xf]  ;;  %v1301_v27 = vrot.slane %v1299_v9, 5 }
  0xde   : > { %v1656_v46 = vunpack.c.l.b16 %v1617_v29  ;;  %v1307_v34 = vshll.u32 %v5330_v17, 16 }
  0xe0   : > { %v5324_v63 = vpack.c.b16 %v1656_v46, %v1655_v45 }
  0xe2   : > { %6356 = vst [vmem:[#allocation6_spill] sm:$0xff] %v5324_v63 }
  0xe9   : > { %1034 = vmatmul.bf16.gmra.mxu0 %v4279_v3  ;;  %v700_v3 = vld [vmem:[%s4961_s25 + $0x88] sm:$0xf] }
  0xea   : > { %1490 = vmatmul.bf16.gmra.mxu1 %v5283_v61  ;;  %v1289_v35 = vshll.u32 %v700_v3, 16  ;;  %v1293_v38 = vshrl.u32 %v700_v3, 16  ;;  %v1620_v14 = vrot.slane %v700_v3, 5  ;;  %v1304_v3 = vshrl.u32 %v5330_v17, 16 }
  0xeb   : > { %1778 = vmatmul.bf16.gmra.mxu2 %v5285_v1 }
  0xec   : > { %1931 = vmatmul.bf16.gmra.mxu3 %v5288_v2  ;;  %v1291_v53 = vrot.slane %v1289_v35, 5  ;;  %v1295_v56 = vrot.slane %v1293_v38, 4  ;;  %v1622_v29 = vrot.slane %v1620_v14, 4  ;;  %v1313_v35 = vshll.u32 %v5335_v13, 16 }
  0xed   : > { %v1317_v38 = vshrl.u32 %v5335_v13, 16  ;;  %v1621_v57 = vsel %vm4989_vm4, %v3983_v28, %v1620_v14 }
  0xee   : > { %v1296_v8 = vor.u32 %v1295_v56, %v1291_v53  ;;  %v1292_v52 = vsel %vm5001_vm5, %v1287_v18, %v1291_v53  ;;  %v5353_v9 = vrot.slane %v1313_v35, 5  ;;  %v4338_v53 = vld [vmem:[%s6335_s2 + $0x180] sm:$0xff] }
  0xef   : > { %v4346_v18 = vld [vmem:[%s6335_s2 + $0x1c0] sm:$0xff]  ;;  %2410 = vmatpush.bf16.msrb.mxu2 %v4338_v53 }
  0xf0   : > { %v1297_v11 = vrot.slane %v1296_v8, 4  ;;  %v1309_v8 = vrot.slane %v1307_v34, 5  ;;  %2607 = vmatpush.bf16.msrb.mxu3 %v4346_v18 }
  0xf2   : > { %v1302_v22 = vsel %vm5001_vm5, %v1297_v11, %v1301_v27  ;;  %v1369_v11 = vunpack.c.l.b16 %v1292_v52  ;;  %v1657_v27 = vunpack.c.l.b16 %v1621_v57  ;;  %v4491_v57 = vld [vmem:[%s6335_s2 + $0xb0] sm:$0xff] }
  0xf3   : > { %v1370_v14 = vunpack.c.l.b16 %v1302_v22  ;;  %2887 = vmatpush.bf16.msra.mxu2 %v4910_v41  ;;  %v5371_v22 = vld [vmem:[%s4961_s25 + $0x90] sm:$0xff] }
  0xf4   : > { %2924 = vmatpush.bf16.msra.mxu3 %v4915_v42  ;;  %v4490_v42 = vld [vmem:[%s6335_s2 + $0x70] sm:$0xff] }
  0xf6   : > { %v1000_v59 = vpop.f32.mrf.mxu0 }
  0xf7   : > { %v1456_v60 = vpop.f32.mrf.mxu1  ;;  %2888 = vmatpush.bf16.msra.mxu2 %v4490_v42 }
  0xf8   : > { %v1516_v10 = vadd.f32 %v1456_v60, %v1000_v59  ;;  %v1624_v59 = vsel %vm4989_vm4, %v1622_v29, %v1623_v30  ;;  %v1306_v60 = vrot.slane %v1304_v3, 4  ;;  %v704_v29 = vld [vmem:[%s4961_s25 + $0x98] sm:$0xf]  ;;  %2925 = vmatpush.bf16.msra.mxu3 %v4491_v57 }
  0xf9   : > { %1039 = vmatmul.bf16.gmra.mxu0 %v5288_v2  ;;  %v1658_v28 = vunpack.c.l.b16 %v1624_v59  ;;  %v1630_v18 = vrot.slane %v704_v29, 5 }
  0xfa   : > { %1495 = vmatmul.bf16.gmra.mxu1 %v5322_v58  ;;  %v1310_v30 = vor.u32 %v1309_v8, %v1306_v60  ;;  %v5384_v60 = vld [vmem:[%s6335_s2 + $0x140] sm:$0xff] }
  0xfb   : > { %1783 = vmatmul.bf16.gmra.mxu2 %v5324_v63  ;;  %v5368_v52 = vpack.c.b16 %v1658_v28, %v1657_v27  ;;  %2257 = vmatpush.bf16.msrb.mxu1 %v5384_v60  ;;  %v5401_v27 = vld [vmem:[%s4961_s25 + $0xa0] sm:$0xf] }
  0xfc   : > { %1936 = vmatmul.bf16.gmra.mxu3 %v5327_v0 }
  0xfd   : > { %6357 = vst [vmem:[#allocation7_spill] sm:$0xff] %v5368_v52 }
  0xfe   : > { %v1744_v31 = vpop.f32.mrf.mxu2  ;;  %v1002_v46 = vpop.f32.mrf.mxu0 }
  0xff   : > { %v1897_v44 = vpop.f32.mrf.mxu3  ;;  %v1804_v45 = vadd.f32 %v1744_v31, %v1516_v10  ;;  %v1458_v49 = vpop.f32.mrf.mxu1  ;;  %v1319_v10 = vrot.slane %v1317_v38, 4  ;;  %v5365_v38 = vpack.c.b16 %v1370_v14, %v1369_v11  ;;  %v1323_v31 = vshll.u32 %v704_v29, 16  ;;  %v5392_v11 = vld [vmem:[%s4961_s25 + $0x9c] sm:$0xf]  ;;  %v5397_v14 = vld [vmem:[%s6335_s2 + $0x100] sm:$0xff] }
 0x100   : > { %v1517_v56 = vadd.f32 %v1458_v49, %v1002_v46  ;;  %2092 = vmatpush.bf16.msrb.mxu0 %v5397_v14  ;;  %v4493_v29 = vld [vmem:[%s6335_s2 + $0x38] sm:$0xff]  ;;  %v1331_v57 = vshll.u32 %v5392_v11, 16 }
 0x101   : > { %v5351_v4 = vadd.f32 %v1897_v44, %v1804_v45  ;;  %v1320_v3 = vor.u32 %v1319_v10, %v5353_v9  ;;  %v1627_v44 = vrot.slane %v5335_v13, 5  ;;  %v1325_v8 = vrot.slane %v1323_v31, 5  ;;  %2858 = vmatpush.bf16.msra.mxu1 %v4493_v29 }
 0x102   : > { %v3984_v10 = vrot.slane %v5330_v17, 9  ;;  %v4492_v17 = vld [vmem:[%s6335_s2 + $0x68] sm:$0xff] }
 0x103   : > { %v1321_v59 = vrot.slane %v1320_v3, 4  ;;  %v1629_v53 = vrot.slane %v1627_v44, 4  ;;  %2889 = vmatpush.bf16.msra.mxu2 %v4492_v17 }
 0x105   : > { %v1631_v31 = vsel %vm4989_vm4, %v1629_v53, %v1630_v18 }
 0x106   : > { %v1746_v34 = vpop.f32.mrf.mxu2  ;;  %v1005_v46 = vpop.f32.mrf.mxu0  ;;  %v1660_v29 = vunpack.c.l.b16 %v1631_v31 }
 0x107   : > { %v1899_v35 = vpop.f32.mrf.mxu3  ;;  %v1805_v45 = vadd.f32 %v1746_v34, %v1517_v56  ;;  %v1461_v49 = vpop.f32.mrf.mxu1  ;;  %v1311_v56 = vrot.slane %v1310_v30, 4  ;;  %v1326_v34 = vsel %vm5001_vm5, %v1321_v59, %v1325_v8  ;;  %v1341_v59 = vshrl.u32 %v5401_v27, 16  ;;  %v4495_v8 = vld [vmem:[%s6335_s2 + $0x60] sm:$0xff] }
 0x108   : > { %v1518_v41 = vadd.f32 %v1461_v49, %v1005_v46  ;;  %2890 = vmatpush.bf16.msra.mxu2 %v4495_v8  ;;  %v1372_v18 = vunpack.c.l.b16 %v1326_v34  ;;  %v4498_v8 = vld [vmem:[%s6335_s2 + $0x58] sm:$0xff] }
 0x109   : > { %v5379_v13 = vadd.f32 %v1899_v35, %v1805_v45  ;;  %1044 = vmatmul.bf16.gmra.mxu0 %v5327_v0  ;;  %v1316_v28 = vsel %vm5001_vm5, %v1311_v56, %v5353_v9  ;;  %v1628_v35 = vsel %vm4989_vm4, %v3984_v10, %v1627_v44  ;;  %v1328_v9 = vshrl.u32 %v5392_v11, 16  ;;  %v4494_v45 = vld [vmem:[%s6335_s2 + $0xa8] sm:$0xff] }
 0x10a   : > { %1500 = vmatmul.bf16.gmra.mxu1 %v5365_v38  ;;  %2926 = vmatpush.bf16.msra.mxu3 %v4494_v45  ;;  %v1337_v56 = vshll.u32 %v5401_v27, 16  ;;  %v1371_v53 = vunpack.c.l.b16 %v1316_v28  ;;  %v1659_v17 = vunpack.c.l.b16 %v1628_v35  ;;  %v4499_v28 = vld [vmem:[%s6335_s2 + $0x28] sm:$0xff] }
 0x10b   : > { %6358 = vst [vmem:[#allocation8_spill] sm:$0xff] %v5379_v13  ;;  %1788 = vmatmul.bf16.gmra.mxu2 %v5368_v52  ;;  %v1330_v45 = vrot.slane %v1328_v9, 4  ;;  %v1634_v52 = vrot.slane %v5401_v27, 5 }
 0x10c   : > { %1941 = vmatmul.bf16.gmra.mxu3 %v5371_v22  ;;  %2891 = vmatpush.bf16.msra.mxu2 %v4498_v8  ;;  %v5444_v31 = vpack.c.b16 %v1372_v18, %v1371_v53  ;;  %v5446_v9 = vpack.c.b16 %v1660_v29, %v1659_v17  ;;  %v4501_v53 = vld [vmem:[%s6335_s2 + $0x50] sm:$0xff] }
 0x10e   : > { %v1749_v30 = vpop.f32.mrf.mxu2  ;;  %v1007_v49 = vpop.f32.mrf.mxu0  ;;  %6360 = vst [vmem:[#allocation10_spill] sm:$0xff] %v5446_v9 }
 0x10f   : > { %v1902_v3 = vpop.f32.mrf.mxu3  ;;  %v1806_v46 = vadd.f32 %v1749_v30, %v1518_v41  ;;  %v1463_v42 = vpop.f32.mrf.mxu1  ;;  %v4496_v41 = vld [vmem:[%s6335_s2 + $0x30] sm:$0xff]  ;;  %v4497_v30 = vld [vmem:[%s6335_s2 + $0xa0] sm:$0xff] }
 0x110   : > { %v1519_v44 = vadd.f32 %v1463_v42, %v1007_v49  ;;  %2859 = vmatpush.bf16.msra.mxu1 %v4496_v41  ;;  %2927 = vmatpush.bf16.msra.mxu3 %v4497_v30  ;;  %v1333_v49 = vrot.slane %v1331_v57, 5  ;;  %v1339_v42 = vrot.slane %v1337_v56, 5  ;;  %v4500_v57 = vld [vmem:[%s6335_s2 + $0x98] sm:$0xff] }
 0x111   : > { %v5429_v10 = vadd.f32 %v1902_v3, %v1806_v46  ;;  %v1343_v3 = vrot.slane %v1341_v59, 4  ;;  %v707_v46 = vld [vmem:[%s4961_s25 + $0xa4] sm:$0xf]  ;;  %v5452_v30 = vld [vmem:[%s4961_s25 + $0x9c] sm:$0xff]  ;;  %2892 = vmatpush.bf16.msra.mxu2 %v4501_v53 }
 0x112   : > { %v1334_v8 = vor.u32 %v1333_v49, %v1330_v45  ;;  %v1347_v13 = vshll.u32 %v707_v46, 16  ;;  %v3985_v45 = vrot.slane %v5392_v11, 9  ;;  %v1636_v49 = vrot.slane %v1634_v52, 4 }
 0x113   : > { %6359 = vst [vmem:[#allocation9_spill] sm:$0xff] %v5429_v10  ;;  %v1344_v10 = vor.u32 %v1343_v3, %v1339_v42  ;;  %v1637_v3 = vrot.slane %v707_v46, 5 }
 0x114   : > { %2860 = vmatpush.bf16.msra.mxu1 %v4499_v28  ;;  %2928 = vmatpush.bf16.msra.mxu3 %v4500_v57  ;;  %v1335_v27 = vrot.slane %v1334_v8, 4  ;;  %v1349_v29 = vrot.slane %v1347_v13, 5  ;;  %v4505_v57 = vld [vmem:[%s6335_s2 + $0x18] sm:$0xff]  ;;  %v1635_v53 = vsel %vm4989_vm4, %v3985_v45, %v1634_v52  ;;  %v4508_v52 = vld [vmem:[%s6335_s2 + $0x10] sm:$0xff] }
 0x115   : > { %v1345_v17 = vrot.slane %v1344_v10, 4  ;;  %v1661_v45 = vunpack.c.l.b16 %v1635_v53 }
 0x116   : > { %v1751_v34 = vpop.f32.mrf.mxu2  ;;  %v1010_v59 = vpop.f32.mrf.mxu0 }
 0x117   : > { %v1904_v35 = vpop.f32.mrf.mxu3  ;;  %v1807_v56 = vadd.f32 %v1751_v34, %v1519_v44  ;;  %v1466_v41 = vpop.f32.mrf.mxu1  ;;  %v4502_v44 = vld [vmem:[%s6335_s2 + $0x20] sm:$0xff]  ;;  %v4503_v34 = vld [vmem:[%s6335_s2 + $0x90] sm:$0xff] }
 0x118   : > { %v1520_v28 = vadd.f32 %v1466_v41, %v1010_v59  ;;  %2861 = vmatpush.bf16.msra.mxu1 %v4502_v44  ;;  %2929 = vmatpush.bf16.msra.mxu3 %v4503_v34  ;;  %v1340_v59 = vsel %vm5001_vm5, %v1335_v27, %v1339_v42  ;;  %v1350_v41 = vsel %vm5001_vm5, %v1345_v17, %v1349_v29  ;;  %v4506_v34 = vld [vmem:[%s6335_s2 + $0x88] sm:$0xff]  ;;  %v5496_v27 = vld [vmem:[%s6335_s2 + $0x238] sm:$0xff] }
 0x119   : > { %v5458_v18 = vadd.f32 %v1904_v35, %v1807_v56  ;;  %1049 = vmatmul.bf16.gmra.mxu0 %v5371_v22  ;;  %v4504_v35 = vld [vmem:[%s6335_s2 + $0x48] sm:$0xff]  ;;  %v1638_v44 = vsel %vm4989_vm4, %v1636_v49, %v1637_v3  ;;  %v1373_v17 = vunpack.c.l.b16 %v1340_v59  ;;  %v1374_v29 = vunpack.c.l.b16 %v1350_v41  ;;  %v4509_v3 = vld [vmem:[%s6335_s2 + $0x80] sm:$0xff] }
 0x11a   : > { %1505 = vmatmul.bf16.gmra.mxu1 %v5444_v31  ;;  %2893 = vmatpush.bf16.msra.mxu2 %v4504_v35  ;;  %v1662_v49 = vunpack.c.l.b16 %v1638_v44  ;;  %v4510_v35 = vld [vmem:[%s6335_s2 + $0x8] sm:$0xff] }
 0x11b   : > { %1793 = vmatmul.bf16.gmra.mxu2 %v5446_v9  ;;  %2765 = vmatpush.bf16.msra.mxu0 %v5496_v27  ;;  %v5513_v41 = vld [vmem:[%s4961_s25 + $0xa8] sm:$0xff] }
 0x11c   : > { %1946 = vmatmul.bf16.gmra.mxu3 %v5452_v30  ;;  %2862 = vmatpush.bf16.msra.mxu1 %v4505_v57  ;;  %v5510_v59 = vpack.c.b16 %v1662_v49, %v1661_v45 }
 0x11d   : > { %2930 = vmatpush.bf16.msra.mxu3 %v4506_v34  ;;  %v4511_v34 = vld [vmem:[%s6335_s2] sm:$0xff] }
 0x11e   : > { %v1754_v13 = vpop.f32.mrf.mxu2  ;;  %v1012_v56 = vpop.f32.mrf.mxu0 }
 0x11f   : > { %v1907_v10 = vpop.f32.mrf.mxu3  ;;  %v1808_v11 = vadd.f32 %v1754_v13, %v1520_v28  ;;  %v1468_v46 = vpop.f32.mrf.mxu1  ;;  %v4507_v28 = vld [vmem:[%s6335_s2 + $0x40] sm:$0xff] }
 0x120   : > { %v1521_v8 = vadd.f32 %v1468_v46, %v1012_v56  ;;  %2894 = vmatpush.bf16.msra.mxu2 %v4507_v28  ;;  %2863 = vmatpush.bf16.msra.mxu1 %v4508_v52 }
 0x121   : > { %v5491_v42 = vadd.f32 %v1907_v10, %v1808_v11  ;;  %2931 = vmatpush.bf16.msra.mxu3 %v4509_v3  ;;  %v5508_v10 = vpack.c.b16 %v1374_v29, %v1373_v17 }
 0x124   : > { %2864 = vmatpush.bf16.msra.mxu1 %v4510_v35 }
 0x126   : > { %v1756_v57 = vpop.f32.mrf.mxu2  ;;  %v1015_v56 = vpop.f32.mrf.mxu0 }
 0x127   : > { %v1909_v13 = vpop.f32.mrf.mxu3  ;;  %v1809_v11 = vadd.f32 %v1756_v57, %v1521_v8  ;;  %v1471_v46 = vpop.f32.mrf.mxu1 }
 0x128   : > { %v1522_v53 = vadd.f32 %v1471_v46, %v1015_v56  ;;  %2865 = vmatpush.bf16.msra.mxu1 %v4511_v34  ;;  %v4512_v34 = vld [vmem:[%s6335_s2 + $0x138] sm:$0xff] }
 0x129   : > { %v5515_v44 = vadd.f32 %v1909_v13, %v1809_v11  ;;  %1054 = vmatmul.bf16.gmra.mxu0 %v5452_v30 }
 0x12a   : > { %1510 = vmatmul.bf16.gmra.mxu1 %v5508_v10 }
 0x12b   : > { %1798 = vmatmul.bf16.gmra.mxu2 %v5510_v59 }
 0x12c   : > { %1951 = vmatmul.bf16.gmra.mxu3 %v5513_v41 }
 0x12e   : > { %v1759_v8 = vpop.f32.mrf.mxu2  ;;  %v1017_v17 = vpop.f32.mrf.mxu0 }
 0x12f   : > { %v1912_v28 = vpop.f32.mrf.mxu3  ;;  %v1810_v52 = vadd.f32 %v1759_v8, %v1522_v53  ;;  %v1473_v29 = vpop.f32.mrf.mxu1  ;;  %v5535_v53 = vld [vmem:[%s6335_s2 + $0x230] sm:$0xff] }
 0x130   : > { %v1523_v45 = vadd.f32 %v1473_v29, %v1017_v17  ;;  %2766 = vmatpush.bf16.msra.mxu0 %v5535_v53 }
 0x131   : > { %v5524_v49 = vadd.f32 %v1912_v28, %v1810_v52 }
 0x136   : > { %v1761_v3 = vpop.f32.mrf.mxu2  ;;  %v1020_v13 = vpop.f32.mrf.mxu0 }
 0x137   : > { %v1914_v35 = vpop.f32.mrf.mxu3  ;;  %v1811_v57 = vadd.f32 %v1761_v3, %v1523_v45  ;;  %v1476_v11 = vpop.f32.mrf.mxu1  ;;  %v4515_v45 = vld [vmem:[%s6335_s2 + $0x130] sm:$0xff] }
 0x138   : > { %v1524_v56 = vadd.f32 %v1476_v11, %v1020_v13  ;;  %v4516_v3 = vld [vmem:[%s6335_s2 + $0x170] sm:$0xff]  ;;  %v4518_v13 = vld [vmem:[%s6335_s2 + $0xe8] sm:$0xff] }
 0x139   : > { %v5526_v46 = vadd.f32 %v1914_v35, %v1811_v57  ;;  %2093 = vmatmul.bf16.vlgmr.msrb.gmra.mxu0 %v5084_v32  ;;  %v4513_v32 = vld [vmem:[%s6335_s2 + $0x178] sm:$0xff]  ;;  %v4517_v57 = vld [vmem:[%s6335_s2 + $0xf0] sm:$0xff] }
 0x13a   : > { %2258 = vmatmul.bf16.vlgmr.msrb.gmra.mxu1 %v5086_v36  ;;  %v4514_v36 = vld [vmem:[%s6335_s2 + $0xf8] sm:$0xff] }
 0x13b   : > { %2411 = vmatmul.bf16.vlgmr.msrb.gmra.mxu2 %v5089_v37  ;;  %2973 = vmatpush.bf16.msrb.mxu1 %v4514_v36 }
 0x13c   : > { %2608 = vmatmul.bf16.vlgmr.msrb.gmra.mxu3 %v5123_v5  ;;  %3066 = vmatpush.bf16.msrb.mxu2 %v4512_v34 }
 0x13d   : > { %3127 = vmatpush.bf16.msrb.mxu3 %v4513_v32 }
 0x13e   : > { %v1764_v37 = vpop.f32.mrf.mxu2  ;;  %v1022_v52 = vpop.f32.mrf.mxu0 }
 0x13f   : > { %v1917_v8 = vpop.f32.mrf.mxu3  ;;  %v1812_v28 = vadd.f32 %v1764_v37, %v1524_v56  ;;  %v1478_v17 = vpop.f32.mrf.mxu1  ;;  %2974 = vmatpush.bf16.msrb.mxu1 %v4517_v57 }
 0x140   : > { %v1525_v29 = vadd.f32 %v1478_v17, %v1022_v52  ;;  %3067 = vmatpush.bf16.msrb.mxu2 %v4515_v45 }
 0x141   : > { %3128 = vmatpush.bf16.msrb.mxu3 %v4516_v3  ;;  %v5553_v35 = vadd.f32 %v1917_v8, %v1812_v28 }
 0x143   : > { %2975 = vmatpush.bf16.msrb.mxu1 %v4518_v13 }
 0x144   : > { %3068 = vmatpush.bf16.msrb.mxu2 %v5110_v51  ;;  %v4520_v51 = vld [vmem:[%s6335_s2 + $0xd8] sm:$0xff] }
 0x145   : > { %3129 = vmatpush.bf16.msrb.mxu3 %v5103_v48  ;;  %v4519_v48 = vld [vmem:[%s6335_s2 + $0xe0] sm:$0xff] }
 0x146   : > { %v1766_v11 = vpop.f32.mrf.mxu2  ;;  %v1025_v32 = vpop.f32.mrf.mxu0 }
 0x147   : > { %v1919_v56 = vpop.f32.mrf.mxu3  ;;  %v1813_v34 = vadd.f32 %v1766_v11, %v1525_v29  ;;  %v1481_v36 = vpop.f32.mrf.mxu1  ;;  %2976 = vmatpush.bf16.msrb.mxu1 %v4519_v48  ;;  %v5609_v11 = vld [vmem:[%s4961_s25 + $0x48] sm:$0xf] }
 0x148   : > { %v1526_v37 = vadd.f32 %v1481_v36, %v1025_v32  ;;  %3069 = vmatpush.bf16.msrb.mxu2 %v5171_v62 }
 0x149   : > { %3130 = vmatpush.bf16.msrb.mxu3 %v5145_v19  ;;  %v5565_v8 = vadd.f32 %v1919_v56, %v1813_v34  ;;  %2098 = vmatmul.bf16.gmra.mxu0 %v5123_v5  ;;  %v1982_v34 = vshrl.u32 %v5609_v11, 16 }
 0x14a   : > { %2263 = vmatmul.bf16.gmra.mxu1 %v5125_v6 }
 0x14b   : > { %2416 = vmatmul.bf16.gmra.mxu2 %v5128_v7  ;;  %2977 = vmatpush.bf16.msrb.mxu1 %v4520_v51 }
 0x14c   : > { %2613 = vmatmul.bf16.gmra.mxu3 %v5157_v50  ;;  %3070 = vmatpush.bf16.msrb.mxu2 %v5214_v47  ;;  %v4521_v47 = vld [vmem:[%s6335_s2 + $0xd0] sm:$0xff] }
 0x14d   : > { %3131 = vmatpush.bf16.msrb.mxu3 %v5209_v43  ;;  %v5586_v43 = vld [vmem:[%s6335_s2 + $0x228] sm:$0xff] }
 0x14e   : > { %v1769_v19 = vpop.f32.mrf.mxu2  ;;  %v1027_v52 = vpop.f32.mrf.mxu0  ;;  %2767 = vmatpush.bf16.msra.mxu0 %v5586_v43 }
 0x14f   : > { %v1922_v62 = vpop.f32.mrf.mxu3  ;;  %v1814_v28 = vadd.f32 %v1769_v19, %v1526_v37  ;;  %v1483_v5 = vpop.f32.mrf.mxu1  ;;  %2978 = vmatpush.bf16.msrb.mxu1 %v4521_v47 }
 0x150   : > { %v1527_v17 = vadd.f32 %v1483_v5, %v1027_v52  ;;  %3071 = vmatpush.bf16.msrb.mxu2 %v5271_v21 }
 0x151   : > { %3132 = vmatpush.bf16.msrb.mxu3 %v5250_v33  ;;  %v5581_v7 = vadd.f32 %v1922_v62, %v1814_v28  ;;  %v4522_v33 = vld [vmem:[%s6335_s2 + $0xc8] sm:$0xff]  ;;  %v1984_v62 = vrot.slane %v1982_v34, 4 }
 0x153   : > { %2979 = vmatpush.bf16.msrb.mxu1 %v4522_v33 }
 0x154   : > { %3072 = vmatpush.bf16.msrb.mxu2 %v5317_v40 }
 0x155   : > { %3133 = vmatpush.bf16.msrb.mxu3 %v5312_v39  ;;  %v4523_v39 = vld [vmem:[%s6335_s2 + $0xc0] sm:$0xff] }
 0x156   : > { %v1771_v21 = vpop.f32.mrf.mxu2  ;;  %v1030_v3 = vpop.f32.mrf.mxu0 }
 0x157   : > { %v1924_v29 = vpop.f32.mrf.mxu3  ;;  %v1815_v45 = vadd.f32 %v1771_v21, %v1527_v17  ;;  %v1486_v57 = vpop.f32.mrf.mxu1  ;;  %2980 = vmatpush.bf16.msrb.mxu1 %v4523_v39  ;;  %v5621_v17 = vld [vmem:[%s4961_s25 + $0x50] sm:$0xf] }
 0x158   : > { %v1528_v13 = vadd.f32 %v1486_v57, %v1030_v3  ;;  %3073 = vmatpush.bf16.msrb.mxu2 %v5397_v14  ;;  %v5612_v14 = vld [vmem:[%s4961_s25 + $0x4c] sm:$0xf] }
 0x159   : > { %3134 = vmatpush.bf16.msrb.mxu3 %v5384_v60  ;;  %v5599_v40 = vadd.f32 %v1924_v29, %v1815_v45  ;;  %2103 = vmatmul.bf16.gmra.mxu0 %v5157_v50  ;;  %v1985_v50 = vshll.u32 %v5609_v11, 16  ;;  %v1991_v48 = vshll.u32 %v5612_v14, 16 }
 0x15a   : > { %2268 = vmatmul.bf16.gmra.mxu1 %v5159_v54 }
 0x15b   : > { %6361 = vst [vmem:[#allocation11_spill] sm:$0xff] %v5599_v40  ;;  %2421 = vmatmul.bf16.gmra.mxu2 %v5162_v55  ;;  %v1995_v55 = vshrl.u32 %v5612_v14, 16  ;;  %v1987_v28 = vrot.slane %v1985_v50, 5  ;;  %v1993_v52 = vrot.slane %v1991_v48, 5  ;;  %v5639_v50 = vld [vmem:[%s4961_s25 + $0x58] sm:$0xf] }
 0x15c   : > { %2618 = vmatmul.bf16.gmra.mxu3 %v5185_v24 }
 0x15d   : > { %v1997_v5 = vrot.slane %v1995_v55, 4  ;;  %v1988_v3 = vor.u32 %v1987_v28, %v1984_v62 }
 0x15e   : > { %v1774_v60 = vpop.f32.mrf.mxu2  ;;  %v1032_v36 = vpop.f32.mrf.mxu0 }
 0x15f   : > { %v1927_v56 = vpop.f32.mrf.mxu3  ;;  %v1816_v32 = vadd.f32 %v1774_v60, %v1528_v13  ;;  %v1488_v37 = vpop.f32.mrf.mxu1  ;;  %v1998_v57 = vor.u32 %v1997_v5, %v1993_v52  ;;  %v2001_v13 = vshll.u32 %v5621_v17, 16 }
 0x160   : > { %v1529_v51 = vadd.f32 %v1488_v37, %v1032_v36  ;;  %v5633_v36 = vld [vmem:[%s6335_s2 + $0x220] sm:$0xff]  ;;  %v5636_v37 = vld [vmem:[%s4961_s25 + $0x54] sm:$0xf] }
 0x161   : > { %v5618_v19 = vadd.f32 %v1927_v56, %v1816_v32  ;;  %v1989_v56 = vrot.slane %v1988_v3, 4  ;;  %v1999_v34 = vrot.slane %v1998_v57, 4  ;;  %v2003_v32 = vrot.slane %v2001_v13, 5  ;;  %2768 = vmatpush.bf16.msra.mxu0 %v5633_v36 }
 0x162   : > { %v2497_v5 = vshrl.u32 %v5636_v37, 16 }
 0x163   : > { %6362 = vst [vmem:[#allocation12_spill] sm:$0xff] %v5618_v19  ;;  %v1994_v62 = vsel %vm5001_vm5, %v1989_v56, %v1993_v52  ;;  %v2004_v28 = vsel %vm5001_vm5, %v1999_v34, %v2003_v32  ;;  %v5653_v56 = vld [vmem:[%s4961_s25 + $0x5c] sm:$0xf]  ;;  %v2182_v19 = vrot.slane %v5612_v14, 5  ;;  %v2185_v14 = vrot.slane %v5621_v17, 5 }
 0x164   : > { %v2029_v3 = vunpack.c.l.b16 %v1994_v62  ;;  %v2030_v57 = vunpack.c.l.b16 %v2004_v28  ;;  %v2499_v13 = vrot.slane %v2497_v5, 4  ;;  %v2516_v62 = vshll.u32 %v5653_v56, 16 }
 0x165   : > { %v4090_v5 = vrot.slane %v5609_v11, 9 }
 0x166   : > { %v1776_v47 = vpop.f32.mrf.mxu2  ;;  %v1035_v29 = vpop.f32.mrf.mxu0 }
 0x167   : > { %v1929_v33 = vpop.f32.mrf.mxu3  ;;  %v1817_v21 = vadd.f32 %v1776_v47, %v1529_v51  ;;  %v1491_v45 = vpop.f32.mrf.mxu1 }
 0x168   : > { %v1530_v39 = vadd.f32 %v1491_v45, %v1035_v29  ;;  %v2510_v29 = vshrl.u32 %v5639_v50, 16 }
 0x169   : > { %v5624_v60 = vadd.f32 %v1929_v33, %v1817_v21  ;;  %2108 = vmatmul.bf16.gmra.mxu0 %v5185_v24  ;;  %v2500_v33 = vshll.u32 %v5636_v37, 16  ;;  %v2506_v21 = vshll.u32 %v5639_v50, 16 }
 0x16a   : > { %2273 = vmatmul.bf16.gmra.mxu1 %v5187_v25  ;;  %v2512_v52 = vrot.slane %v2510_v29, 4  ;;  %v5655_v25 = vpack.c.b16 %v2030_v57, %v2029_v3  ;;  %v2518_v29 = vrot.slane %v2516_v62, 5 }
 0x16b   : > { %6363 = vst [vmem:[#allocation13_spill] sm:$0xff] %v5624_v60  ;;  %2426 = vmatmul.bf16.gmra.mxu2 %v5190_v26 }
 0x16c   : > { %2623 = vmatmul.bf16.gmra.mxu3 %v5229_v12 }
 0x16e   : > { %v1779_v24 = vpop.f32.mrf.mxu2  ;;  %v1037_v26 = vpop.f32.mrf.mxu0 }
 0x16f   : > { %v1932_v48 = vpop.f32.mrf.mxu3  ;;  %v1818_v55 = vadd.f32 %v1779_v24, %v1530_v39  ;;  %v1493_v51 = vpop.f32.mrf.mxu1  ;;  %v2502_v39 = vrot.slane %v2500_v33, 5  ;;  %v2508_v24 = vrot.slane %v2506_v21, 5 }
 0x170   : > { %v1531_v47 = vadd.f32 %v1493_v51, %v1037_v26 }
 0x171   : > { %v5650_v45 = vadd.f32 %v1932_v48, %v1818_v55  ;;  %v2503_v48 = vor.u32 %v2502_v39, %v2499_v13  ;;  %v2513_v55 = vor.u32 %v2512_v52, %v2508_v24 }
 0x173   : > { %v2504_v33 = vrot.slane %v2503_v48, 4  ;;  %v2514_v21 = vrot.slane %v2513_v55, 4 }
 0x175   : > { %v2509_v11 = vsel %vm5001_vm5, %v2504_v33, %v2508_v24  ;;  %v2519_v17 = vsel %vm5001_vm5, %v2514_v21, %v2518_v29 }
 0x176   : > { %v1781_v34 = vpop.f32.mrf.mxu2  ;;  %v1040_v26 = vpop.f32.mrf.mxu0 }
 0x177   : > { %v1934_v32 = vpop.f32.mrf.mxu3  ;;  %v1819_v60 = vadd.f32 %v1781_v34, %v1531_v47  ;;  %v1496_v51 = vpop.f32.mrf.mxu1  ;;  %v2184_v47 = vrot.slane %v2182_v19, 4 }
 0x178   : > { %v1532_v40 = vadd.f32 %v1496_v51, %v1040_v26  ;;  %v2544_v26 = vunpack.c.l.b16 %v2509_v11  ;;  %v2545_v51 = vunpack.c.l.b16 %v2519_v17 }
 0x179   : > { %v5659_v28 = vadd.f32 %v1934_v32, %v1819_v60  ;;  %2113 = vmatmul.bf16.gmra.mxu0 %v5229_v12  ;;  %v2183_v12 = vsel %vm4989_vm4, %v4090_v5, %v2182_v19 }
 0x17a   : > { %2278 = vmatmul.bf16.gmra.mxu1 %v5231_v15  ;;  %v2194_v32 = vunpack.c.l.b16 %v2183_v12  ;;  %v5688_v33 = vpack.c.b16 %v2545_v51, %v2544_v26 }
 0x17b   : > { %2431 = vmatmul.bf16.gmra.mxu2 %v5234_v16  ;;  %v2186_v16 = vsel %vm4989_vm4, %v2184_v47, %v2185_v14  ;;  %v5686_v14 = vld [vmem:[%s4961_s25 + $0x54] sm:$0xff] }
 0x17c   : > { %2628 = vmatmul.bf16.gmra.mxu3 %v5655_v25  ;;  %v2195_v19 = vunpack.c.l.b16 %v2186_v16 }
 0x17e   : > { %v1784_v3 = vpop.f32.mrf.mxu2  ;;  %v1042_v13 = vpop.f32.mrf.mxu0  ;;  %v5683_v62 = vpack.c.b16 %v2195_v19, %v2194_v32 }
 0x17f   : > { %v1937_v57 = vpop.f32.mrf.mxu3  ;;  %v1820_v60 = vadd.f32 %v1784_v3, %v1532_v40  ;;  %v1498_v39 = vpop.f32.mrf.mxu1  ;;  %v5680_v40 = vld [vmem:[%s6335_s2 + $0x218] sm:$0xff] }
 0x180   : > { %v1533_v52 = vadd.f32 %v1498_v39, %v1042_v13  ;;  %2769 = vmatpush.bf16.msra.mxu0 %v5680_v40 }
 0x181   : > { %v5675_v34 = vadd.f32 %v1937_v57, %v1820_v60 }
 0x186   : > { %v1786_v48 = vpop.f32.mrf.mxu2  ;;  %v1045_v5 = vpop.f32.mrf.mxu0 }
 0x187   : > { %v1939_v55 = vpop.f32.mrf.mxu3  ;;  %v1821_v24 = vadd.f32 %v1786_v48, %v1533_v52  ;;  %v1501_v47 = vpop.f32.mrf.mxu1  ;;  %v5707_v48 = vld [vmem:[%s6335_s2 + $0x210] sm:$0xff] }
 0x188   : > { %v1534_v21 = vadd.f32 %v1501_v47, %v1045_v5  ;;  %2770 = vmatpush.bf16.msra.mxu0 %v5707_v48 }
 0x189   : > { %v5690_v29 = vadd.f32 %v1939_v55, %v1821_v24  ;;  %2118 = vmatmul.bf16.gmra.mxu0 %v5655_v25 }
 0x18a   : > { %2283 = vmatmul.bf16.gmra.mxu1 %v5683_v62 }
 0x18b   : > { %6364 = vst [vmem:[#allocation14_spill] sm:$0xff] %v5690_v29  ;;  %2436 = vmatmul.bf16.gmra.mxu2 %v5686_v14 }
 0x18c   : > { %2633 = vmatmul.bf16.gmra.mxu3 %v5688_v33 }
 0x18e   : > { %v1789_v3 = vpop.f32.mrf.mxu2  ;;  %v1047_v13 = vpop.f32.mrf.mxu0 }
 0x18f   : > { %v1942_v57 = vpop.f32.mrf.mxu3  ;;  %v1822_v60 = vadd.f32 %v1789_v3, %v1534_v21  ;;  %v1503_v39 = vpop.f32.mrf.mxu1 }
 0x190   : > { %v1535_v12 = vadd.f32 %v1503_v39, %v1047_v13 }
 0x191   : > { %v5696_v16 = vadd.f32 %v1942_v57, %v1822_v60 }
 0x193   : > { %6365 = vst [vmem:[#allocation15_spill] sm:$0xff] %v5696_v16 }
 0x196   : > { %v1791_v52 = vpop.f32.mrf.mxu2  ;;  %v1050_v32 = vpop.f32.mrf.mxu0 }
 0x197   : > { %v1944_v11 = vpop.f32.mrf.mxu3  ;;  %v1823_v17 = vadd.f32 %v1791_v52, %v1535_v12  ;;  %v1506_v19 = vpop.f32.mrf.mxu1 }
 0x198   : > { %v1536_v26 = vadd.f32 %v1506_v19, %v1050_v32 }
 0x199   : > { %v5698_v51 = vadd.f32 %v1944_v11, %v1823_v17  ;;  %2123 = vmatmul.bf16.gmra.mxu0 %v5283_v61 }
 0x19a   : > { %2288 = vmatmul.bf16.gmra.mxu1 %v5285_v1 }
 0x19b   : > { %6366 = vst [vmem:[#allocation16_spill] sm:$0xff] %v5698_v51  ;;  %2441 = vmatmul.bf16.gmra.mxu2 %v5288_v2 }
 0x19c   : > { %2638 = vmatmul.bf16.gmra.mxu3 %v5322_v58 }
 0x19e   : > { %v1794_v55 = vpop.f32.mrf.mxu2  ;;  %v1052_v47 = vpop.f32.mrf.mxu0 }
 0x19f   : > { %v1947_v24 = vpop.f32.mrf.mxu3  ;;  %v1824_v5 = vadd.f32 %v1794_v55, %v1536_v26  ;;  %v1508_v21 = vpop.f32.mrf.mxu1 }
 0x1a0   : > { %v1537_v3 = vadd.f32 %v1508_v21, %v1052_v47 }
 0x1a1   : > { %v5710_v61 = vadd.f32 %v1947_v24, %v1824_v5 }
 0x1a3   : > { %6367 = vst [vmem:[#allocation17_spill] sm:$0xff] %v5710_v61 }
 0x1a6   : > { %v1796_v1 = vpop.f32.mrf.mxu2  ;;  %v1055_v60 = vpop.f32.mrf.mxu0 }
 0x1a7   : > { %v1949_v57 = vpop.f32.mrf.mxu3  ;;  %v1825_v2 = vadd.f32 %v1796_v1, %v1537_v3  ;;  %v1511_v13 = vpop.f32.mrf.mxu1 }
 0x1a8   : > { %v1538_v39 = vadd.f32 %v1511_v13, %v1055_v60  ;;  %v5734_v60 = vld [vmem:[%s4961_s25 + $0xa8] sm:$0xf]  ;;  %v5737_v13 = vld [vmem:[%s4961_s25 + $0xac] sm:$0xf] }
 0x1a9   : > { %v5712_v12 = vadd.f32 %v1949_v57, %v1825_v2  ;;  %2128 = vmatmul.bf16.gmra.mxu0 %v5322_v58  ;;  %v5723_v58 = vld [vmem:[%s6335_s2 + $0x208] sm:$0xff]  ;;  %v6371_v2 = vld [vmem:[#allocation7_spill] sm:$0xff]  ;;  %v2189_v29 = vrot.slane %v5737_v13, 5 }
 0x1aa   : > { %2293 = vmatmul.bf16.gmra.mxu1 %v5324_v63  ;;  %2771 = vmatpush.bf16.msra.mxu0 %v5723_v58 }
 0x1ab   : > { %6368 = vst [vmem:[#allocation18_spill] sm:$0xff] %v5712_v12  ;;  %2446 = vmatmul.bf16.gmra.mxu2 %v5327_v0 }
 0x1ac   : > { %2643 = vmatmul.bf16.gmra.mxu3 %v5365_v38 }
 0x1ae   : > { %v1799_v52 = vpop.f32.mrf.mxu2  ;;  %v1057_v32 = vpop.f32.mrf.mxu0 }
 0x1af   : > { %v1952_v11 = vpop.f32.mrf.mxu3  ;;  %v1826_v17 = vadd.f32 %v1799_v52, %v1538_v39  ;;  %v1513_v19 = vpop.f32.mrf.mxu1 }
 0x1b0   : > { %v1539_v26 = vadd.f32 %v1513_v19, %v1057_v32  ;;  %v2015_v19 = vshll.u32 %v5737_v13, 16 }
 0x1b1   : > { %v5718_v55 = vadd.f32 %v1952_v11, %v1826_v17 }
 0x1b3   : > { %6369 = vst [vmem:[#allocation19_spill] sm:$0xff] %v5718_v55 }
 0x1b6   : > { %v1801_v0 = vpop.f32.mrf.mxu2  ;;  %v2094_v47 = vpop.f32.mrf.mxu0 }
 0x1b7   : > { %v1954_v24 = vpop.f32.mrf.mxu3  ;;  %v1827_v5 = vadd.f32 %v1801_v0, %v1539_v26  ;;  %v2259_v21 = vpop.f32.mrf.mxu1  ;;  %v2154_v3 = vadd.f32 %v2094_v47, %v5351_v4  ;;  %v2006_v4 = vshrl.u32 %v5734_v60, 16  ;;  %v6372_v26 = vld [vmem:[#allocation8_spill] sm:$0xff] }
 0x1b9   : > { %v5727_v1 = vadd.f32 %v1954_v24, %v1827_v5  ;;  %v2319_v57 = vadd.f32 %v2259_v21, %v2154_v3  ;;  %2133 = vmatmul.bf16.gmra.mxu0 %v5365_v38  ;;  %v2009_v38 = vshll.u32 %v5734_v60, 16  ;;  %v2008_v47 = vrot.slane %v2006_v4, 4 }
 0x1ba   : > { %2298 = vmatmul.bf16.gmra.mxu1 %v6371_v2  ;;  %v2017_v3 = vrot.slane %v2015_v19, 5  ;;  %v5747_v2 = vld [vmem:[%s4961_s25 + $0xb0] sm:$0xf] }
 0x1bb   : > { %6370 = vst [vmem:[#allocation20_spill] sm:$0xff] %v5727_v1  ;;  %2451 = vmatmul.bf16.gmra.mxu2 %v5371_v22  ;;  %v2019_v22 = vshrl.u32 %v5737_v13, 16  ;;  %v2011_v21 = vrot.slane %v2009_v38, 5  ;;  %v2191_v13 = vrot.slane %v2189_v29, 4 }
 0x1bc   : > { %2648 = vmatmul.bf16.gmra.mxu3 %v5444_v31 }
 0x1bd   : > { %v2021_v1 = vrot.slane %v2019_v22, 4  ;;  %v2012_v61 = vor.u32 %v2011_v21, %v2008_v47 }
 0x1be   : > { %v2412_v39 = vpop.f32.mrf.mxu2  ;;  %v2096_v17 = vpop.f32.mrf.mxu0 }
 0x1bf   : > { %v2609_v52 = vpop.f32.mrf.mxu3  ;;  %v2472_v11 = vadd.f32 %v2412_v39, %v2319_v57  ;;  %v2261_v32 = vpop.f32.mrf.mxu1  ;;  %v2155_v0 = vadd.f32 %v2096_v17, %v6372_v26  ;;  %v2022_v51 = vor.u32 %v2021_v1, %v2017_v3  ;;  %v2025_v17 = vshll.u32 %v5747_v2, 16  ;;  %v5760_v1 = vld [vmem:[%s6335_s2 + $0x200] sm:$0xff] }
 0x1c0   : > { %v2013_v38 = vrot.slane %v2012_v61, 4  ;;  %2772 = vmatpush.bf16.msra.mxu0 %v5760_v1 }
 0x1c1   : > { %v5744_v24 = vadd.f32 %v2609_v52, %v2472_v11  ;;  %v2320_v5 = vadd.f32 %v2261_v32, %v2155_v0  ;;  %v6374_v52 = vld [vmem:[#allocation9_spill] sm:$0xff]  ;;  %v2023_v19 = vrot.slane %v2022_v51, 4  ;;  %v2027_v22 = vrot.slane %v2025_v17, 5 }
 0x1c2   : > { %v2018_v51 = vsel %vm5001_vm5, %v2013_v38, %v2017_v3 }
 0x1c3   : > { %6373 = vst [vmem:[#allocation8_spill] sm:$0xff] %v5744_v24  ;;  %v2028_v61 = vsel %vm5001_vm5, %v2023_v19, %v2027_v22  ;;  %v5781_v19 = vld [vmem:[%s4961_s25 + $0xbc] sm:$0xf] }
 0x1c6   : > { %v2414_v57 = vpop.f32.mrf.mxu2  ;;  %v2099_v12 = vpop.f32.mrf.mxu0 }
 0x1c7   : > { %v2611_v39 = vpop.f32.mrf.mxu3  ;;  %v2473_v55 = vadd.f32 %v2414_v57, %v2320_v5  ;;  %v2264_v63 = vpop.f32.mrf.mxu1  ;;  %v2156_v11 = vadd.f32 %v2099_v12, %v6374_v52  ;;  %v5763_v12 = vld [vmem:[%s4961_s25 + $0xb4] sm:$0xf] }
 0x1c8   : > { %v2521_v5 = vshrl.u32 %v5763_v12, 16  ;;  %v2524_v21 = vshll.u32 %v5763_v12, 16 }
 0x1c9   : > { %v5751_v32 = vadd.f32 %v2611_v39, %v2473_v55  ;;  %v2321_v4 = vadd.f32 %v2264_v63, %v2156_v11  ;;  %2138 = vmatmul.bf16.gmra.mxu0 %v5444_v31  ;;  %v5766_v55 = vld [vmem:[%s4961_s25 + $0xb8] sm:$0xf]  ;;  %v2031_v11 = vunpack.c.l.b16 %v2018_v51  ;;  %v2540_v51 = vshll.u32 %v5781_v19, 16 }
 0x1ca   : > { %2303 = vmatmul.bf16.gmra.mxu1 %v5446_v9  ;;  %v2530_v57 = vshll.u32 %v5766_v55, 16  ;;  %v2534_v39 = vshrl.u32 %v5766_v55, 16  ;;  %v2526_v3 = vrot.slane %v2524_v21, 5 }
 0x1cb   : > { %6375 = vst [vmem:[#allocation9_spill] sm:$0xff] %v5751_v32  ;;  %2456 = vmatmul.bf16.gmra.mxu2 %v5452_v30 }
 0x1cc   : > { %2653 = vmatmul.bf16.gmra.mxu3 %v5508_v10  ;;  %v2532_v38 = vrot.slane %v2530_v57, 5  ;;  %v2536_v32 = vrot.slane %v2534_v39, 4  ;;  %v2542_v57 = vrot.slane %v2540_v51, 5 }
 0x1ce   : > { %v2417_v63 = vpop.f32.mrf.mxu2  ;;  %v2101_v30 = vpop.f32.mrf.mxu0 }
 0x1cf   : > { %v2614_v31 = vpop.f32.mrf.mxu3  ;;  %v2474_v26 = vadd.f32 %v2417_v63, %v2321_v4  ;;  %v2266_v0 = vpop.f32.mrf.mxu1  ;;  %v2157_v47 = vadd.f32 %v2101_v30, %v5458_v18  ;;  %v2032_v4 = vunpack.c.l.b16 %v2028_v61  ;;  %v2523_v63 = vrot.slane %v2521_v5, 4 }
 0x1d1   : > { %v5778_v17 = vadd.f32 %v2614_v31, %v2474_v26  ;;  %v2322_v52 = vadd.f32 %v2266_v0, %v2157_v47  ;;  %v5783_v16 = vpack.c.b16 %v2032_v4, %v2031_v11  ;;  %v2527_v26 = vor.u32 %v2526_v3, %v2523_v63 }
 0x1d2   : > { %v2537_v0 = vor.u32 %v2536_v32, %v2532_v38  ;;  %v4091_v47 = vrot.slane %v5734_v60, 9 }
 0x1d3   : > { %v2528_v21 = vrot.slane %v2527_v26, 4 }
 0x1d4   : > { %v2538_v32 = vrot.slane %v2537_v0, 4 }
 0x1d6   : > { %v2419_v22 = vpop.f32.mrf.mxu2  ;;  %v2104_v30 = vpop.f32.mrf.mxu0  ;;  %v2543_v63 = vsel %vm5001_vm5, %v2538_v32, %v2542_v57 }
 0x1d7   : > { %v2616_v9 = vpop.f32.mrf.mxu3  ;;  %v2475_v18 = vadd.f32 %v2419_v22, %v2322_v52  ;;  %v2269_v24 = vpop.f32.mrf.mxu1  ;;  %v2158_v31 = vadd.f32 %v2104_v30, %v5491_v42  ;;  %v2192_v42 = vrot.slane %v5747_v2, 5  ;;  %v2533_v2 = vsel %vm5001_vm5, %v2528_v21, %v2532_v38 }
 0x1d8   : > { %v2547_v26 = vunpack.c.l.b16 %v2543_v63 }
 0x1d9   : > { %v5788_v61 = vadd.f32 %v2616_v9, %v2475_v18  ;;  %v2323_v5 = vadd.f32 %v2269_v24, %v2158_v31  ;;  %2143 = vmatmul.bf16.gmra.mxu0 %v5508_v10  ;;  %v2190_v10 = vsel %vm4989_vm4, %v4091_v47, %v2189_v29  ;;  %v2193_v4 = vsel %vm4989_vm4, %v2191_v13, %v2192_v42  ;;  %v5810_v13 = vld [vmem:[%s4961_s25 + $0xb4] sm:$0xff] }
 0x1da   : > { %2308 = vmatmul.bf16.gmra.mxu1 %v5510_v59  ;;  %v2196_v18 = vunpack.c.l.b16 %v2190_v10  ;;  %v2197_v30 = vunpack.c.l.b16 %v2193_v4  ;;  %v2546_v31 = vunpack.c.l.b16 %v2533_v2 }
 0x1db   : > { %2461 = vmatmul.bf16.gmra.mxu2 %v5513_v41 }
 0x1dc   : > { %2658 = vmatmul.bf16.gmra.mxu3 %v5783_v16  ;;  %v5807_v51 = vpack.c.b16 %v2197_v30, %v2196_v18  ;;  %v5812_v38 = vpack.c.b16 %v2547_v26, %v2546_v31  ;;  %v2697_v30 = vrot.slane %v5639_v50, 5 }
 0x1de   : > { %v2422_v39 = vpop.f32.mrf.mxu2  ;;  %v2106_v24 = vpop.f32.mrf.mxu0 }
 0x1df   : > { %v2619_v9 = vpop.f32.mrf.mxu3  ;;  %v2476_v52 = vadd.f32 %v2422_v39, %v2323_v5  ;;  %v2271_v11 = vpop.f32.mrf.mxu1  ;;  %v2159_v60 = vadd.f32 %v2106_v24, %v5515_v44 }
 0x1e1   : > { %v5805_v3 = vadd.f32 %v2619_v9, %v2476_v52  ;;  %v2324_v22 = vadd.f32 %v2271_v11, %v2159_v60 }
 0x1e6   : > { %v2424_v29 = vpop.f32.mrf.mxu2  ;;  %v2109_v47 = vpop.f32.mrf.mxu0 }
 0x1e7   : > { %v2621_v0 = vpop.f32.mrf.mxu3  ;;  %v2477_v5 = vadd.f32 %v2424_v29, %v2324_v22  ;;  %v2274_v44 = vpop.f32.mrf.mxu1  ;;  %v2160_v42 = vadd.f32 %v2109_v47, %v5524_v49  ;;  %v4524_v29 = vld [vmem:[%s4961_s25 + $0x48] sm:$0xff]  ;;  %s611_s25 = sand.u32 1, %s4608_s15  }
 0x1e8   : > { %s4368_s26 = smul.u32 48, %s611_s25 }
 0x1e9   : > { %v5815_v21 = vadd.f32 %v2621_v0, %v2477_v5  ;;  %v2325_v32 = vadd.f32 %v2274_v44, %v2160_v42  ;;  %2148 = vmatmul.bf16.gmra.mxu0 %v5783_v16  ;;  %v2699_v0 = vrot.slane %v2697_v30, 4  ;;  %v2700_v5 = vrot.slane %v5653_v56, 5 }
 0x1ea   : > { %2313 = vmatmul.bf16.gmra.mxu1 %v5807_v51  ;;  %s5936_s15 = scalar_lea.vmem [#allocation3], %s4368_s26 }
 0x1eb   : > { %2466 = vmatmul.bf16.gmra.mxu2 %v5810_v13 }
 0x1ec   : > { %2663 = vmatmul.bf16.gmra.mxu3 %v5812_v38 }
 0x1ee   : > { %v2427_v57 = vpop.f32.mrf.mxu2  ;;  %v2111_v52 = vpop.f32.mrf.mxu0 }
 0x1ef   : > { %v2624_v39 = vpop.f32.mrf.mxu3  ;;  %v2478_v9 = vadd.f32 %v2427_v57, %v2325_v32  ;;  %v2276_v24 = vpop.f32.mrf.mxu1  ;;  %v2161_v11 = vadd.f32 %v2111_v52, %v5526_v46  ;;  %v4196_v46 = vrot.slane %v5636_v37, 9  ;;  %v2701_v32 = vsel %vm4989_vm4, %v2699_v0, %v2700_v5 }
 0x1f0   : > { %v2710_v52 = vunpack.c.l.b16 %v2701_v32 }
 0x1f1   : > { %v5822_v49 = vadd.f32 %v2624_v39, %v2478_v9  ;;  %v2326_v10 = vadd.f32 %v2276_v24, %v2161_v11  ;;  %v2698_v56 = vsel %vm4989_vm4, %v4196_v46, %v2697_v30  ;;  %v4528_v39 = vld [vmem:[%s6335_s2 + $0x1b0] sm:$0xff]  ;;  %v4529_v24 = vld [vmem:[%s6335_s2 + $0x1e8] sm:$0xff]  ;;  %v4532_v30 = vld [vmem:[%s6335_s2 + $0x1a0] sm:$0xff] }
 0x1f2   : > { %v2709_v9 = vunpack.c.l.b16 %v2698_v56 }
 0x1f6   : > { %v2429_v4 = vpop.f32.mrf.mxu2  ;;  %v2114_v63 = vpop.f32.mrf.mxu0 }
 0x1f7   : > { %v2626_v60 = vpop.f32.mrf.mxu3  ;;  %v2479_v2 = vadd.f32 %v2429_v4, %v2326_v10  ;;  %v2279_v22 = vpop.f32.mrf.mxu1  ;;  %v2162_v18 = vadd.f32 %v2114_v63, %v5553_v35  ;;  %v4525_v35 = vld [vmem:[%s6335_s2 + $0x1f8] sm:$0xff]  ;;  %v5862_v63 = vpack.c.b16 %v2710_v52, %v2709_v9  ;;  %v2704_v9 = vrot.slane %v5766_v55, 5  ;;  %v4539_v52 = vld [vmem:[%s6335_s2 + $0x1c0] sm:$0xff] }
 0x1f8   : > { %v4197_v55 = vrot.slane %v5763_v12, 9 }
 0x1f9   : > { %v5826_v31 = vadd.f32 %v2626_v60, %v2479_v2  ;;  %v2327_v26 = vadd.f32 %v2279_v22, %v2162_v18  ;;  %2773 = vmatmul.bf16.vlgmr.msra.gmra.mxu0 %v5125_v6  ;;  %v4526_v6 = vld [vmem:[%s6335_s2 + $0x1b8] sm:$0xff]  ;;  %v4531_v18 = vld [vmem:[%s6335_s2 + $0x1e0] sm:$0xff] }
 0x1fa   : > { %2866 = vmatmul.bf16.vlgmr.msra.gmra.mxu1 %v4524_v29 }
 0x1fb   : > { %2895 = vmatmul.bf16.vlgmr.msra.gmra.mxu2 %v5655_v25  ;;  %3176 = vmatpush.bf16.msra.mxu1 %v4526_v6 }
 0x1fc   : > { %2932 = vmatmul.bf16.vlgmr.msra.gmra.mxu3 %v5683_v62  ;;  %3269 = vmatpush.bf16.msra.mxu2 %v4525_v35  ;;  %v6376_v35 = vld [vmem:[#allocation11_spill] sm:$0xff] }
 0x1fd   : > { %3330 = vmatpush.bf16.msra.mxu3 %v5496_v27  ;;  %v4527_v27 = vld [vmem:[%s6335_s2 + $0x1f0] sm:$0xff] }
 0x1fe   : > { %v2432_v25 = vpop.f32.mrf.mxu2  ;;  %v2116_v44 = vpop.f32.mrf.mxu0 }
 0x1ff   : > { %v2629_v50 = vpop.f32.mrf.mxu3  ;;  %v2480_v47 = vadd.f32 %v2432_v25, %v2327_v26  ;;  %v2281_v37 = vpop.f32.mrf.mxu1  ;;  %v2163_v42 = vadd.f32 %v2116_v44, %v5565_v8  ;;  %3177 = vmatpush.bf16.msra.mxu1 %v4528_v39  ;;  %v4535_v25 = vld [vmem:[%s6335_s2 + $0x1d0] sm:$0xff]  ;;  %v4537_v44 = vld [vmem:[%s6335_s2 + $0x1c8] sm:$0xff]  ;;  %v6377_v39 = vld [vmem:[#allocation12_spill] sm:$0xff] }
 0x200   : > { %3270 = vmatpush.bf16.msra.mxu2 %v4527_v27 }
 0x201   : > { %3331 = vmatpush.bf16.msra.mxu3 %v5535_v53  ;;  %v5850_v57 = vadd.f32 %v2629_v50, %v2480_v47  ;;  %v2328_v8 = vadd.f32 %v2281_v37, %v2163_v42  ;;  %v4530_v53 = vld [vmem:[%s6335_s2 + $0x1a8] sm:$0xff]  ;;  %v4536_v50 = vld [vmem:[%s6335_s2 + $0x190] sm:$0xff] }
 0x202   : > { %v4538_v37 = vld [vmem:[%s6335_s2 + $0x188] sm:$0xff] }
 0x203   : > { %3178 = vmatpush.bf16.msra.mxu1 %v4530_v53 }
 0x204   : > { %3271 = vmatpush.bf16.msra.mxu2 %v4529_v24  ;;  %v4540_v24 = vld [vmem:[%s6335_s2 + $0x180] sm:$0xff] }
 0x205   : > { %3332 = vmatpush.bf16.msra.mxu3 %v5586_v43 }
 0x206   : > { %v2434_v11 = vpop.f32.mrf.mxu2  ;;  %v2119_v60 = vpop.f32.mrf.mxu0 }
 0x207   : > { %v2631_v10 = vpop.f32.mrf.mxu3  ;;  %v2481_v4 = vadd.f32 %v2434_v11, %v2328_v8  ;;  %v2284_v2 = vpop.f32.mrf.mxu1  ;;  %v2164_v22 = vadd.f32 %v2119_v60, %v5581_v7  ;;  %3179 = vmatpush.bf16.msra.mxu1 %v4532_v30  ;;  %v4533_v7 = vld [vmem:[%s6335_s2 + $0x1d8] sm:$0xff]  ;;  %v6378_v11 = vld [vmem:[#allocation5_spill] sm:$0xff] }
 0x208   : > { %3272 = vmatpush.bf16.msra.mxu2 %v4531_v18  ;;  %v6379_v30 = vld [vmem:[#allocation13_spill] sm:$0xff] }
 0x209   : > { %3333 = vmatpush.bf16.msra.mxu3 %v5633_v36  ;;  %v5869_v43 = vadd.f32 %v2631_v10, %v2481_v4  ;;  %v2329_v26 = vadd.f32 %v2284_v2, %v2164_v22  ;;  %2778 = vmatmul.bf16.gmra.mxu0 %v5159_v54  ;;  %v4534_v36 = vld [vmem:[%s6335_s2 + $0x198] sm:$0xff]  ;;  %v2707_v10 = vrot.slane %v5781_v19, 5 }
 0x20a   : > { %2871 = vmatmul.bf16.gmra.mxu1 %v5686_v14 }
 0x20b   : > { %2900 = vmatmul.bf16.gmra.mxu2 %v5688_v33  ;;  %3180 = vmatpush.bf16.msra.mxu1 %v4534_v36 }
 0x20c   : > { %2937 = vmatmul.bf16.gmra.mxu3 %v5862_v63  ;;  %3273 = vmatpush.bf16.msra.mxu2 %v4533_v7 }
 0x20d   : > { %3334 = vmatpush.bf16.msra.mxu3 %v5680_v40 }
 0x20e   : > { %v2437_v29 = vpop.f32.mrf.mxu2  ;;  %v2121_v0 = vpop.f32.mrf.mxu0 }
 0x20f   : > { %v2634_v54 = vpop.f32.mrf.mxu3  ;;  %v2482_v46 = vadd.f32 %v2437_v29, %v2329_v26  ;;  %v2286_v5 = vpop.f32.mrf.mxu1  ;;  %v2165_v6 = vadd.f32 %v2121_v0, %v6376_v35  ;;  %3181 = vmatpush.bf16.msra.mxu1 %v4536_v50 }
 0x210   : > { %3274 = vmatpush.bf16.msra.mxu2 %v4535_v25 }
 0x211   : > { %3335 = vmatpush.bf16.msra.mxu3 %v5707_v48  ;;  %v5890_v40 = vadd.f32 %v2634_v54, %v2482_v46  ;;  %v2330_v47 = vadd.f32 %v2286_v5, %v2165_v6 }
 0x213   : > { %3182 = vmatpush.bf16.msra.mxu1 %v4538_v37 }
 0x214   : > { %3275 = vmatpush.bf16.msra.mxu2 %v4537_v44  ;;  %v715_v44 = vld [vmem:[%s5936_s15 + $0x4] sm:$0xf] }
 0x215   : > { %3336 = vmatpush.bf16.msra.mxu3 %v5723_v58 }
 0x216   : > { %v2439_v48 = vpop.f32.mrf.mxu2  ;;  %v2124_v32 = vpop.f32.mrf.mxu0 }
 0x217   : > { %v2636_v42 = vpop.f32.mrf.mxu3  ;;  %v2483_v56 = vadd.f32 %v2439_v48, %v2330_v47  ;;  %v2289_v27 = vpop.f32.mrf.mxu1  ;;  %v2166_v8 = vadd.f32 %v2124_v32, %v6377_v39  ;;  %3183 = vmatpush.bf16.msra.mxu1 %v4540_v24  ;;  %v714_v47 = vld [vmem:[%s5936_s15] sm:$0xf]  ;;  %v3020_v39 = vshll.u32 %v715_v44, 16 }
 0x218   : > { %3276 = vmatpush.bf16.msra.mxu2 %v4539_v52  ;;  %v3011_v32 = vshrl.u32 %v714_v47, 16 }
 0x219   : > { %3337 = vmatpush.bf16.msra.mxu3 %v5760_v1  ;;  %v5908_v58 = vadd.f32 %v2636_v42, %v2483_v56  ;;  %v2331_v53 = vadd.f32 %v2289_v27, %v2166_v8  ;;  %2783 = vmatmul.bf16.gmra.mxu0 %v6378_v11  ;;  %v2706_v1 = vrot.slane %v2704_v9, 4  ;;  %v3024_v8 = vshrl.u32 %v715_v44, 16  ;;  %v716_v11 = vld [vmem:[%s5936_s15 + $0x8] sm:$0xf] }
 0x21a   : > { %2876 = vmatmul.bf16.gmra.mxu1 %v5513_v41  ;;  %v2705_v41 = vsel %vm4989_vm4, %v4197_v55, %v2704_v9  ;;  %v3013_v24 = vrot.slane %v3011_v32, 4  ;;  %v3022_v55 = vrot.slane %v3020_v39, 5 }
 0x21b   : > { %2905 = vmatmul.bf16.gmra.mxu2 %v5783_v16  ;;  %v2708_v16 = vsel %vm4989_vm4, %v2706_v1, %v2707_v10  ;;  %v2711_v12 = vunpack.c.l.b16 %v2705_v41  ;;  %v3026_v1 = vrot.slane %v3024_v8, 4  ;;  %v3107_v41 = vrot.slane %v715_v44, 5 }
 0x21c   : > { %2942 = vmatmul.bf16.gmra.mxu3 %v5807_v51  ;;  %v2712_v29 = vunpack.c.l.b16 %v2708_v16 }
 0x21e   : > { %v2442_v4 = vpop.f32.mrf.mxu2  ;;  %v2126_v22 = vpop.f32.mrf.mxu0  ;;  %v5927_v35 = vpack.c.b16 %v2712_v29, %v2711_v12 }
 0x21f   : > { %v2639_v60 = vpop.f32.mrf.mxu3  ;;  %v2484_v2 = vadd.f32 %v2442_v4, %v2331_v53  ;;  %v2291_v18 = vpop.f32.mrf.mxu1  ;;  %v2167_v26 = vadd.f32 %v2126_v22, %v6379_v30  ;;  %v3030_v30 = vshll.u32 %v716_v11, 16 }
 0x221   : > { %v5924_v7 = vadd.f32 %v2639_v60, %v2484_v2  ;;  %v2332_v36 = vadd.f32 %v2291_v18, %v2167_v26  ;;  %v3032_v29 = vrot.slane %v3030_v30, 5 }
 0x226   : > { %v2444_v19 = vpop.f32.mrf.mxu2  ;;  %v2129_v0 = vpop.f32.mrf.mxu0 }
 0x227   : > { %v2641_v54 = vpop.f32.mrf.mxu3  ;;  %v2485_v46 = vadd.f32 %v2444_v19, %v2332_v36  ;;  %v2294_v5 = vpop.f32.mrf.mxu1  ;;  %v2168_v6 = vadd.f32 %v2129_v0, %v5650_v45  ;;  %v3110_v0 = vrot.slane %v716_v11, 5 }
 0x229   : > { %v5930_v25 = vadd.f32 %v2641_v54, %v2485_v46  ;;  %v2333_v50 = vadd.f32 %v2294_v5, %v2168_v6  ;;  %2788 = vmatmul.bf16.gmra.mxu0 %v5231_v15  ;;  %v3014_v15 = vshll.u32 %v714_v47, 16  ;;  %v4238_v54 = vrot.slane %v714_v47, 9 }
 0x22a   : > { %2881 = vmatmul.bf16.gmra.mxu1 %v5810_v13  ;;  %v3109_v46 = vrot.slane %v3107_v41, 4 }
 0x22b   : > { %2910 = vmatmul.bf16.gmra.mxu2 %v5812_v38  ;;  %v3016_v53 = vrot.slane %v3014_v15, 5 }
 0x22c   : > { %2947 = vmatmul.bf16.gmra.mxu3 %v5927_v35  ;;  %v3111_v47 = vsel %vm4989_vm4, %v3109_v46, %v3110_v0 }
 0x22d   : > { %v3017_v18 = vor.u32 %v3016_v53, %v3013_v24 }
 0x22e   : > { %v2447_v37 = vpop.f32.mrf.mxu2  ;;  %v2131_v42 = vpop.f32.mrf.mxu0 }
 0x22f   : > { %v2644_v45 = vpop.f32.mrf.mxu3  ;;  %v2486_v48 = vadd.f32 %v2447_v37, %v2333_v50  ;;  %v2296_v56 = vpop.f32.mrf.mxu1  ;;  %v2169_v27 = vadd.f32 %v2131_v42, %v5659_v28  ;;  %v3027_v28 = vor.u32 %v3026_v1, %v3022_v55  ;;  %v3018_v12 = vrot.slane %v3017_v18, 4  ;;  %v721_v18 = vld [vmem:[%s5936_s15 + $0x1c] sm:$0xf] }
 0x230   : > { %v3044_v46 = vshll.u32 %v721_v18, 16 }
 0x231   : > { %v5941_v9 = vadd.f32 %v2644_v45, %v2486_v48  ;;  %v2334_v52 = vadd.f32 %v2296_v56, %v2169_v27  ;;  %v3028_v19 = vrot.slane %v3027_v28, 4  ;;  %v3108_v45 = vsel %vm4989_vm4, %v4238_v54, %v3107_v41 }
 0x232   : > { %v3119_v15 = vunpack.c.l.b16 %v3108_v45  ;;  %v3120_v27 = vunpack.c.l.b16 %v3111_v47 }
 0x234   : > { %v5967_v1 = vpack.c.b16 %v3120_v27, %v3119_v15 }
 0x236   : > { %v2449_v10 = vpop.f32.mrf.mxu2  ;;  %v2134_v2 = vpop.f32.mrf.mxu0 }
 0x237   : > { %v2646_v4 = vpop.f32.mrf.mxu3  ;;  %v2487_v60 = vadd.f32 %v2449_v10, %v2334_v52  ;;  %v2299_v22 = vpop.f32.mrf.mxu1  ;;  %v2170_v26 = vadd.f32 %v2134_v2, %v5675_v34  ;;  %v5963_v52 = vld [vmem:[%s5936_s15] sm:$0xff] }
 0x238   : > { %v6381_v10 = vld [vmem:[#allocation15_spill] sm:$0xff] }
 0x239   : > { %v5945_v16 = vadd.f32 %v2646_v4, %v2487_v60  ;;  %v2335_v36 = vadd.f32 %v2299_v22, %v2170_v26  ;;  %2793 = vmatmul.bf16.gmra.mxu0 %v5683_v62  ;;  %v3023_v62 = vsel %vm5001_vm5, %v3018_v12, %v3022_v55  ;;  %v720_v22 = vld [vmem:[%s5936_s15 + $0x18] sm:$0xf] }
 0x23a   : > { %2981 = vmatmul.bf16.vlgmr.msrb.gmra.mxu1 %v5686_v14  ;;  %v6380_v14 = vld [vmem:[#allocation14_spill] sm:$0xff]  ;;  %v3058_v56 = vunpack.c.l.b16 %v3023_v62  ;;  %v3035_v12 = vshrl.u32 %v720_v22, 16 }
 0x23b   : > { %3074 = vmatmul.bf16.vlgmr.msrb.gmra.mxu2 %v5688_v33  ;;  %v3033_v33 = vsel %vm5001_vm5, %v3028_v19, %v3032_v29  ;;  %v3038_v29 = vshll.u32 %v720_v22, 16  ;;  %v6382_v19 = vld [vmem:[#allocation16_spill] sm:$0xff] }
 0x23c   : > { %3135 = vmatmul.bf16.vlgmr.msrb.gmra.mxu3 %v5862_v63  ;;  %v3059_v32 = vunpack.c.l.b16 %v3033_v33 }
 0x23e   : > { %v2452_v34 = vpop.f32.mrf.mxu2  ;;  %v2136_v50 = vpop.f32.mrf.mxu0  ;;  %v5965_v55 = vpack.c.b16 %v3059_v32, %v3058_v56  ;;  %v6383_v32 = vld [vmem:[#allocation17_spill] sm:$0xff] }
 0x23f   : > { %v2649_v5 = vpop.f32.mrf.mxu3  ;;  %v2488_v6 = vadd.f32 %v2452_v34, %v2335_v36  ;;  %v2301_v44 = vpop.f32.mrf.mxu1  ;;  %v2171_v37 = vadd.f32 %v2136_v50, %v6380_v14  ;;  %v722_v50 = vld [vmem:[%s5936_s15 + $0x20] sm:$0xf] }
 0x240   : > { %v3054_v56 = vshll.u32 %v722_v50, 16 }
 0x241   : > { %v5960_v48 = vadd.f32 %v2649_v5, %v2488_v6  ;;  %v2336_v42 = vadd.f32 %v2301_v44, %v2171_v37  ;;  %v3037_v5 = vrot.slane %v3035_v12, 4  ;;  %v3040_v6 = vrot.slane %v3038_v29, 5 }
 0x242   : > { %v3046_v44 = vrot.slane %v3044_v46, 5 }
 0x246   : > { %v2454_v39 = vpop.f32.mrf.mxu2  ;;  %v2139_v53 = vpop.f32.mrf.mxu0 }
 0x247   : > { %v2651_v8 = vpop.f32.mrf.mxu3  ;;  %v2489_v24 = vadd.f32 %v2454_v39, %v2336_v42  ;;  %v2304_v11 = vpop.f32.mrf.mxu1  ;;  %v2172_v4 = vadd.f32 %v2139_v53, %v6381_v10  ;;  %v3041_v42 = vor.u32 %v3040_v6, %v3037_v5  ;;  %v3114_v39 = vrot.slane %v721_v18, 5  ;;  %v6384_v53 = vld [vmem:[#allocation6_spill] sm:$0xff] }
 0x248   : > { %v3056_v10 = vrot.slane %v3054_v56, 5  ;;  %v6386_v56 = vld [vmem:[#allocation19_spill] sm:$0xff] }
 0x249   : > { %v5970_v60 = vadd.f32 %v2651_v8, %v2489_v24  ;;  %v2337_v2 = vadd.f32 %v2304_v11, %v2172_v4  ;;  %2798 = vmatmul.bf16.gmra.mxu0 %v5862_v63  ;;  %v3048_v63 = vshrl.u32 %v721_v18, 16  ;;  %v3042_v11 = vrot.slane %v3041_v42, 4 }
 0x24a   : > { %2986 = vmatmul.bf16.gmra.mxu1 %v5963_v52 }
 0x24b   : > { %3079 = vmatmul.bf16.gmra.mxu2 %v5965_v55  ;;  %v3050_v62 = vrot.slane %v3048_v63, 4  ;;  %v3047_v29 = vsel %vm5001_vm5, %v3042_v11, %v3046_v44 }
 0x24c   : > { %3140 = vmatmul.bf16.gmra.mxu3 %v5967_v1 }
 0x24d   : > { %v3051_v27 = vor.u32 %v3050_v62, %v3046_v44 }
 0x24e   : > { %v2457_v30 = vpop.f32.mrf.mxu2  ;;  %v2141_v41 = vpop.f32.mrf.mxu0 }
 0x24f   : > { %v2654_v26 = vpop.f32.mrf.mxu3  ;;  %v2490_v28 = vadd.f32 %v2457_v30, %v2337_v2  ;;  %v2306_v36 = vpop.f32.mrf.mxu1  ;;  %v2173_v54 = vadd.f32 %v2141_v41, %v6382_v19  ;;  %v3052_v4 = vrot.slane %v3051_v27, 4  ;;  %v4239_v2 = vrot.slane %v720_v22, 9 }
 0x250   : > { %v3116_v30 = vrot.slane %v3114_v39, 4 }
 0x251   : > { %v5979_v0 = vadd.f32 %v2654_v26, %v2490_v28  ;;  %v2338_v34 = vadd.f32 %v2306_v36, %v2173_v54  ;;  %v3117_v26 = vrot.slane %v722_v50, 5  ;;  %v3115_v54 = vsel %vm4989_vm4, %v4239_v2, %v3114_v39  ;;  %v6387_v39 = vld [vmem:[#allocation7_spill] sm:$0xff] }
 0x252   : > { %v3121_v6 = vunpack.c.l.b16 %v3115_v54  ;;  %v719_v54 = vld [vmem:[%s5936_s15 + $0x14] sm:$0xf] }
 0x253   : > { %v3118_v22 = vsel %vm4989_vm4, %v3116_v30, %v3117_v26 }
 0x254   : > { %v3122_v50 = vunpack.c.l.b16 %v3118_v22 }
 0x256   : > { %v2459_v14 = vpop.f32.mrf.mxu2  ;;  %v2144_v45 = vpop.f32.mrf.mxu0  ;;  %v6005_v42 = vpack.c.b16 %v3122_v50, %v3121_v6  ;;  %v6023_v6 = vld [vmem:[%s6336_s3] ss:$0 sm:$0xff] }
 0x257   : > { %v2656_v37 = vpop.f32.mrf.mxu3  ;;  %v2491_v33 = vadd.f32 %v2459_v14, %v2338_v34  ;;  %v2309_v47 = vpop.f32.mrf.mxu1  ;;  %v2174_v15 = vadd.f32 %v2144_v45, %v6383_v32  ;;  %v3060_v34 = vunpack.c.l.b16 %v3047_v29  ;;  %v6001_v14 = vld [vmem:[%s5936_s15 + $0x18] sm:$0xff] }
 0x259   : > { %v5983_v8 = vadd.f32 %v2656_v37, %v2491_v33  ;;  %v2339_v24 = vadd.f32 %v2309_v47, %v2174_v15  ;;  %2803 = vmatmul.bf16.gmra.mxu0 %v6384_v53  ;;  %v718_v53 = vld [vmem:[%s5936_s15 + $0x10] sm:$0xf] }
 0x25a   : > { %2991 = vmatmul.bf16.gmra.mxu1 %v5810_v13  ;;  %v6385_v13 = vld [vmem:[#allocation18_spill] sm:$0xff] }
 0x25b   : > { %3084 = vmatmul.bf16.gmra.mxu2 %v5812_v38  ;;  %v3057_v38 = vsel %vm5001_vm5, %v3052_v4, %v3056_v10 }
 0x25c   : > { %3145 = vmatmul.bf16.gmra.mxu3 %v5927_v35  ;;  %v3061_v5 = vunpack.c.l.b16 %v3057_v38 }
 0x25e   : > { %v2462_v28 = vpop.f32.mrf.mxu2  ;;  %v2146_v36 = vpop.f32.mrf.mxu0  ;;  %v6003_v47 = vpack.c.b16 %v3061_v5, %v3060_v34 }
 0x25f   : > { %v2659_v41 = vpop.f32.mrf.mxu3  ;;  %v2492_v18 = vadd.f32 %v2462_v28, %v2339_v24  ;;  %v2311_v12 = vpop.f32.mrf.mxu1  ;;  %v2175_v19 = vadd.f32 %v2146_v36, %v6385_v13  ;;  %v717_v24 = vld [vmem:[%s5936_s15 + $0xc] sm:$0xf]  ;;  %v3223_v36 = vshll.u32 %v718_v53, 16 }
 0x260   : > { %v3214_v26 = vshrl.u32 %v717_v24, 16  ;;  %v3217_v28 = vshll.u32 %v717_v24, 16 }
 0x261   : > { %v5998_v46 = vadd.f32 %v2659_v41, %v2492_v18  ;;  %v2340_v63 = vadd.f32 %v2311_v12, %v2175_v19  ;;  %v6388_v41 = vld [vmem:[#allocation20_spill] sm:$0xff]  ;;  %v3227_v12 = vshrl.u32 %v718_v53, 16  ;;  %v3225_v22 = vrot.slane %v3223_v36, 5 }
 0x262   : > { %v3216_v19 = vrot.slane %v3214_v26, 4  ;;  %v3219_v38 = vrot.slane %v3217_v28, 5 }
 0x266   : > { %v2464_v44 = vpop.f32.mrf.mxu2  ;;  %v2149_v33 = vpop.f32.mrf.mxu0 }
 0x267   : > { %v2661_v62 = vpop.f32.mrf.mxu3  ;;  %v2493_v37 = vadd.f32 %v2464_v44, %v2340_v63  ;;  %v2314_v45 = vpop.f32.mrf.mxu1  ;;  %v2176_v32 = vadd.f32 %v2149_v33, %v6386_v56  ;;  %v3229_v63 = vrot.slane %v3227_v12, 4  ;;  %v3233_v33 = vshll.u32 %v719_v54, 16 }
 0x269   : > { %v6008_v15 = vadd.f32 %v2661_v62, %v2493_v37  ;;  %v2341_v27 = vadd.f32 %v2314_v45, %v2176_v32  ;;  %2808 = vmatmul.bf16.gmra.mxu0 %v6387_v39  ;;  %v3220_v37 = vor.u32 %v3219_v38, %v3216_v19  ;;  %v6389_v45 = vld [vmem:[#allocation8_spill] sm:$0xff]  ;;  %v3230_v32 = vor.u32 %v3229_v63, %v3225_v22 }
 0x26a   : > { %2996 = vmatmul.bf16.gmra.mxu1 %v6001_v14 }
 0x26b   : > { %3089 = vmatmul.bf16.gmra.mxu2 %v6003_v47  ;;  %v3231_v28 = vrot.slane %v3230_v32, 4 }
 0x26c   : > { %3150 = vmatmul.bf16.gmra.mxu3 %v6005_v42 }
 0x26e   : > { %v2467_v11 = vpop.f32.mrf.mxu2  ;;  %v2151_v2 = vpop.f32.mrf.mxu0 }
 0x26f   : > { %v2664_v10 = vpop.f32.mrf.mxu3  ;;  %v2494_v4 = vadd.f32 %v2467_v11, %v2341_v27  ;;  %v2316_v30 = vpop.f32.mrf.mxu1  ;;  %v2177_v18 = vadd.f32 %v2151_v2, %v6388_v41  ;;  %v3310_v27 = vrot.slane %v718_v53, 5  ;;  %v3235_v2 = vrot.slane %v3233_v33, 5 }
 0x271   : > { %v6017_v29 = vadd.f32 %v2664_v10, %v2494_v4  ;;  %v2342_v13 = vadd.f32 %v2316_v30, %v2177_v18  ;;  %v6390_v10 = vld [vmem:[#allocation10_spill] sm:$0xff]  ;;  %v3221_v4 = vrot.slane %v3220_v37, 4  ;;  %v4248_v30 = vrot.slane %v717_v24, 9 }
 0x272   : > { %v3312_v41 = vrot.slane %v3310_v27, 4  ;;  %v3313_v18 = vrot.slane %v719_v54, 5  ;;  %v3236_v19 = vsel %vm5001_vm5, %v3231_v28, %v3235_v2  ;;  %v723_v28 = vld [vmem:[%s5936_s15 + $0x24] sm:$0xf] }
 0x273   : > { %v3311_v38 = vsel %vm4989_vm4, %v4248_v30, %v3310_v27 }
 0x274   : > { %v3314_v54 = vsel %vm4989_vm4, %v3312_v41, %v3313_v18  ;;  %v724_v41 = vld [vmem:[%s5936_s15 + $0x28] sm:$0xf] }
 0x276   : > { %v2469_v34 = vpop.f32.mrf.mxu2  ;;  %v2774_v44 = vpop.f32.mrf.mxu0 }
 0x277   : > { %v2666_v5 = vpop.f32.mrf.mxu3  ;;  %v2495_v50 = vadd.f32 %v2469_v34, %v2342_v13  ;;  %v2867_v62 = vpop.f32.mrf.mxu1  ;;  %v2834_v56 = vadd.f32 %v2774_v44, %v6389_v45  ;;  %v3322_v44 = vunpack.c.l.b16 %v3311_v38  ;;  %v4287_v45 = vld [vmem:[%s5936_s15 + $0xc] sm:$0xff] }
 0x279   : > { %v6028_v39 = vadd.f32 %v2666_v5, %v2495_v50  ;;  %v3370_v11 = vadd.f32 %v6023_v6, %v2834_v56  ;;  %2813 = vmatmul.bf16.gmra.mxu0 %v6390_v10  ;;  %v3262_v50 = vunpack.c.l.b16 %v3236_v19 }
 0x27a   : > { %3184 = vmatmul.bf16.vlgmr.msra.gmra.mxu1 %v5963_v52 }
 0x27b   : > { %3277 = vmatmul.bf16.vlgmr.msra.gmra.mxu2 %v5965_v55  ;;  %v3394_v26 = vmax.f32 %v3370_v11, 0.0  ;;  %v3226_v55 = vsel %vm5001_vm5, %v3221_v4, %v3225_v22 }
 0x27c   : > { %3338 = vmatmul.bf16.vlgmr.msra.gmra.mxu3 %v5967_v1  ;;  %v6391_v1 = vld [vmem:[#allocation9_spill] sm:$0xff]  ;;  %v3261_v5 = vunpack.c.l.b16 %v3226_v55 }
 0x27d   : > { %3418 = vst [vmem:[%s6035_s17] sm:$0xff] %v3394_v26 }
 0x27e   : > { %v2896_v53 = vpop.f32.mrf.mxu2  ;;  %v2776_v52 = vpop.f32.mrf.mxu0  ;;  %v3265_v11 = vpack.c.b16 %v3262_v50, %v3261_v5  ;;  %v725_v5 = vld [vmem:[%s5936_s15 + $0x2c] sm:$0xf] }
 0x27f   : > { %v2933_v36 = vpop.f32.mrf.mxu3  ;;  %v2916_v12 = vadd.f32 %v2896_v53, %v2867_v62  ;;  %v2869_v13 = vpop.f32.mrf.mxu1  ;;  %v2835_v24 = vadd.f32 %v2776_v52, %v6391_v1  ;;  %v3323_v62 = vunpack.c.l.b16 %v3314_v54  ;;  %v3238_v52 = vshrl.u32 %v723_v28, 16 }
 0x280   : > { %v3247_v1 = vshll.u32 %v724_v41, 16 }
 0x281   : > { %v6047_v63 = vadd.f32 %v2933_v36, %v2916_v12  ;;  %v3371_v34 = vadd.f32 %v6023_v6, %v2835_v24  ;;  %v3326_v10 = vpack.c.b16 %v3323_v62, %v3322_v44  ;;  %v3240_v38 = vrot.slane %v3238_v52, 4 }
 0x282   : > { %v3249_v50 = vrot.slane %v3247_v1, 5 }
 0x283   : > { %v3395_v22 = vmax.f32 %v3371_v34, 0.0 }
 0x285   : > { %3419 = vst [vmem:[%s6035_s17 + $0x8] sm:$0xff] %v3395_v22 }
 0x286   : > { %v2898_v37 = vpop.f32.mrf.mxu2  ;;  %v2779_v32 = vpop.f32.mrf.mxu0 }
 0x287   : > { %v2935_v33 = vpop.f32.mrf.mxu3  ;;  %v2917_v56 = vadd.f32 %v2898_v37, %v2869_v13  ;;  %v2872_v27 = vpop.f32.mrf.mxu1  ;;  %v2836_v4 = vadd.f32 %v2779_v32, %v5778_v17  ;;  %v3241_v13 = vshll.u32 %v723_v28, 16 }
 0x289   : > { %v6053_v2 = vadd.f32 %v2935_v33, %v2917_v56  ;;  %v3372_v30 = vadd.f32 %v6023_v6, %v2836_v4  ;;  %2818 = vmatmul.bf16.gmra.mxu0 %v5510_v59  ;;  %v3251_v59 = vshrl.u32 %v724_v41, 16  ;;  %v3243_v54 = vrot.slane %v3241_v13, 5 }
 0x28a   : > { %3189 = vmatmul.bf16.gmra.mxu1 %v4287_v45 }
 0x28b   : > { %3282 = vmatmul.bf16.gmra.mxu2 %v3265_v11  ;;  %v3396_v26 = vmax.f32 %v3372_v30, 0.0  ;;  %v3253_v44 = vrot.slane %v3251_v59, 4  ;;  %v3244_v56 = vor.u32 %v3243_v54, %v3240_v38  ;;  %v3317_v11 = vrot.slane %v724_v41, 5 }
 0x28c   : > { %3343 = vmatmul.bf16.gmra.mxu3 %v3326_v10 }
 0x28d   : > { %3420 = vst [vmem:[%s6035_s17 + $0x10] sm:$0xff] %v3396_v26  ;;  %v3245_v30 = vrot.slane %v3244_v56, 4 }
 0x28e   : > { %v2901_v18 = vpop.f32.mrf.mxu2  ;;  %v2781_v12 = vpop.f32.mrf.mxu0 }
 0x28f   : > { %v2938_v53 = vpop.f32.mrf.mxu3  ;;  %v2918_v36 = vadd.f32 %v2901_v18, %v2872_v27  ;;  %v2874_v17 = vpop.f32.mrf.mxu1  ;;  %v2837_v55 = vadd.f32 %v2781_v12, %v5788_v61  ;;  %v3257_v61 = vshll.u32 %v725_v5, 16  ;;  %v3254_v27 = vor.u32 %v3253_v44, %v3249_v50 }
 0x290   : > { %v4249_v18 = vrot.slane %v723_v28, 9  ;;  %v3320_v12 = vrot.slane %v725_v5, 5 }
 0x291   : > { %v6061_v24 = vadd.f32 %v2938_v53, %v2918_v36  ;;  %v3373_v19 = vadd.f32 %v6023_v6, %v2837_v55  ;;  %v3259_v26 = vrot.slane %v3257_v61, 5  ;;  %v3319_v36 = vrot.slane %v3317_v11, 4 }
 0x292   : > { %v3318_v28 = vsel %vm4989_vm4, %v4249_v18, %v3317_v11 }
 0x293   : > { %v3397_v34 = vmax.f32 %v3373_v19, 0.0  ;;  %v3321_v55 = vsel %vm4989_vm4, %v3319_v36, %v3320_v12  ;;  %v3324_v54 = vunpack.c.l.b16 %v3318_v28 }
 0x295   : > { %3421 = vst [vmem:[%s6035_s17 + $0x18] sm:$0xff] %v3397_v34  ;;  %v3325_v34 = vunpack.c.l.b16 %v3321_v55 }
 0x296   : > { %v2903_v62 = vpop.f32.mrf.mxu2  ;;  %v2784_v33 = vpop.f32.mrf.mxu0 }
 0x297   : > { %v2940_v22 = vpop.f32.mrf.mxu3  ;;  %v2919_v37 = vadd.f32 %v2903_v62, %v2874_v17  ;;  %v2877_v45 = vpop.f32.mrf.mxu1  ;;  %v2838_v32 = vadd.f32 %v2784_v33, %v5805_v3  ;;  %v3255_v3 = vrot.slane %v3254_v27, 4  ;;  %v3327_v20 = vpack.c.b16 %v3325_v34, %v3324_v54 }
 0x299   : > { %v6067_v10 = vadd.f32 %v2940_v22, %v2919_v37  ;;  %v3374_v4 = vadd.f32 %v6023_v6, %v2838_v32  ;;  %2823 = vmatmul.bf16.gmra.mxu0 %v5807_v51 }
 0x29a   : > { %3194 = vmatmul.bf16.gmra.mxu1 %v6001_v14  ;;  %v3250_v14 = vsel %vm5001_vm5, %v3245_v30, %v3249_v50  ;;  %v4289_v50 = vld [vmem:[%s5936_s15 + $0x24] sm:$0xff] }
 0x29b   : > { %3287 = vmatmul.bf16.gmra.mxu2 %v6003_v47  ;;  %v3398_v53 = vmax.f32 %v3374_v4, 0.0  ;;  %v3263_v19 = vunpack.c.l.b16 %v3250_v14 }
 0x29c   : > { %3348 = vmatmul.bf16.gmra.mxu3 %v6005_v42  ;;  %v3260_v42 = vsel %vm5001_vm5, %v3255_v3, %v3259_v26 }
 0x29d   : > { %3422 = vst [vmem:[%s6035_s17 + $0x20] sm:$0xff] %v3398_v53  ;;  %v3264_v38 = vunpack.c.l.b16 %v3260_v42 }
 0x29e   : > { %v2906_v41 = vpop.f32.mrf.mxu2  ;;  %v2786_v13 = vpop.f32.mrf.mxu0 }
 0x29f   : > { %v2943_v17 = vpop.f32.mrf.mxu3  ;;  %v2920_v52 = vadd.f32 %v2906_v41, %v2877_v45  ;;  %v2879_v51 = vpop.f32.mrf.mxu1  ;;  %v2839_v47 = vadd.f32 %v2786_v13, %v5815_v21  ;;  %v3266_v37 = vpack.c.b16 %v3264_v38, %v3263_v19 }
 0x2a1   : > { %v6084_v1 = vadd.f32 %v2943_v17, %v2920_v52  ;;  %v3375_v59 = vadd.f32 %v6023_v6, %v2839_v47 }
 0x2a3   : > { %v3399_v5 = vmax.f32 %v3375_v59, 0.0 }
 0x2a5   : > { %3423 = vst [vmem:[%s6035_s17 + $0x28] sm:$0xff] %v3399_v5 }
 0x2a6   : > { %v2908_v21 = vpop.f32.mrf.mxu2  ;;  %v2789_v62 = vpop.f32.mrf.mxu0 }
 0x2a7   : > { %v2945_v23 = vpop.f32.mrf.mxu3  ;;  %v2921_v44 = vadd.f32 %v2908_v21, %v2879_v51  ;;  %v2882_v22 = vpop.f32.mrf.mxu1  ;;  %v2840_v33 = vadd.f32 %v2789_v62, %v5822_v49 }
 0x2a9   : > { %v6090_v45 = vadd.f32 %v2945_v23, %v2921_v44  ;;  %v3376_v56 = vadd.f32 %v6023_v6, %v2840_v33  ;;  %2828 = vmatmul.bf16.gmra.mxu0 %v5927_v35 }
 0x2aa   : > { %3199 = vmatmul.bf16.gmra.mxu1 %v4289_v50 }
 0x2ab   : > { %3292 = vmatmul.bf16.gmra.mxu2 %v3266_v37  ;;  %v3400_v61 = vmax.f32 %v3376_v56, 0.0 }
 0x2ac   : > { %3353 = vmatmul.bf16.gmra.mxu3 %v3327_v20 }
 0x2ad   : > { %3424 = vst [vmem:[%s6035_s17 + $0x30] sm:$0xff] %v3400_v61 }
 0x2ae   : > { %v2911_v32 = vpop.f32.mrf.mxu2  ;;  %v2791_v4 = vpop.f32.mrf.mxu0 }
 0x2af   : > { %v2948_v27 = vpop.f32.mrf.mxu3  ;;  %v2922_v11 = vadd.f32 %v2911_v32, %v2882_v22  ;;  %v2884_v30 = vpop.f32.mrf.mxu1  ;;  %v2841_v49 = vadd.f32 %v2791_v4, %v5826_v31 }
 0x2b1   : > { %v6096_v26 = vadd.f32 %v2948_v27, %v2922_v11  ;;  %v3377_v18 = vadd.f32 %v6023_v6, %v2841_v49 }
 0x2b3   : > { %v3401_v53 = vmax.f32 %v3377_v18, 0.0 }
 0x2b5   : > { %3425 = vst [vmem:[%s6035_s17 + $0x38] sm:$0xff] %v3401_v53 }
 0x2b6   : > { %v2913_v35 = vpop.f32.mrf.mxu2  ;;  %v2794_v12 = vpop.f32.mrf.mxu0 }
 0x2b7   : > { %v2950_v3 = vpop.f32.mrf.mxu3  ;;  %v2923_v36 = vadd.f32 %v2913_v35, %v2884_v30  ;;  %v2982_v41 = vpop.f32.mrf.mxu1  ;;  %v2842_v17 = vadd.f32 %v2794_v12, %v5850_v57 }
 0x2b9   : > { %v6101_v52 = vadd.f32 %v2950_v3, %v2923_v36  ;;  %v3378_v13 = vadd.f32 %v6023_v6, %v2842_v17 }
 0x2bb   : > { %v3402_v51 = vmax.f32 %v3378_v13, 0.0 }
 0x2bd   : > { %3426 = vst [vmem:[%s6035_s17 + $0x40] sm:$0xff] %v3402_v51 }
 0x2be   : > { %v3075_v31 = vpop.f32.mrf.mxu2  ;;  %v2796_v47 = vpop.f32.mrf.mxu0 }
 0x2bf   : > { %v6105_v14 = vpop.f32.mrf.mxu3  ;;  %v6107_v42 = vpop.f32.mrf.mxu1  ;;  %v2843_v28 = vadd.f32 %v2796_v47, %v5869_v43 }
 0x2c1   : > { %v3379_v55 = vadd.f32 %v6023_v6, %v2843_v28 }
 0x2c3   : > { %v3403_v59 = vmax.f32 %v3379_v55, 0.0 }
 0x2c5   : > { %3427 = vst [vmem:[%s6035_s17 + $0x48] sm:$0xff] %v3403_v59 }
 0x2c6   : > { %v6112_v57 = vpop.f32.mrf.mxu2  ;;  %v2799_v38 = vpop.f32.mrf.mxu0 }
 0x2c7   : > { %v6114_v19 = vpop.f32.mrf.mxu3  ;;  %v6116_v54 = vpop.f32.mrf.mxu1  ;;  %v2844_v34 = vadd.f32 %v2799_v38, %v5890_v40 }
 0x2c9   : > { %v3380_v5 = vadd.f32 %v6023_v6, %v2844_v34  ;;  %v3002_v34 = vadd.f32 %v2982_v41, %v6047_v63 }
 0x2cb   : > { %v3404_v21 = vmax.f32 %v3380_v5, 0.0 }
 0x2cd   : > { %3428 = vst [vmem:[%s6035_s17 + $0x50] sm:$0xff] %v3404_v21  ;;  %v3095_v21 = vadd.f32 %v3075_v31, %v3002_v34 }
 0x2ce   : > { %v6121_v43 = vpop.f32.mrf.mxu2  ;;  %v2801_v50 = vpop.f32.mrf.mxu0 }
 0x2cf   : > { %v6123_v23 = vpop.f32.mrf.mxu3  ;;  %v6125_v44 = vpop.f32.mrf.mxu1  ;;  %v2845_v62 = vadd.f32 %v2801_v50, %v5908_v58 }
 0x2d1   : > { %v3381_v22 = vadd.f32 %v6023_v6, %v2845_v62 }
 0x2d3   : > { %v3405_v37 = vmax.f32 %v3381_v22, 0.0 }
 0x2d5   : > { %3429 = vst [vmem:[%s6035_s17 + $0x58] sm:$0xff] %v3405_v37 }
 0x2d6   : > { %v6130_v40 = vpop.f32.mrf.mxu2  ;;  %v2804_v33 = vpop.f32.mrf.mxu0 }
 0x2d7   : > { %v6132_v20 = vpop.f32.mrf.mxu3  ;;  %v6134_v56 = vpop.f32.mrf.mxu1  ;;  %v2846_v61 = vadd.f32 %v2804_v33, %v5924_v7 }
 0x2d9   : > { %v3382_v32 = vadd.f32 %v6023_v6, %v2846_v61  ;;  %v3003_v61 = vadd.f32 %v6107_v42, %v6053_v2 }
 0x2db   : > { %v3406_v27 = vmax.f32 %v3382_v32, 0.0 }
 0x2dd   : > { %3430 = vst [vmem:[%s6035_s17 + $0x80] sm:$0xff] %v3406_v27  ;;  %v3096_v27 = vadd.f32 %v6112_v57, %v3003_v61 }
 0x2de   : > { %v6139_v58 = vpop.f32.mrf.mxu2  ;;  %v2806_v4 = vpop.f32.mrf.mxu0 }
 0x2df   : > { %v6141_v11 = vpop.f32.mrf.mxu3  ;;  %v6143_v30 = vpop.f32.mrf.mxu1  ;;  %v2847_v49 = vadd.f32 %v2806_v4, %v5930_v25 }
 0x2e1   : > { %v3383_v18 = vadd.f32 %v6023_v6, %v2847_v49 }
 0x2e3   : > { %v3407_v53 = vmax.f32 %v3383_v18, 0.0 }
 0x2e5   : > { %3431 = vst [vmem:[%s6035_s17 + $0x88] sm:$0xff] %v3407_v53  ;;  %v3157_v53 = vadd.f32 %v6114_v19, %v3096_v27  ;;  %v3006_v27 = vadd.f32 %v6134_v56, %v6084_v1 }
 0x2e6   : > { %v6148_v35 = vpop.f32.mrf.mxu2  ;;  %v2809_v3 = vpop.f32.mrf.mxu0 }
 0x2e7   : > { %v6150_v7 = vpop.f32.mrf.mxu3  ;;  %v6152_v36 = vpop.f32.mrf.mxu1  ;;  %v2848_v12 = vadd.f32 %v2809_v3, %v5941_v9  ;;  %v3004_v3 = vadd.f32 %v6116_v54, %v6061_v24 }
 0x2e9   : > { %v3384_v17 = vadd.f32 %v6023_v6, %v2848_v12 }
 0x2eb   : > { %v3408_v13 = vmax.f32 %v3384_v17, 0.0 }
 0x2ed   : > { %3432 = vst [vmem:[%s6035_s17 + $0x90] sm:$0xff] %v3408_v13 }
 0x2ee   : > { %v6157_v51 = vpop.f32.mrf.mxu2  ;;  %v2811_v47 = vpop.f32.mrf.mxu0 }
 0x2ef   : > { %v6159_v25 = vpop.f32.mrf.mxu3  ;;  %v6161_v28 = vpop.f32.mrf.mxu1  ;;  %v2849_v55 = vadd.f32 %v2811_v47, %v5945_v16  ;;  %v3156_v16 = vadd.f32 %v6105_v14, %v3095_v21  ;;  %v3097_v47 = vadd.f32 %v6121_v43, %v3004_v3  ;;  %v3007_v3 = vadd.f32 %v6143_v30, %v6090_v45 }
 0x2f1   : > { %v3385_v59 = vadd.f32 %v6023_v6, %v2849_v55  ;;  %v3158_v24 = vadd.f32 %v6123_v23, %v3097_v47 }
 0x2f3   : > { %v3409_v38 = vmax.f32 %v3385_v59, 0.0 }
 0x2f5   : > { %3433 = vst [vmem:[%s6035_s17 + $0x98] sm:$0xff] %v3409_v38 }
 0x2f6   : > { %v6167_v9 = vpop.f32.mrf.mxu2  ;;  %v2814_v50 = vpop.f32.mrf.mxu0 }
 0x2f7   : > { %v6169_v5 = vpop.f32.mrf.mxu3  ;;  %v3185_v62 = vpop.f32.mrf.mxu1  ;;  %v2850_v22 = vadd.f32 %v2814_v50, %v5960_v48  ;;  %v3005_v50 = vadd.f32 %v6125_v44, %v6067_v10 }
 0x2f8   : > { %v3205_v32 = vadd.f32 %v3185_v62, %v3156_v16 }
 0x2f9   : > { %v3386_v37 = vadd.f32 %v6023_v6, %v2850_v22  ;;  %v3098_v16 = vadd.f32 %v6130_v40, %v3005_v50 }
 0x2fb   : > { %v3410_v33 = vmax.f32 %v3386_v37, 0.0  ;;  %v3159_v10 = vadd.f32 %v6132_v20, %v3098_v16  ;;  %v3009_v16 = vadd.f32 %v6161_v28, %v6101_v52 }
 0x2fd   : > { %3434 = vst [vmem:[%s6035_s17 + $0xa0] sm:$0xff] %v3410_v33 }
 0x2fe   : > { %v3278_v63 = vpop.f32.mrf.mxu2  ;;  %v2816_v4 = vpop.f32.mrf.mxu0 }
 0x2ff   : > { %v3339_v41 = vpop.f32.mrf.mxu3  ;;  %v3298_v31 = vadd.f32 %v3278_v63, %v3205_v32  ;;  %v3187_v49 = vpop.f32.mrf.mxu1  ;;  %v2851_v48 = vadd.f32 %v2816_v4, %v5970_v60 }
 0x300   : > { %v3206_v17 = vadd.f32 %v3187_v49, %v3157_v53 }
 0x301   : > { %v3359_v18 = vadd.f32 %v3339_v41, %v3298_v31  ;;  %v3387_v14 = vadd.f32 %v6023_v6, %v2851_v48  ;;  %v3099_v48 = vadd.f32 %v6139_v58, %v3006_v27 }
 0x303   : > { %v3442_v2 = vadd.f32 %v6023_v6, %v3359_v18  ;;  %v3411_v42 = vmax.f32 %v3387_v14, 0.0  ;;  %v3160_v1 = vadd.f32 %v6141_v11, %v3099_v48 }
 0x305   : > { %v3450_v12 = vmax.f32 %v3442_v2, 0.0  ;;  %3435 = vst [vmem:[%s6035_s17 + $0xa8] sm:$0xff] %v3411_v42 }
 0x306   : > { %v3280_v57 = vpop.f32.mrf.mxu2  ;;  %v2819_v55 = vpop.f32.mrf.mxu0 }
 0x307   : > { %v3341_v13 = vpop.f32.mrf.mxu3  ;;  %4250 = vst [vmem:[%s6035_s17 + $0x60] sm:$0xff] %v3450_v12  ;;  %v3299_v60 = vadd.f32 %v3280_v57, %v3206_v17  ;;  %v3190_v59 = vpop.f32.mrf.mxu1  ;;  %v2852_v19 = vadd.f32 %v2819_v55, %v5979_v0 }
 0x308   : > { %v3207_v43 = vadd.f32 %v3190_v59, %v3158_v24 }
 0x309   : > { %v3360_v38 = vadd.f32 %v3341_v13, %v3299_v60  ;;  %v3388_v34 = vadd.f32 %v6023_v6, %v2852_v19  ;;  %v3100_v13 = vadd.f32 %v6148_v35, %v3007_v3  ;;  %v3594_v3 = vld [vmem:[%s6035_s17 + $0x58] sm:$0xff] (%p4765_p9) }
 0x30a   : > { %3595 = vst [vmem:[%s6248_s8 + $0x58] sm:$0xff] (%p4765_p9), %v3594_v3 }
 0x30b   : > { %v3443_v54 = vadd.f32 %v6023_v6, %v3360_v38  ;;  %v3412_v21 = vmax.f32 %v3388_v34, 0.0  ;;  %v3161_v45 = vadd.f32 %v6150_v7, %v3100_v13  ;;  %v3008_v38 = vadd.f32 %v6152_v36, %v6096_v26  ;;  %v3604_v13 = vld [vmem:[%s6035_s17 + $0x80] sm:$0xff] (%p4765_p9) }
 0x30c   : > { %3605 = vst [vmem:[%s6248_s8 + $0x100] sm:$0xff] (%p4765_p9), %v3604_v13 }
 0x30d   : > { %v3451_v62 = vmax.f32 %v3443_v54, 0.0  ;;  %3436 = vst [vmem:[%s6035_s17 + $0xb0] sm:$0xff] %v3412_v21  ;;  %v3101_v21 = vadd.f32 %v6157_v51, %v3008_v38 }
 0x30e   : > { %v3283_v22 = vpop.f32.mrf.mxu2  ;;  %v2821_v33 = vpop.f32.mrf.mxu0 }
 0x30f   : > { %v3344_v37 = vpop.f32.mrf.mxu3  ;;  %4251 = vst [vmem:[%s6035_s17 + $0x68] sm:$0xff] %v3451_v62  ;;  %v3300_v0 = vadd.f32 %v3283_v22, %v3207_v43  ;;  %v3192_v61 = vpop.f32.mrf.mxu1  ;;  %v2853_v23 = vadd.f32 %v2821_v33, %v5983_v8  ;;  %v3162_v26 = vadd.f32 %v6159_v25, %v3101_v21 }
 0x310   : > { %v3208_v40 = vadd.f32 %v3192_v61, %v3159_v10 }
 0x311   : > { %v3361_v32 = vadd.f32 %v3344_v37, %v3300_v0  ;;  %v3389_v63 = vadd.f32 %v6023_v6, %v2853_v23 }
 0x313   : > { %v3444_v44 = vadd.f32 %v6023_v6, %v3361_v32  ;;  %v3413_v41 = vmax.f32 %v3389_v63, 0.0 }
 0x315   : > { %v3452_v31 = vmax.f32 %v3444_v44, 0.0  ;;  %3437 = vst [vmem:[%s6035_s17 + $0xb8] sm:$0xff] %v3413_v41 }
 0x316   : > { %v3285_v4 = vpop.f32.mrf.mxu2  ;;  %v2824_v18 = vpop.f32.mrf.mxu0 }
 0x317   : > { %v3346_v49 = vpop.f32.mrf.mxu3  ;;  %4252 = vst [vmem:[%s6035_s17 + $0x70] sm:$0xff] %v3452_v31  ;;  %v3301_v8 = vadd.f32 %v3285_v4, %v3208_v40  ;;  %v3195_v14 = vpop.f32.mrf.mxu1  ;;  %v2854_v20 = vadd.f32 %v2824_v18, %v5998_v46  ;;  %v3578_v18 = vld [vmem:[%s6035_s17 + $0x18] sm:$0xff] (%p4765_p9) }
 0x318   : > { %v3209_v58 = vadd.f32 %v3195_v14, %v3160_v1  ;;  %v3580_v14 = vld [vmem:[%s6035_s17 + $0x20] sm:$0xff] (%p4765_p9)  ;;  %3579 = vst [vmem:[%s6248_s8 + $0x18] sm:$0xff] (%p4765_p9), %v3578_v18 }
 0x319   : > { %v3362_v53 = vadd.f32 %v3346_v49, %v3301_v8  ;;  %v3390_v2 = vadd.f32 %v6023_v6, %v2854_v20  ;;  %v3574_v8 = vld [vmem:[%s6035_s17 + $0x8] sm:$0xff] (%p4765_p9)  ;;  %3581 = vst [vmem:[%s6248_s8 + $0x20] sm:$0xff] (%p4765_p9), %v3580_v14  ;;  %v3588_v1 = vld [vmem:[%s6035_s17 + $0x40] sm:$0xff] (%p4765_p9) }
 0x31a   : > { %3575 = vst [vmem:[%s6248_s8 + $0x8] sm:$0xff] (%p4765_p9), %v3574_v8  ;;  %v3582_v20 = vld [vmem:[%s6035_s17 + $0x28] sm:$0xff] (%p4765_p9) }
 0x31b   : > { %v3445_v56 = vadd.f32 %v6023_v6, %v3362_v53  ;;  %v3414_v42 = vmax.f32 %v3390_v2, 0.0  ;;  %v3584_v53 = vld [vmem:[%s6035_s17 + $0x30] sm:$0xff] (%p4765_p9)  ;;  %v3586_v2 = vld [vmem:[%s6035_s17 + $0x38] sm:$0xff] (%p4765_p9)  ;;  %3583 = vst [vmem:[%s6248_s8 + $0x28] sm:$0xff] (%p4765_p9), %v3582_v20 }
 0x31c   : > { %3585 = vst [vmem:[%s6248_s8 + $0x30] sm:$0xff] (%p4765_p9), %v3584_v53 }
 0x31d   : > { %v3453_v12 = vmax.f32 %v3445_v56, 0.0  ;;  %3438 = vst [vmem:[%s6035_s17 + $0xc0] sm:$0xff] %v3414_v42  ;;  %v3590_v56 = vld [vmem:[%s6035_s17 + $0x48] sm:$0xff] (%p4765_p9)  ;;  %v3592_v42 = vld [vmem:[%s6035_s17 + $0x50] sm:$0xff] (%p4765_p9) }
 0x31e   : > { %v3288_v17 = vpop.f32.mrf.mxu2  ;;  %v2826_v47 = vpop.f32.mrf.mxu0  ;;  %3587 = vst [vmem:[%s6248_s8 + $0x38] sm:$0xff] (%p4765_p9), %v3586_v2 }
 0x31f   : > { %v3349_v57 = vpop.f32.mrf.mxu3  ;;  %4253 = vst [vmem:[%s6035_s17 + $0x78] sm:$0xff] %v3453_v12  ;;  %v3302_v46 = vadd.f32 %v3288_v17, %v3209_v58  ;;  %v3197_v60 = vpop.f32.mrf.mxu1  ;;  %v2855_v11 = vadd.f32 %v2826_v47, %v6008_v15  ;;  %v3596_v12 = vld [vmem:[%s6035_s17 + $0x60] sm:$0xff] (%p4765_p9)  ;;  %v3598_v58 = vld [vmem:[%s6035_s17 + $0x68] sm:$0xff] (%p4765_p9)  ;;  %v3600_v17 = vld [vmem:[%s6035_s17 + $0x70] sm:$0xff] (%p4765_p9) }
 0x320   : > { %v3210_v35 = vadd.f32 %v3197_v60, %v3161_v45  ;;  %3589 = vst [vmem:[%s6248_s8 + $0x40] sm:$0xff] (%p4765_p9), %v3588_v1  ;;  %v3608_v47 = vld [vmem:[%s6035_s17 + $0x90] sm:$0xff] (%p4765_p9)  ;;  %v3610_v60 = vld [vmem:[%s6035_s17 + $0x98] sm:$0xff] (%p4765_p9) }
 0x321   : > { %v3363_v55 = vadd.f32 %v3349_v57, %v3302_v46  ;;  %v3391_v59 = vadd.f32 %v6023_v6, %v2855_v11  ;;  %3591 = vst [vmem:[%s6248_s8 + $0x48] sm:$0xff] (%p4765_p9), %v3590_v56  ;;  %v3606_v46 = vld [vmem:[%s6035_s17 + $0x88] sm:$0xff] (%p4765_p9)  ;;  %v3612_v11 = vld [vmem:[%s6035_s17 + $0xa0] sm:$0xff] (%p4765_p9)  ;;  %v3618_v45 = vld [vmem:[%s6035_s17 + $0xb8] sm:$0xff] (%p4765_p9) }
 0x322   : > { %3593 = vst [vmem:[%s6248_s8 + $0x50] sm:$0xff] (%p4765_p9), %v3592_v42 }
 0x323   : > { %v3446_v30 = vadd.f32 %v6023_v6, %v3363_v55  ;;  %v3415_v19 = vmax.f32 %v3391_v59, 0.0  ;;  %3597 = vst [vmem:[%s6248_s8 + $0x60] sm:$0xff] (%p4765_p9), %v3596_v12  ;;  %v3614_v55 = vld [vmem:[%s6035_s17 + $0xa8] sm:$0xff] (%p4765_p9)  ;;  %v3616_v59 = vld [vmem:[%s6035_s17 + $0xb0] sm:$0xff] (%p4765_p9) }
 0x324   : > { %3599 = vst [vmem:[%s6248_s8 + $0x68] sm:$0xff] (%p4765_p9), %v3598_v58 }
 0x325   : > { %v3454_v34 = vmax.f32 %v3446_v30, 0.0  ;;  %3439 = vst [vmem:[%s6035_s17 + $0xc8] sm:$0xff] %v3415_v19  ;;  %v3620_v30 = vld [vmem:[%s6035_s17 + $0xc0] sm:$0xff] (%p4765_p9) }
 0x326   : > { %v3290_v24 = vpop.f32.mrf.mxu2  ;;  %v2829_v50 = vpop.f32.mrf.mxu0  ;;  %v3602_v57 = vld [vmem:[%s6035_s17 + $0x78] sm:$0xff] (%p4765_p9)  ;;  %3601 = vst [vmem:[%s6248_s8 + $0x70] sm:$0xff] (%p4765_p9), %v3600_v17 }
 0x327   : > { %v3351_v54 = vpop.f32.mrf.mxu3  ;;  %4254 = vst [vmem:[%s6035_s17 + $0xe0] sm:$0xff] %v3454_v34  ;;  %v3303_v15 = vadd.f32 %v3290_v24, %v3210_v35  ;;  %v2856_v7 = vadd.f32 %v2829_v50, %v6017_v29  ;;  %v3200_v62 = vpop.f32.mrf.mxu1  ;;  %v3102_v29 = vadd.f32 %v6167_v9, %v3009_v16 }
 0x328   : > { %v3211_v51 = vadd.f32 %v3200_v62, %v3162_v26  ;;  %3603 = vst [vmem:[%s6248_s8 + $0x78] sm:$0xff] (%p4765_p9), %v3602_v57 }
 0x329   : > { %v3364_v43 = vadd.f32 %v3351_v54, %v3303_v15  ;;  %v3392_v22 = vadd.f32 %v6023_v6, %v2856_v7  ;;  %v3163_v52 = vadd.f32 %v6169_v5, %v3102_v29  ;;  %v3572_v5 = vld [vmem:[%s6035_s17] sm:$0xff] (%p4765_p9)  ;;  %3607 = vst [vmem:[%s6248_s8 + $0x108] sm:$0xff] (%p4765_p9), %v3606_v46 }
 0x32a   : > { %3573 = vst [vmem:[%s6248_s8] sm:$0xff] (%p4765_p9), %v3572_v5 }
 0x32b   : > { %v3447_v36 = vadd.f32 %v6023_v6, %v3364_v43  ;;  %v3416_v37 = vmax.f32 %v3392_v22, 0.0  ;;  %3609 = vst [vmem:[%s6248_s8 + $0x110] sm:$0xff] (%p4765_p9), %v3608_v47 }
 0x32c   : > { %3611 = vst [vmem:[%s6248_s8 + $0x118] sm:$0xff] (%p4765_p9), %v3610_v60  ;;  %v3622_v19 = vld [vmem:[%s6035_s17 + $0xc8] sm:$0xff] (%p4765_p9) }
 0x32d   : > { %v3455_v0 = vmax.f32 %v3447_v36, 0.0  ;;  %3440 = vst [vmem:[%s6035_s17 + $0xd0] sm:$0xff] %v3416_v37 }
 0x32e   : > { %v3293_v33 = vpop.f32.mrf.mxu2  ;;  %v2831_v32 = vpop.f32.mrf.mxu0  ;;  %3613 = vst [vmem:[%s6248_s8 + $0x120] sm:$0xff] (%p4765_p9), %v3612_v11  ;;  %v3628_v35 = vld [vmem:[%s6035_s17 + $0xe0] sm:$0xff] (%p4765_p9) }
 0x32f   : > { %v3354_v61 = vpop.f32.mrf.mxu3  ;;  %4255 = vst [vmem:[%s6035_s17 + $0xe8] sm:$0xff] %v3455_v0  ;;  %v3304_v23 = vadd.f32 %v3293_v33, %v3211_v51  ;;  %v2857_v25 = vadd.f32 %v2831_v32, %v6028_v39  ;;  %v3202_v44 = vpop.f32.mrf.mxu1 }
 0x330   : > { %v3212_v31 = vadd.f32 %v3202_v44, %v3163_v52  ;;  %3615 = vst [vmem:[%s6248_s8 + $0x128] sm:$0xff] (%p4765_p9), %v3614_v55 }
 0x331   : > { %v3365_v63 = vadd.f32 %v3354_v61, %v3304_v23  ;;  %v3393_v10 = vadd.f32 %v6023_v6, %v2857_v25  ;;  %3617 = vst [vmem:[%s6248_s8 + $0x130] sm:$0xff] (%p4765_p9), %v3616_v59 }
 0x332   : > { %3619 = vst [vmem:[%s6248_s8 + $0x138] sm:$0xff] (%p4765_p9), %v3618_v45 }
 0x333   : > { %v3448_v28 = vadd.f32 %v6023_v6, %v3365_v63  ;;  %v3417_v41 = vmax.f32 %v3393_v10, 0.0  ;;  %3621 = vst [vmem:[%s6248_s8 + $0x140] sm:$0xff] (%p4765_p9), %v3620_v30 }
 0x334   : > { %v3624_v38 = vld [vmem:[%s6035_s17 + $0xd0] sm:$0xff] (%p4765_p9)  ;;  %3623 = vst [vmem:[%s6248_s8 + $0x148] sm:$0xff] (%p4765_p9), %v3622_v19 }
 0x335   : > { %v3456_v27 = vmax.f32 %v3448_v28, 0.0  ;;  %3441 = vst [vmem:[%s6035_s17 + $0xd8] sm:$0xff] %v3417_v41 }
 0x336   : > { %v3295_v40 = vpop.f32.mrf.mxu2  ;;  %3625 = vst [vmem:[%s6248_s8 + $0x150] sm:$0xff] (%p4765_p9), %v3624_v38  ;;  %v3630_v24 = vld [vmem:[%s6035_s17 + $0xe8] sm:$0xff] (%p4765_p9) }
 0x337   : > { %4256 = vst [vmem:[%s6035_s17 + $0xf0] sm:$0xff] %v3456_v27  ;;  %v3305_v9 = vadd.f32 %v3295_v40, %v3212_v31  ;;  %v3356_v4 = vpop.f32.mrf.mxu3 }
 0x338   : > { %3629 = vst [vmem:[%s6248_s8 + $0x160] sm:$0xff] (%p4765_p9), %v3628_v35 }
 0x339   : > { %v3366_v49 = vadd.f32 %v3356_v4, %v3305_v9  ;;  %3631 = vst [vmem:[%s6248_s8 + $0x168] sm:$0xff] (%p4765_p9), %v3630_v24 }
 0x33b   : > { %v3449_v39 = vadd.f32 %v6023_v6, %v3366_v49  ;;  %3473 = sbr.rel (!%p4765_p9) target bundleno = 840 (0x348), region = 143  ;;  %v3576_v6 = vld [vmem:[%s6035_s17 + $0x10] sm:$0xff] (%p4765_p9) }
 0x33c   : > { %3577 = vst [vmem:[%s6248_s8 + $0x10] sm:$0xff] (%p4765_p9), %v3576_v6  ;;  %v3626_v34 = vld [vmem:[%s6035_s17 + $0xd8] sm:$0xff] (%p4765_p9) }
 0x33d   : > { %v3457_v48 = vmax.f32 %v3449_v39, 0.0  ;;  %3627 = vst [vmem:[%s6248_s8 + $0x158] sm:$0xff] (%p4765_p9), %v3626_v34 }
 0x33e   : > { %v3632_v54 = vld [vmem:[%s6035_s17 + $0xf0] sm:$0xff] (%p4765_p9) }
 0x33f   : > { %4257 = vst [vmem:[%s6035_s17 + $0xf8] sm:$0xff] %v3457_v48 }
 0x340   : > { %3633 = vst [vmem:[%s6248_s8 + $0x170] sm:$0xff] %v3632_v54 }
 0x346   : > { %v3634_v21 = vld [vmem:[%s6035_s17 + $0xf8] sm:$0xff] }
 0x347   : > { %3635 = vst [vmem:[%s6248_s8 + $0x178] sm:$0xff] %v3634_v21 }
 0x348 PF: > { %s14_s21 = sadd.s32 1, %s4632_s21   ;;  %s6392_s15 = smov %s4612_s16 }
 0x349   : > { %p11_p4 = scmp.ge.s32.totalorder %s14_s21, 4   ;;  %s6393_s16 = smov %s4760_s9 }
 0x34a   : > { %s6394_s17 = smov %s4620_s18  ;;  %s6395_s18 = smov %s4749_s6 }
 0x34b   : > { %s6396_s19 = smov %s4628_s20  ;;  %s6397_s20 = smov %s6399_s23 }
 0x34c   :  { %13 = sbr.rel (!%p11_p4) target bundleno = 4 (0x4), region = 263 }

</bundles_post_ra>
